<compile_context>
chip_gen: v7x
topology: tpu7x:2x2x1
jax: 0.10.0
libtpu: 0.0.40
codegen_flags: <defaults>
</compile_context>

<pallas_src>
import math
from functools import partial

import jax
import jax.numpy as jnp
import numpy as np
from jax.experimental import pallas as pl
from jax.experimental.pallas import tpu as pltpu


# --------------------- static (numpy) helpers: indices & masks ---------------------
def _relative_position_index(window_size):
    ws0, ws1 = window_size
    coords = np.stack(np.meshgrid(np.arange(ws0), np.arange(ws1), indexing="ij"))
    coords_flat = coords.reshape(2, -1)                                   # (2, N)
    rel = coords_flat[:, :, None] - coords_flat[:, None, :]               # (2, N, N)
    rel = rel.transpose(1, 2, 0).copy()                                   # (N, N, 2)
    rel[:, :, 0] += ws0 - 1
    rel[:, :, 1] += ws1 - 1
    rel[:, :, 0] *= 2 * ws1 - 1
    return rel.sum(-1).reshape(-1)                                        # (N*N,)


def _relative_coords_table(window_size):
    ws0, ws1 = window_size
    ch = np.arange(-(ws0 - 1), ws0, dtype=np.float32)
    cw = np.arange(-(ws1 - 1), ws1, dtype=np.float32)
    table = np.stack(np.meshgrid(ch, cw, indexing="ij"))                  # (2, 2ws0-1, 2ws1-1)
    table = table.transpose(1, 2, 0)[None].copy()                         # (1, ., ., 2)
    table[..., 0] /= ws0 - 1
    table[..., 1] /= ws1 - 1
    table *= 8.0
    table = np.sign(table) * np.log2(np.abs(table) + 1.0) / 3.0
    return table.astype(np.float32)


def _attention_mask(pad_H, pad_W, window_size, shift_size):
    ws0, ws1 = window_size
    s0, s1 = shift_size
    mask = np.zeros((pad_H, pad_W), np.float32)
    h_slices = ((0, -ws0), (-ws0, -s0), (-s0, None))
    w_slices = ((0, -ws1), (-ws1, -s1), (-s1, None))
    count = 0
    for h in h_slices:
        for w in w_slices:
            mask[h[0]:h[1], w[0]:w[1]] = count
            count += 1
    nWh, nWw = pad_H // ws0, pad_W // ws1
    mask = mask.reshape(nWh, ws0, nWw, ws1).transpose(0, 2, 1, 3)
    mask = mask.reshape(nWh * nWw, ws0 * ws1)
    diff = mask[:, None, :] - mask[:, :, None]                            # (nW, N, N)
    return np.where(diff != 0, -100.0, 0.0).astype(np.float32)


# --------------------- SwinV2 continuous position bias (parameter-side) ------------
def relative_position_bias_v2(cpb_w1, cpb_b1, cpb_w2, window_size, num_heads):
    # Tiny one-off parameter-side precompute (15x15x2 MLP) kept in plain JAX.
    ws0, ws1 = window_size
    N = ws0 * ws1
    table = jnp.asarray(_relative_coords_table(window_size))              # (1, ., ., 2)
    hidden = jax.nn.relu(table @ cpb_w1 + cpb_b1)                         # (1, ., ., 512)
    tbl = (hidden @ cpb_w2).reshape(-1, num_heads)                        # (M, nh)
    idx = jnp.asarray(_relative_position_index(window_size))              # (N*N,)
    bias = tbl[idx].reshape(N, N, num_heads).transpose(2, 0, 1)           # (nh, N, N)
    return 16.0 * jax.nn.sigmoid(bias)


# --------------------------------- Pallas kernel -----------------------------------
def _swin_attn_v2_kernel(x_ref, wq_ref, wk_ref, wv_ref, bq_ref, wp_ref, bp_ref,
                         bm_ref, ls_ref, o_ref, *, num_heads, num_windows,
                         seq_len, dim):
    """One batch element: all windows, all heads, fully in VMEM.

    x_ref  : (nW, N, C)       bf16 window tokens
    wq/wk/wv: (nh, C, hd)     bf16 per-head QKV weights (k bias zeroed -> dropped)
    bq_ref : (nh, 1, hd)      f32 per-head query bias
    wp_ref : (nh, hd, C)      bf16 projection weight split per head (head-merge fused)
    bp_ref : (1, C)           f32 projection bias (+ folded value bias)
    bm_ref : (nh, nW, N, N)   f32 rel-pos bias + shifted-window mask (pre-fused)
    ls_ref : (nh,)            f32 SMEM scalars: exp(clamp(logit_scale, log 100))
    o_ref  : (N, nW*C)        f32 lane-dense output (windows along lanes)
    """
    nW, N, C = num_windows, seq_len, dim
    hd = C // num_heads
    M = nW * N
    x = x_ref[...].reshape(M, C)                          # merge leading dims (free), bf16
    y = jnp.zeros((M, C), jnp.float32)
    for h in range(num_heads):                            # static unroll, nh is small
        q = jnp.dot(x, wq_ref[h], preferred_element_type=jnp.float32) + bq_ref[h]
        k = jnp.dot(x, wk_ref[h], preferred_element_type=jnp.float32)
        v = jnp.dot(x, wv_ref[h], preferred_element_type=jnp.float32)
        # cosine attention: rsqrt-based L2 normalization (EUP); logit scale folded into q
        q = q * (jax.lax.rsqrt(jnp.maximum(jnp.sum(q * q, -1, keepdims=True), 1e-24))
                 * ls_ref[h])
        k = k * jax.lax.rsqrt(jnp.maximum(jnp.sum(k * k, -1, keepdims=True), 1e-24))
        q3 = q.reshape(nW, N, hd).astype(jnp.bfloat16)
        k3 = k.reshape(nW, N, hd).astype(jnp.bfloat16)
        v3 = v.reshape(nW, N, hd).astype(jnp.bfloat16)
        # window-batched score matmul + pre-fused (bias + mask) add
        s = jnp.einsum('wqd,wkd->wqk', q3, k3, preferred_element_type=jnp.float32)
        s = s + bm_ref[h]
        # numerically-stable softmax; reciprocal on the EUP instead of a VALU divide
        s = s - jnp.max(s, axis=-1, keepdims=True)
        p = jnp.exp(s)
        p = p * pl.reciprocal(jnp.sum(p, axis=-1, keepdims=True), approx=True)
        o = jnp.einsum('wqk,wkd->wqd', p.astype(jnp.bfloat16), v3,
                       preferred_element_type=jnp.float32)
        # head-merge folded into the per-head slice of the projection weight
        y = y + jnp.dot(o.reshape(M, hd).astype(jnp.bfloat16), wp_ref[h],
                        preferred_element_type=jnp.float32)
    y = y + bp_ref[...]
    # lane-dense store: put the nW window blocks side-by-side along lanes -> (N, nW*C)
    o_ref[...] = jnp.concatenate([y[w * N:(w + 1) * N, :] for w in range(nW)], axis=-1)


# --------------------------------- wrapper ------------------------------------------
def shifted_window_attention_v2(x, qkv_w_t, qkv_b, proj_w_t, proj_b, logit_scale,
                                rel_bias, *, window_size, shift_size, num_heads):
    """x: (B, H, W, C) NHWC (as in the PyTorch module).
    qkv_w_t: (C, 3C) = qkv.weight^T, proj_w_t: (C, C) = proj.weight^T.
    rel_bias: (num_heads, N, N). Returns (B, H, W, C)."""
    B, H, W, C = x.shape
    ws0, ws1 = window_size
    hd = C // num_heads

    # pad to window multiples + cyclic shift (layout plumbing, tiny tensors)
    pad_b = (ws0 - H % ws0) % ws0
    pad_r = (ws1 - W % ws1) % ws1
    xp = jnp.pad(x, ((0, 0), (0, pad_b), (0, pad_r), (0, 0)))
    pad_H, pad_W = H + pad_b, W + pad_r
    s0, s1 = shift_size
    if ws0 >= pad_H:
        s0 = 0
    if ws1 >= pad_W:
        s1 = 0
    shifted = (s0 + s1) > 0
    if shifted:
        xp = jnp.roll(xp, (-s0, -s1), axis=(1, 2))

    nWh, nWw = pad_H // ws0, pad_W // ws1
    nW = nWh * nWw
    N = ws0 * ws1

    # window partition -> (B, nW, N, C), cast once to bf16 (halves activation DMA)
    xw = xp.reshape(B, nWh, ws0, nWw, ws1, C).transpose(0, 1, 3, 2, 4, 5)
    xw = xw.reshape(B, nW, N, C).astype(jnp.bfloat16)

    # per-head weight layout; weights in bf16 (MXU operands), biases stay f32
    wq = qkv_w_t[:, 0 * C:1 * C].reshape(C, num_heads, hd).transpose(1, 0, 2).astype(jnp.bfloat16)
    wk = qkv_w_t[:, 1 * C:2 * C].reshape(C, num_heads, hd).transpose(1, 0, 2).astype(jnp.bfloat16)
    wv = qkv_w_t[:, 2 * C:3 * C].reshape(C, num_heads, hd).transpose(1, 0, 2).astype(jnp.bfloat16)
    bq = qkv_b[0 * C:1 * C].reshape(num_heads, 1, hd).astype(jnp.float32)
    # SwinV2 zeroes the key bias -> dropped entirely.  Value bias folded into the
    # projection bias (valid because softmax rows sum to 1).
    v_bias = qkv_b[2 * C:3 * C]
    wp = proj_w_t.reshape(num_heads, hd, C).astype(jnp.bfloat16)       # head-merge fused
    bp = (proj_b + v_bias @ proj_w_t).reshape(1, C).astype(jnp.float32)

    # per-head logit scale as SMEM scalars
    ls = jnp.exp(jnp.minimum(logit_scale.reshape(num_heads), math.log(100.0)))
    ls = ls.astype(jnp.float32)

    # pre-fuse the shifted-window mask into the relative position bias: (nh, nW, N, N)
    if shifted:
        mask = jnp.asarray(_attention_mask(pad_H, pad_W, (ws0, ws1), (s0, s1)))
        bm = rel_bias[:, None, :, :] + mask[None, :, :, :]
    else:
        bm = jnp.broadcast_to(rel_bias[:, None, :, :], (num_heads, nW, N, N))
    bm = bm.astype(jnp.float32)

    cw = lambda b: (0, 0, 0)

    # grid=(B,)=(2,): one step per batch element; on v7x megacore each TC gets one
    # step.  (If B were ever 1, split the window axis across a 2-step grid instead.)
    out_k = pl.pallas_call(
        partial(_swin_attn_v2_kernel, num_heads=num_heads, num_windows=nW,
                seq_len=N, dim=C),
        out_shape=jax.ShapeDtypeStruct((B, N, nW * C), jnp.float32),
        grid_spec=pltpu.PrefetchScalarGridSpec(
            num_scalar_prefetch=0,
            grid=(B,),
            in_specs=[
                pl.BlockSpec((None, nW, N, C), lambda b: (b, 0, 0, 0)),     # x windows
                pl.BlockSpec((num_heads, C, hd), cw),                       # wq
                pl.BlockSpec((num_heads, C, hd), cw),                       # wk
                pl.BlockSpec((num_heads, C, hd), cw),                       # wv
                pl.BlockSpec((num_heads, 1, hd), cw),                       # bq
                pl.BlockSpec((num_heads, hd, C), cw),                       # wp
                pl.BlockSpec((1, C), lambda b: (0, 0)),                     # bp (+v bias)
                pl.BlockSpec((num_heads, nW, N, N), lambda b: (0, 0, 0, 0)),  # bias+mask
                pl.BlockSpec(memory_space=pltpu.MemorySpace.SMEM),          # logit scale
            ],
            out_specs=pl.BlockSpec((None, N, nW * C), lambda b: (b, 0, 0)),  # lane-dense
        ),
        compiler_params=pltpu.CompilerParams(dimension_semantics=("parallel",)),
    )(xw, wq, wk, wv, bq, wp, bp, bm, ls)

    # kernel output layout (B, N, nW*C) with windows along lanes -> (B, nW, N, C)
    out_w = out_k.reshape(B, N, nW, C).transpose(0, 2, 1, 3)
    # window merge + inverse cyclic shift + crop (layout plumbing)
    out = out_w.reshape(B, nWh, nWw, ws0, ws1, C).transpose(0, 1, 3, 2, 4, 5)
    out = out.reshape(B, pad_H, pad_W, C)
    if shifted:
        out = jnp.roll(out, (s0, s1), axis=(1, 2))
    return out[:, :H, :W, :]


# --------------------------- pure-JAX reference (for checking) ----------------------
def _reference_forward(x, qkv_w_t, qkv_b, proj_w_t, proj_b, logit_scale, rel_bias,
                       *, window_size, shift_size, num_heads):
    B, H, W, C = x.shape
    ws0, ws1 = window_size
    hd = C // num_heads
    pad_b = (ws0 - H % ws0) % ws0
    pad_r = (ws1 - W % ws1) % ws1
    xp = jnp.pad(x, ((0, 0), (0, pad_b), (0, pad_r), (0, 0)))
    pad_H, pad_W = H + pad_b, W + pad_r
    s0, s1 = shift_size
    if ws0 >= pad_H:
        s0 = 0
    if ws1 >= pad_W:
        s1 = 0
    if s0 + s1 > 0:
        xp = jnp.roll(xp, (-s0, -s1), axis=(1, 2))
    nWh, nWw = pad_H // ws0, pad_W // ws1
    nW = nWh * nWw
    N = ws0 * ws1
    xw = xp.reshape(B, nWh, ws0, nWw, ws1, C).transpose(0, 1, 3, 2, 4, 5)
    xw = xw.reshape(B * nW, N, C)
    bz = qkv_b.at[C:2 * C].set(0.0)
    qkv = xw @ qkv_w_t + bz
    qkv = qkv.reshape(B * nW, N, 3, num_heads, hd).transpose(2, 0, 3, 1, 4)
    q, k, v = qkv[0], qkv[1], qkv[2]
    qn = q / jnp.maximum(jnp.linalg.norm(q, axis=-1, keepdims=True), 1e-12)
    kn = k / jnp.maximum(jnp.linalg.norm(k, axis=-1, keepdims=True), 1e-12)
    ls = jnp.exp(jnp.minimum(logit_scale.reshape(num_heads), math.log(100.0)))
    attn = (qn @ jnp.swapaxes(kn, -2, -1)) * ls.reshape(1, num_heads, 1, 1) + rel_bias[None]
    if s0 + s1 > 0:
        mask = jnp.asarray(_attention_mask(pad_H, pad_W, (ws0, ws1), (s0, s1)))
        attn = attn.reshape(B, nW, num_heads, N, N) + mask[None, :, None]
        attn = attn.reshape(B * nW, num_heads, N, N)
    attn = jax.nn.softmax(attn, axis=-1)
    out = jnp.swapaxes(attn @ v, 1, 2).reshape(B * nW, N, C)
    out = out @ proj_w_t + proj_b
    out = out.reshape(B, nWh, nWw, ws0, ws1, C).transpose(0, 1, 3, 2, 4, 5)
    out = out.reshape(B, pad_H, pad_W, C)
    if s0 + s1 > 0:
        out = jnp.roll(out, (s0, s1), axis=(1, 2))
    return out[:, :H, :W, :]


# ------------------------------------- main -----------------------------------------
if __name__ == "__main__":
    dim, num_heads = 32, 2
    window_size, shift_size = (8, 8), (4, 4)
    B, H, W = 2, 16, 16

    key = jax.random.PRNGKey(0)
    ks = jax.random.split(key, 9)
    x = jax.random.normal(ks[0], (B, H, W, dim), jnp.float32)
    qkv_w_t = 0.1 * jax.random.normal(ks[1], (dim, 3 * dim), jnp.float32)   # qkv.weight^T
    qkv_b = 0.1 * jax.random.normal(ks[2], (3 * dim,), jnp.float32)
    proj_w_t = 0.1 * jax.random.normal(ks[3], (dim, dim), jnp.float32)      # proj.weight^T
    proj_b = 0.1 * jax.random.normal(ks[4], (dim,), jnp.float32)
    logit_scale = jnp.log(10.0) + 0.05 * jax.random.normal(ks[5], (num_heads, 1, 1),
                                                           jnp.float32)
    cpb_w1 = 0.1 * jax.random.normal(ks[6], (2, 512), jnp.float32)          # cpb_mlp[0].weight^T
    cpb_b1 = 0.1 * jax.random.normal(ks[7], (512,), jnp.float32)            # cpb_mlp[0].bias
    cpb_w2 = 0.1 * jax.random.normal(ks[8], (512, num_heads), jnp.float32)  # cpb_mlp[2].weight^T

    rel_bias = relative_position_bias_v2(cpb_w1, cpb_b1, cpb_w2, window_size, num_heads)

    fwd = jax.jit(partial(shifted_window_attention_v2, window_size=window_size,
                          shift_size=shift_size, num_heads=num_heads))
    out = fwd(x, qkv_w_t, qkv_b, proj_w_t, proj_b, logit_scale, rel_bias)
    jax.block_until_ready(out)
    assert out.shape == (B, H, W, dim)

    with jax.default_matmul_precision("float32"):
        ref = _reference_forward(x, qkv_w_t, qkv_b, proj_w_t, proj_b, logit_scale,
                                 rel_bias, window_size=window_size,
                                 shift_size=shift_size, num_heads=num_heads)
    # bf16 MXU operands (per the perf review) -> slightly looser tolerance than f32.
    np.testing.assert_allclose(np.asarray(out), np.asarray(ref), rtol=3e-2, atol=3e-2)
    print("KERNEL_OK")
</pallas_src>

<mosaic_0001>
module attributes {stable_mosaic.version = 11 : i64} {
  func.func @_swin_attn_v2_kernel(%arg0: i32, %arg1: memref<1x4x64x32xbf16, #tpu.memory_space<vmem>>, %arg2: memref<2x32x16xbf16, #tpu.memory_space<vmem>>, %arg3: memref<2x32x16xbf16, #tpu.memory_space<vmem>>, %arg4: memref<2x32x16xbf16, #tpu.memory_space<vmem>>, %arg5: memref<2x1x16xf32, #tpu.memory_space<vmem>>, %arg6: memref<2x16x32xbf16, #tpu.memory_space<vmem>>, %arg7: memref<1x32xf32, #tpu.memory_space<vmem>>, %arg8: memref<2x4x64x64xf32, #tpu.memory_space<vmem>>, %arg9: memref<2xf32, #tpu.memory_space<smem>>, %arg10: memref<1x64x128xf32, #tpu.memory_space<vmem>>) attributes {dimension_semantics = [#tpu.dimension_semantics<parallel>], iteration_bounds = array<i64: 2>, scalar_prefetch = 0 : i64, scratch_operands = 0 : i64, tpu.core_type = #tpu.core_type<tc>, window_params = [{transform_indices = @transform_0, window_bounds = array<i64: 1, 4, 64, 32>}, {pipeline_mode = #tpu.pipeline_mode<synchronous>, transform_indices = @transform_1, window_bounds = array<i64: 2, 32, 16>}, {pipeline_mode = #tpu.pipeline_mode<synchronous>, transform_indices = @transform_2, window_bounds = array<i64: 2, 32, 16>}, {pipeline_mode = #tpu.pipeline_mode<synchronous>, transform_indices = @transform_3, window_bounds = array<i64: 2, 32, 16>}, {pipeline_mode = #tpu.pipeline_mode<synchronous>, transform_indices = @transform_4, window_bounds = array<i64: 2, 1, 16>}, {pipeline_mode = #tpu.pipeline_mode<synchronous>, transform_indices = @transform_5, window_bounds = array<i64: 2, 16, 32>}, {pipeline_mode = #tpu.pipeline_mode<synchronous>, transform_indices = @transform_6, window_bounds = array<i64: 1, 32>}, {pipeline_mode = #tpu.pipeline_mode<synchronous>, transform_indices = @transform_7, window_bounds = array<i64: 2, 4, 64, 64>}, {transform_indices = @transform_8, window_bounds = array<i64: 2>}, {transform_indices = @transform_9, window_bounds = array<i64: 1, 64, 128>}]} {
    %c0 = arith.constant 0 : index
    %c0_0 = arith.constant 0 : index
    %c0_1 = arith.constant 0 : index
    %c0_2 = arith.constant 0 : index
    %0 = vector.load %arg1[%c0, %c0_0, %c0_1, %c0_2] : memref<1x4x64x32xbf16, #tpu.memory_space<vmem>>, vector<1x4x64x32xbf16>
    %1 = vector.shape_cast %0 : vector<1x4x64x32xbf16> to vector<4x64x32xbf16>
    %2 = vector.shape_cast %1 : vector<4x64x32xbf16> to vector<256x32xbf16>
    %cst = arith.constant 0.000000e+00 : f32
    %3 = vector.broadcast %cst : f32 to vector<256x32xf32>
    %c0_3 = arith.constant 0 : index
    %c0_4 = arith.constant 0 : index
    %c0_5 = arith.constant 0 : index
    %4 = vector.load %arg2[%c0_3, %c0_4, %c0_5] : memref<2x32x16xbf16, #tpu.memory_space<vmem>>, vector<1x32x16xbf16>
    %5 = vector.shape_cast %4 : vector<1x32x16xbf16> to vector<32x16xbf16>
    %cst_6 = arith.constant dense<0.000000e+00> : vector<256x16xf32>
    %6 = tpu.matmul %2, %5, %cst_6 {dimension_numbers = #tpu.dot_dimension_numbers<[1], [0], [0], [1], [0, 0, 1, 1], [], []>} : vector<256x32xbf16>, vector<32x16xbf16>, vector<256x16xf32> -> vector<256x16xf32>
    %c0_7 = arith.constant 0 : index
    %c0_8 = arith.constant 0 : index
    %c0_9 = arith.constant 0 : index
    %7 = vector.load %arg5[%c0_7, %c0_8, %c0_9] : memref<2x1x16xf32, #tpu.memory_space<vmem>>, vector<1x1x16xf32>
    %8 = vector.shape_cast %7 : vector<1x1x16xf32> to vector<1x16xf32>
    %9 = vector.broadcast %8 : vector<1x16xf32> to vector<256x16xf32>
    %10 = arith.addf %6, %9 : vector<256x16xf32>
    %c0_10 = arith.constant 0 : index
    %c0_11 = arith.constant 0 : index
    %c0_12 = arith.constant 0 : index
    %11 = vector.load %arg3[%c0_10, %c0_11, %c0_12] : memref<2x32x16xbf16, #tpu.memory_space<vmem>>, vector<1x32x16xbf16>
    %12 = vector.shape_cast %11 : vector<1x32x16xbf16> to vector<32x16xbf16>
    %cst_13 = arith.constant dense<0.000000e+00> : vector<256x16xf32>
    %13 = tpu.matmul %2, %12, %cst_13 {dimension_numbers = #tpu.dot_dimension_numbers<[1], [0], [0], [1], [0, 0, 1, 1], [], []>} : vector<256x32xbf16>, vector<32x16xbf16>, vector<256x16xf32> -> vector<256x16xf32>
    %c0_14 = arith.constant 0 : index
    %c0_15 = arith.constant 0 : index
    %c0_16 = arith.constant 0 : index
    %14 = vector.load %arg4[%c0_14, %c0_15, %c0_16] : memref<2x32x16xbf16, #tpu.memory_space<vmem>>, vector<1x32x16xbf16>
    %15 = vector.shape_cast %14 : vector<1x32x16xbf16> to vector<32x16xbf16>
    %cst_17 = arith.constant dense<0.000000e+00> : vector<256x16xf32>
    %16 = tpu.matmul %2, %15, %cst_17 {dimension_numbers = #tpu.dot_dimension_numbers<[1], [0], [0], [1], [0, 0, 1, 1], [], []>} : vector<256x32xbf16>, vector<32x16xbf16>, vector<256x16xf32> -> vector<256x16xf32>
    %17 = arith.mulf %10, %10 : vector<256x16xf32>
    %cst_18 = arith.constant dense<0.000000e+00> : vector<256xf32>
    %18 = vector.multi_reduction <add>, %17, %cst_18 [1] : vector<256x16xf32> to vector<256xf32>
    %19 = vector.shape_cast %18 : vector<256xf32> to vector<256x1xf32>
    %cst_19 = arith.constant 1.000000e-24 : f32
    %20 = vector.broadcast %cst_19 : f32 to vector<256x1xf32>
    %21 = arith.maximumf %19, %20 : vector<256x1xf32>
    %22 = math.rsqrt %21 : vector<256x1xf32>
    %c0_20 = arith.constant 0 : index
    %23 = memref.load %arg9[%c0_20] : memref<2xf32, #tpu.memory_space<smem>>
    %24 = vector.broadcast %23 : f32 to vector<256x1xf32>
    %25 = arith.mulf %22, %24 : vector<256x1xf32>
    %26 = vector.broadcast %25 : vector<256x1xf32> to vector<256x16xf32>
    %27 = arith.mulf %10, %26 : vector<256x16xf32>
    %28 = arith.mulf %13, %13 : vector<256x16xf32>
    %cst_21 = arith.constant dense<0.000000e+00> : vector<256xf32>
    %29 = vector.multi_reduction <add>, %28, %cst_21 [1] : vector<256x16xf32> to vector<256xf32>
    %30 = vector.shape_cast %29 : vector<256xf32> to vector<256x1xf32>
    %cst_22 = arith.constant 1.000000e-24 : f32
    %31 = vector.broadcast %cst_22 : f32 to vector<256x1xf32>
    %32 = arith.maximumf %30, %31 : vector<256x1xf32>
    %33 = math.rsqrt %32 : vector<256x1xf32>
    %34 = vector.broadcast %33 : vector<256x1xf32> to vector<256x16xf32>
    %35 = arith.mulf %13, %34 : vector<256x16xf32>
    %36 = vector.shape_cast %27 : vector<256x16xf32> to vector<4x64x16xf32>
    %37 = arith.truncf %36 : vector<4x64x16xf32> to vector<4x64x16xbf16>
    %38 = vector.shape_cast %35 : vector<256x16xf32> to vector<4x64x16xf32>
    %39 = arith.truncf %38 : vector<4x64x16xf32> to vector<4x64x16xbf16>
    %40 = vector.shape_cast %16 : vector<256x16xf32> to vector<4x64x16xf32>
    %41 = arith.truncf %40 : vector<4x64x16xf32> to vector<4x64x16xbf16>
    "tpu.trace_start"() <{level = 10 : i32, message = "wqd,wkd->wqk"}> : () -> ()
    %cst_23 = arith.constant dense<0.000000e+00> : vector<4x64x64xf32>
    %42 = tpu.matmul %37, %39, %cst_23 {dimension_numbers = #tpu.dot_dimension_numbers<[2], [2], [1], [1], [0, 0, 0, 1, 1, 1], [0], [0]>} : vector<4x64x16xbf16>, vector<4x64x16xbf16>, vector<4x64x64xf32> -> vector<4x64x64xf32>
    "tpu.trace_stop"() : () -> ()
    %c0_24 = arith.constant 0 : index
    %c0_25 = arith.constant 0 : index
    %c0_26 = arith.constant 0 : index
    %c0_27 = arith.constant 0 : index
    %43 = vector.load %arg8[%c0_24, %c0_25, %c0_26, %c0_27] : memref<2x4x64x64xf32, #tpu.memory_space<vmem>>, vector<1x4x64x64xf32>
    %44 = vector.shape_cast %43 : vector<1x4x64x64xf32> to vector<4x64x64xf32>
    %45 = arith.addf %42, %44 : vector<4x64x64xf32>
    %cst_28 = arith.constant dense<0xFF800000> : vector<4x64xf32>
    %46 = vector.multi_reduction <maximumf>, %45, %cst_28 [2] : vector<4x64x64xf32> to vector<4x64xf32>
    %47 = vector.shape_cast %46 : vector<4x64xf32> to vector<4x64x1xf32>
    %48 = vector.broadcast %47 : vector<4x64x1xf32> to vector<4x64x64xf32>
    %49 = arith.subf %45, %48 : vector<4x64x64xf32>
    %50 = math.exp %49 : vector<4x64x64xf32>
    %cst_29 = arith.constant dense<0.000000e+00> : vector<4x64xf32>
    %51 = vector.multi_reduction <add>, %50, %cst_29 [2] : vector<4x64x64xf32> to vector<4x64xf32>
    %52 = vector.shape_cast %51 : vector<4x64xf32> to vector<4x64x1xf32>
    %53 = tpu.reciprocal %52 {approx = true} : vector<4x64x1xf32> -> vector<4x64x1xf32>
    %54 = vector.broadcast %53 : vector<4x64x1xf32> to vector<4x64x64xf32>
    %55 = arith.mulf %50, %54 : vector<4x64x64xf32>
    %56 = arith.truncf %55 : vector<4x64x64xf32> to vector<4x64x64xbf16>
    "tpu.trace_start"() <{level = 10 : i32, message = "wqk,wkd->wqd"}> : () -> ()
    %cst_30 = arith.constant dense<0.000000e+00> : vector<4x64x16xf32>
    %57 = tpu.matmul %56, %41, %cst_30 {dimension_numbers = #tpu.dot_dimension_numbers<[2], [1], [1], [2], [0, 0, 0, 1, 1, 2], [0], [0]>} : vector<4x64x64xbf16>, vector<4x64x16xbf16>, vector<4x64x16xf32> -> vector<4x64x16xf32>
    "tpu.trace_stop"() : () -> ()
    %58 = vector.shape_cast %57 : vector<4x64x16xf32> to vector<256x16xf32>
    %59 = arith.truncf %58 : vector<256x16xf32> to vector<256x16xbf16>
    %c0_31 = arith.constant 0 : index
    %c0_32 = arith.constant 0 : index
    %c0_33 = arith.constant 0 : index
    %60 = vector.load %arg6[%c0_31, %c0_32, %c0_33] : memref<2x16x32xbf16, #tpu.memory_space<vmem>>, vector<1x16x32xbf16>
    %61 = vector.shape_cast %60 : vector<1x16x32xbf16> to vector<16x32xbf16>
    %cst_34 = arith.constant dense<0.000000e+00> : vector<256x32xf32>
    %62 = tpu.matmul %59, %61, %cst_34 {dimension_numbers = #tpu.dot_dimension_numbers<[1], [0], [0], [1], [0, 0, 1, 1], [], []>} : vector<256x16xbf16>, vector<16x32xbf16>, vector<256x32xf32> -> vector<256x32xf32>
    %63 = arith.addf %3, %62 : vector<256x32xf32>
    %c1 = arith.constant 1 : index
    %c0_35 = arith.constant 0 : index
    %c0_36 = arith.constant 0 : index
    %64 = vector.load %arg2[%c1, %c0_35, %c0_36] : memref<2x32x16xbf16, #tpu.memory_space<vmem>>, vector<1x32x16xbf16>
    %65 = vector.shape_cast %64 : vector<1x32x16xbf16> to vector<32x16xbf16>
    %cst_37 = arith.constant dense<0.000000e+00> : vector<256x16xf32>
    %66 = tpu.matmul %2, %65, %cst_37 {dimension_numbers = #tpu.dot_dimension_numbers<[1], [0], [0], [1], [0, 0, 1, 1], [], []>} : vector<256x32xbf16>, vector<32x16xbf16>, vector<256x16xf32> -> vector<256x16xf32>
    %c1_38 = arith.constant 1 : index
    %c0_39 = arith.constant 0 : index
    %c0_40 = arith.constant 0 : index
    %67 = vector.load %arg5[%c1_38, %c0_39, %c0_40] : memref<2x1x16xf32, #tpu.memory_space<vmem>>, vector<1x1x16xf32>
    %68 = vector.shape_cast %67 : vector<1x1x16xf32> to vector<1x16xf32>
    %69 = vector.broadcast %68 : vector<1x16xf32> to vector<256x16xf32>
    %70 = arith.addf %66, %69 : vector<256x16xf32>
    %c1_41 = arith.constant 1 : index
    %c0_42 = arith.constant 0 : index
    %c0_43 = arith.constant 0 : index
    %71 = vector.load %arg3[%c1_41, %c0_42, %c0_43] : memref<2x32x16xbf16, #tpu.memory_space<vmem>>, vector<1x32x16xbf16>
    %72 = vector.shape_cast %71 : vector<1x32x16xbf16> to vector<32x16xbf16>
    %cst_44 = arith.constant dense<0.000000e+00> : vector<256x16xf32>
    %73 = tpu.matmul %2, %72, %cst_44 {dimension_numbers = #tpu.dot_dimension_numbers<[1], [0], [0], [1], [0, 0, 1, 1], [], []>} : vector<256x32xbf16>, vector<32x16xbf16>, vector<256x16xf32> -> vector<256x16xf32>
    %c1_45 = arith.constant 1 : index
    %c0_46 = arith.constant 0 : index
    %c0_47 = arith.constant 0 : index
    %74 = vector.load %arg4[%c1_45, %c0_46, %c0_47] : memref<2x32x16xbf16, #tpu.memory_space<vmem>>, vector<1x32x16xbf16>
    %75 = vector.shape_cast %74 : vector<1x32x16xbf16> to vector<32x16xbf16>
    %cst_48 = arith.constant dense<0.000000e+00> : vector<256x16xf32>
    %76 = tpu.matmul %2, %75, %cst_48 {dimension_numbers = #tpu.dot_dimension_numbers<[1], [0], [0], [1], [0, 0, 1, 1], [], []>} : vector<256x32xbf16>, vector<32x16xbf16>, vector<256x16xf32> -> vector<256x16xf32>
    %77 = arith.mulf %70, %70 : vector<256x16xf32>
    %cst_49 = arith.constant dense<0.000000e+00> : vector<256xf32>
    %78 = vector.multi_reduction <add>, %77, %cst_49 [1] : vector<256x16xf32> to vector<256xf32>
    %79 = vector.shape_cast %78 : vector<256xf32> to vector<256x1xf32>
    %cst_50 = arith.constant 1.000000e-24 : f32
    %80 = vector.broadcast %cst_50 : f32 to vector<256x1xf32>
    %81 = arith.maximumf %79, %80 : vector<256x1xf32>
    %82 = math.rsqrt %81 : vector<256x1xf32>
    %c1_51 = arith.constant 1 : index
    %83 = memref.load %arg9[%c1_51] : memref<2xf32, #tpu.memory_space<smem>>
    %84 = vector.broadcast %83 : f32 to vector<256x1xf32>
    %85 = arith.mulf %82, %84 : vector<256x1xf32>
    %86 = vector.broadcast %85 : vector<256x1xf32> to vector<256x16xf32>
    %87 = arith.mulf %70, %86 : vector<256x16xf32>
    %88 = arith.mulf %73, %73 : vector<256x16xf32>
    %cst_52 = arith.constant dense<0.000000e+00> : vector<256xf32>
    %89 = vector.multi_reduction <add>, %88, %cst_52 [1] : vector<256x16xf32> to vector<256xf32>
    %90 = vector.shape_cast %89 : vector<256xf32> to vector<256x1xf32>
    %cst_53 = arith.constant 1.000000e-24 : f32
    %91 = vector.broadcast %cst_53 : f32 to vector<256x1xf32>
    %92 = arith.maximumf %90, %91 : vector<256x1xf32>
    %93 = math.rsqrt %92 : vector<256x1xf32>
    %94 = vector.broadcast %93 : vector<256x1xf32> to vector<256x16xf32>
    %95 = arith.mulf %73, %94 : vector<256x16xf32>
    %96 = vector.shape_cast %87 : vector<256x16xf32> to vector<4x64x16xf32>
    %97 = arith.truncf %96 : vector<4x64x16xf32> to vector<4x64x16xbf16>
    %98 = vector.shape_cast %95 : vector<256x16xf32> to vector<4x64x16xf32>
    %99 = arith.truncf %98 : vector<4x64x16xf32> to vector<4x64x16xbf16>
    %100 = vector.shape_cast %76 : vector<256x16xf32> to vector<4x64x16xf32>
    %101 = arith.truncf %100 : vector<4x64x16xf32> to vector<4x64x16xbf16>
    "tpu.trace_start"() <{level = 10 : i32, message = "wqd,wkd->wqk"}> : () -> ()
    %cst_54 = arith.constant dense<0.000000e+00> : vector<4x64x64xf32>
    %102 = tpu.matmul %97, %99, %cst_54 {dimension_numbers = #tpu.dot_dimension_numbers<[2], [2], [1], [1], [0, 0, 0, 1, 1, 1], [0], [0]>} : vector<4x64x16xbf16>, vector<4x64x16xbf16>, vector<4x64x64xf32> -> vector<4x64x64xf32>
    "tpu.trace_stop"() : () -> ()
    %c1_55 = arith.constant 1 : index
    %c0_56 = arith.constant 0 : index
    %c0_57 = arith.constant 0 : index
    %c0_58 = arith.constant 0 : index
    %103 = vector.load %arg8[%c1_55, %c0_56, %c0_57, %c0_58] : memref<2x4x64x64xf32, #tpu.memory_space<vmem>>, vector<1x4x64x64xf32>
    %104 = vector.shape_cast %103 : vector<1x4x64x64xf32> to vector<4x64x64xf32>
    %105 = arith.addf %102, %104 : vector<4x64x64xf32>
    %cst_59 = arith.constant dense<0xFF800000> : vector<4x64xf32>
    %106 = vector.multi_reduction <maximumf>, %105, %cst_59 [2] : vector<4x64x64xf32> to vector<4x64xf32>
    %107 = vector.shape_cast %106 : vector<4x64xf32> to vector<4x64x1xf32>
    %108 = vector.broadcast %107 : vector<4x64x1xf32> to vector<4x64x64xf32>
    %109 = arith.subf %105, %108 : vector<4x64x64xf32>
    %110 = math.exp %109 : vector<4x64x64xf32>
    %cst_60 = arith.constant dense<0.000000e+00> : vector<4x64xf32>
    %111 = vector.multi_reduction <add>, %110, %cst_60 [2] : vector<4x64x64xf32> to vector<4x64xf32>
    %112 = vector.shape_cast %111 : vector<4x64xf32> to vector<4x64x1xf32>
    %113 = tpu.reciprocal %112 {approx = true} : vector<4x64x1xf32> -> vector<4x64x1xf32>
    %114 = vector.broadcast %113 : vector<4x64x1xf32> to vector<4x64x64xf32>
    %115 = arith.mulf %110, %114 : vector<4x64x64xf32>
    %116 = arith.truncf %115 : vector<4x64x64xf32> to vector<4x64x64xbf16>
    "tpu.trace_start"() <{level = 10 : i32, message = "wqk,wkd->wqd"}> : () -> ()
    %cst_61 = arith.constant dense<0.000000e+00> : vector<4x64x16xf32>
    %117 = tpu.matmul %116, %101, %cst_61 {dimension_numbers = #tpu.dot_dimension_numbers<[2], [1], [1], [2], [0, 0, 0, 1, 1, 2], [0], [0]>} : vector<4x64x64xbf16>, vector<4x64x16xbf16>, vector<4x64x16xf32> -> vector<4x64x16xf32>
    "tpu.trace_stop"() : () -> ()
    %118 = vector.shape_cast %117 : vector<4x64x16xf32> to vector<256x16xf32>
    %119 = arith.truncf %118 : vector<256x16xf32> to vector<256x16xbf16>
    %c1_62 = arith.constant 1 : index
    %c0_63 = arith.constant 0 : index
    %c0_64 = arith.constant 0 : index
    %120 = vector.load %arg6[%c1_62, %c0_63, %c0_64] : memref<2x16x32xbf16, #tpu.memory_space<vmem>>, vector<1x16x32xbf16>
    %121 = vector.shape_cast %120 : vector<1x16x32xbf16> to vector<16x32xbf16>
    %cst_65 = arith.constant dense<0.000000e+00> : vector<256x32xf32>
    %122 = tpu.matmul %119, %121, %cst_65 {dimension_numbers = #tpu.dot_dimension_numbers<[1], [0], [0], [1], [0, 0, 1, 1], [], []>} : vector<256x16xbf16>, vector<16x32xbf16>, vector<256x32xf32> -> vector<256x32xf32>
    %123 = arith.addf %63, %122 : vector<256x32xf32>
    %c0_66 = arith.constant 0 : index
    %c0_67 = arith.constant 0 : index
    %124 = vector.load %arg7[%c0_66, %c0_67] : memref<1x32xf32, #tpu.memory_space<vmem>>, vector<1x32xf32>
    %125 = vector.broadcast %124 : vector<1x32xf32> to vector<256x32xf32>
    %126 = arith.addf %123, %125 : vector<256x32xf32>
    %127 = vector.extract_strided_slice %126 {offsets = [0, 0], sizes = [64, 32], strides = [1, 1]} : vector<256x32xf32> to vector<64x32xf32>
    %128 = vector.extract_strided_slice %126 {offsets = [64, 0], sizes = [64, 32], strides = [1, 1]} : vector<256x32xf32> to vector<64x32xf32>
    %129 = vector.extract_strided_slice %126 {offsets = [128, 0], sizes = [64, 32], strides = [1, 1]} : vector<256x32xf32> to vector<64x32xf32>
    %130 = vector.extract_strided_slice %126 {offsets = [192, 0], sizes = [64, 32], strides = [1, 1]} : vector<256x32xf32> to vector<64x32xf32>
    %131 = tpu.concatenate %127, %128, %129, %130 in 1 : vector<64x32xf32>, vector<64x32xf32>, vector<64x32xf32>, vector<64x32xf32> -> vector<64x128xf32>
    %c0_68 = arith.constant 0 : index
    %c0_69 = arith.constant 0 : index
    %c0_70 = arith.constant 0 : index
    %132 = vector.load %arg10[%c0_68, %c0_69, %c0_70] : memref<1x64x128xf32, #tpu.memory_space<vmem>>, vector<1x64x128xf32>
    %133 = vector.shape_cast %132 : vector<1x64x128xf32> to vector<64x128xf32>
    %134 = vector.shape_cast %131 : vector<64x128xf32> to vector<1x64x128xf32>
    tpu.vector_store %arg10[%c0_68, %c0_69, %c0_70], %134 {strides = array<i32>} : memref<1x64x128xf32, #tpu.memory_space<vmem>>, vector<1x64x128xf32>,
    return
  }
  func.func @transform_0(%arg0: i32) -> (i32, i32, i32, i32) {
    %c0_i32 = arith.constant 0 : i32
    %c0_i32_0 = arith.constant 0 : i32
    %c0_i32_1 = arith.constant 0 : i32
    %c0_i32_2 = arith.constant 0 : i32
    return %arg0, %c0_i32, %c0_i32_0, %c0_i32_1 : i32, i32, i32, i32
  }
  func.func @transform_1(%arg0: i32) -> (i32, i32, i32) {
    %c0_i32 = arith.constant 0 : i32
    %c0_i32_0 = arith.constant 0 : i32
    %c0_i32_1 = arith.constant 0 : i32
    %c0_i32_2 = arith.constant 0 : i32
    return %c0_i32, %c0_i32_0, %c0_i32_1 : i32, i32, i32
  }
  func.func @transform_2(%arg0: i32) -> (i32, i32, i32) {
    %c0_i32 = arith.constant 0 : i32
    %c0_i32_0 = arith.constant 0 : i32
    %c0_i32_1 = arith.constant 0 : i32
    %c0_i32_2 = arith.constant 0 : i32
    return %c0_i32, %c0_i32_0, %c0_i32_1 : i32, i32, i32
  }
  func.func @transform_3(%arg0: i32) -> (i32, i32, i32) {
    %c0_i32 = arith.constant 0 : i32
    %c0_i32_0 = arith.constant 0 : i32
    %c0_i32_1 = arith.constant 0 : i32
    %c0_i32_2 = arith.constant 0 : i32
    return %c0_i32, %c0_i32_0, %c0_i32_1 : i32, i32, i32
  }
  func.func @transform_4(%arg0: i32) -> (i32, i32, i32) {
    %c0_i32 = arith.constant 0 : i32
    %c0_i32_0 = arith.constant 0 : i32
    %c0_i32_1 = arith.constant 0 : i32
    %c0_i32_2 = arith.constant 0 : i32
    return %c0_i32, %c0_i32_0, %c0_i32_1 : i32, i32, i32
  }
  func.func @transform_5(%arg0: i32) -> (i32, i32, i32) {
    %c0_i32 = arith.constant 0 : i32
    %c0_i32_0 = arith.constant 0 : i32
    %c0_i32_1 = arith.constant 0 : i32
    %c0_i32_2 = arith.constant 0 : i32
    return %c0_i32, %c0_i32_0, %c0_i32_1 : i32, i32, i32
  }
  func.func @transform_6(%arg0: i32) -> (i32, i32) {
    %c0_i32 = arith.constant 0 : i32
    %c0_i32_0 = arith.constant 0 : i32
    %c0_i32_1 = arith.constant 0 : i32
    return %c0_i32, %c0_i32_0 : i32, i32
  }
  func.func @transform_7(%arg0: i32) -> (i32, i32, i32, i32) {
    %c0_i32 = arith.constant 0 : i32
    %c0_i32_0 = arith.constant 0 : i32
    %c0_i32_1 = arith.constant 0 : i32
    %c0_i32_2 = arith.constant 0 : i32
    %c0_i32_3 = arith.constant 0 : i32
    return %c0_i32, %c0_i32_0, %c0_i32_1, %c0_i32_2 : i32, i32, i32, i32
  }
  func.func @transform_8(%arg0: i32) -> i32 {
    %c0_i32 = arith.constant 0 : i32
    %c0_i32_0 = arith.constant 0 : i32
    return %c0_i32 : i32
  }
  func.func @transform_9(%arg0: i32) -> (i32, i32, i32) {
    %c0_i32 = arith.constant 0 : i32
    %c0_i32_0 = arith.constant 0 : i32
    %c0_i32_1 = arith.constant 0 : i32
    return %arg0, %c0_i32, %c0_i32_0 : i32, i32, i32
  }
}

</mosaic_0001>

<bundles_post_ra>
// kernel: shifted_window_attention_v2.1
= control target key start
LH: loop header
LB: loop body
LE: loop exit
PB: predicated region body
PF: predicated region fallthrough
CT: control target
= control target key end

     0   :  { %14 = vsyncpa [#allocation3], 0  ;;  %s7305_s30 = smov 0   ;;  %s10022_s0 = inlined_call_operand.vmem [shape: bf16[2,4,64,32], index: 0, kind: input, shape index: {}]   ;;  %s10023_s1 = inlined_call_operand.vmem [shape: bf16[2,32,16], index: 1, kind: input, shape index: {}]   ;;  %s10024_s2 = inlined_call_operand.vmem [shape: bf16[2,32,16], index: 2, kind: input, shape index: {}]   ;;  %s10025_s3 = inlined_call_operand.vmem [shape: bf16[2,32,16], index: 3, kind: input, shape index: {}]   ;;  %s10026_s4 = inlined_call_operand.vmem [shape: f32[2,1,16], index: 4, kind: input, shape index: {}]   ;;  %s10027_s5 = inlined_call_operand.vmem [shape: bf16[2,16,32], index: 5, kind: input, shape index: {}]   ;;  %s10028_s6 = inlined_call_operand.vmem [shape: f32[1,32], index: 6, kind: input, shape index: {}]   ;;  %s10029_s7 = inlined_call_operand.vmem [shape: f32[2,4,64,64], index: 7, kind: input, shape index: {}]   ;;  %s10030_s8 = inlined_call_operand.vmem [shape: f32[2], index: 8, kind: input, shape index: {}]   ;;  %s10031_s9 = inlined_call_operand.vmem [shape: f32[2,64,128], index: 9, kind: output, shape index: {}]  }
   0x1 LB: > { %s5482_s10 = sadd.s32 4294967295, %s7249_s30   ;;  %p5484_p0 = scmp.ge.s32.totalorder %s7249_s30, 1  ;;  %s7249_s30 = sphi %s7305_s30, %s20_s30  }
   0x2   : > { %p245_p1 = scmp.lt.s32.totalorder %s7249_s30, 3  ;;  %s279_s13 = sshll.u32 %s10030_s8, 4  ;;  %s280_s13 = int_to_ptr.vmem [resolvable:$true] %s279_s13 }
   0x3   : > { %p6652_p3 = scmp.eq.s32.totalorder %s5482_s10, 0  ;;  %s7224_s15 = scalar_lea.vmem %s280_s13, 16 }
   0x4   : > { %p7316_p2 = pnand %p5484_p0, %p245_p1  ;;  %p7225_p6 = scmp.ne.s32.totalorder %s280_s13, %s7224_s15 }
   0x5   : > { %p7232_p10 = scmp.lt.s32.totalorder %s280_s13, %s280_s13  ;;  %p7233_p11 = scmp.lt.s32.totalorder %s7224_s15, %s7224_s15 }
   0x6   : > { %p6648_p4 = pneg %p7316_p2 }
   0x7   : > { %p7234_p12 = por %p7233_p11, %p7232_p10 }
   0x8   : > { %p6649_p5 = pnand %p6652_p3, %p6648_p4 }
   0xa   : > { %p7226_p7 = pneg %p6649_p5 }
   0xc   : > { %p7227_p8 = pnand %p7226_p7, %p7225_p6 }
   0xe   : > { %p7228_p9 = pneg %p7227_p8 }
  0x10   : > { %p7235_p13 = pnand %p7234_p12, %p7228_p9 }
  0x12   : > { %7238 = shalt.err (!%p7235_p13)
}
  0x13   : > { %s7251_s16 = smov [#allocation2]   ;;  %300 = sbr.rel (%p7316_p2) target bundleno = 2823 (0xb07), region = 56 }
  0x14   : > { %6651 = dma.vmem_to_smem (!%p6649_p5), %s280_s13, 16, %s7251_s16, [#allocation3]  }
  0x1a   : > { %7244 = dma.done.wait (%p6652_p3), [#allocation3], 16  }
  0x1b   : > { %7246 = vsyncadd (%p6652_p3), [#allocation3], 4294967280 }
  0x1c   : > { %306 = sfence }
  0x1d   : > { %v6666_v0 = vld [vmem:[%s10023_s1] sm:$0xff]   ;;  %p337_p0 = scmp.lt.s32.totalorder %s5482_s10, 1  ;;  %v6667_v1 = vld [vmem:[%s10023_s1 + $0x8] sm:$0xff]   ;;  %vm483_vm0 = vcmask 261120   ;;  %vm1079_vm1 = vcmask 130048   ;;  %s1240_s16 = sld [smem:[#allocation2]] }
  0x1e   : > { %6040 = vmatprep.subr.bf16.mxu1 %v6666_v0  ;;  %v6677_v2 = vld [vmem:[%s10024_s2] sm:$0xff]   ;;  %v6685_v4 = vld [vmem:[%s10024_s2 + $0x8] sm:$0xff]   ;;  %vm1966_vm2 = vcmask 523264   ;;  %s5664_s22 = sld [smem:[#allocation2 + $0x1]]  ;;  %s7252_s17 = smov 32   ;;  %vm5398_vm3 = vcmask 785408  }
  0x1f   : > { %s10320_s10 = smov (!%p337_p0, %s5482_s10), 1  ;;  %6041 = vmatpush3.bf16.msra.mxu1 %v6666_v0  ;;  %v7491_v36 = vld [vmem:[%s10026_s4] ss:$0 sm:$0xff]  ;;  %s7253_s18 = smov 64  }
  0x20   : > { %6042 = vmatprep.subr.bf16.mxu1 %v6667_v1  ;;  %s5768_s21 = sshll.u32 %s10320_s10, 7  ;;  %s7254_s19 = smov 96  }
  0x21   : > { %s7342_s26 = scalar_lea.vmem %s10022_s0, %s5768_s21  ;;  %s5769_s20 = sshll.u32 %s10320_s10, 6 }
  0x22   : > { %v6668_v3 = vld [vmem:[%s7342_s26] sm:$0xff]   ;;  %v7349_v5 = vld [vmem:[%s7342_s26 + $0x8] sm:$0xff]   ;;  %v7353_v6 = vld [vmem:[%s7342_s26 + $0x10] sm:$0xff]   ;;  %s9979_s23 = scalar_lea.vmem %s10031_s9, %s5769_s20 }
  0x23   : > { %6043 = vmatpush3.bf16.msra.mxu1 %v6667_v1  ;;  %6044 = vmatprep.mubr.msk.bf16.mxu1 %vm483_vm0, %v6668_v3  ;;  %v7361_v7 = vld [vmem:[%s7342_s26 + $0x18] sm:$0xff]   ;;  %v7364_v8 = vld [vmem:[%s7342_s26 + $0x20] sm:$0xff]   ;;  %v7371_v9 = vld [vmem:[%s7342_s26 + $0x28] sm:$0xff]  }
  0x24   : > { %6076 = vmatprep.subr.bf16.mxu1 %v6677_v2  ;;  %6116 = vmatprep.mubr.msk.bf16.mxu0 %vm483_vm0, %v6668_v3  ;;  %v7374_v10 = vld [vmem:[%s7342_s26 + $0x30] sm:$0xff]   ;;  %v7381_v11 = vld [vmem:[%s7342_s26 + $0x38] sm:$0xff]   ;;  %v7384_v12 = vld [vmem:[%s7342_s26 + $0x40] sm:$0xff]  }
  0x25   : > { %v7391_v13 = vld [vmem:[%s7342_s26 + $0x48] sm:$0xff]   ;;  %v7394_v14 = vld [vmem:[%s7342_s26 + $0x50] sm:$0xff]   ;;  %v7401_v15 = vld [vmem:[%s7342_s26 + $0x58] sm:$0xff]  }
  0x26   : > { %6045 = vmatmul.mubr.msk.bf16.vlgmr.msra.gmra.mrb[0].mxu1 %vm483_vm0, %v7349_v5  ;;  %v7404_v16 = vld [vmem:[%s7342_s26 + $0x60] sm:$0xff]   ;;  %v7411_v17 = vld [vmem:[%s7342_s26 + $0x68] sm:$0xff]   ;;  %v7414_v18 = vld [vmem:[%s7342_s26 + $0x70] sm:$0xff]  }
  0x27   : > { %6048 = vmatprep.mubr.msk.bf16.mxu1 %vm483_vm0, %v7353_v6  ;;  %6077 = vmatpush3.bf16.msra.mxu1 %v6677_v2  ;;  %v7421_v19 = vld [vmem:[%s7342_s26 + $0x78] sm:$0xff]  }
  0x28   : > { %6078 = vmatprep.subr.bf16.mxu1 %v6685_v4 }
  0x2b   : > { %6079 = vmatpush3.bf16.msra.mxu1 %v6685_v4 }
  0x2e   : > { %6049 = vmatmul.mubr.msk.bf16.gmra.mrb[4].mxu1 %vm483_vm0, %v7361_v7 }
  0x2f   : > { %6052 = vmatprep.mubr.msk.bf16.mxu1 %vm483_vm0, %v7364_v8 }
  0x36   : > { %6053 = vmatmul.mubr.msk.bf16.gmra.mrb[8].mxu1 %vm483_vm0, %v7371_v9 }
  0x37   : > { %6056 = vmatprep.mubr.msk.bf16.mxu1 %vm483_vm0, %v7374_v10 }
  0x3e   : > { %6057 = vmatmul.mubr.msk.bf16.gmra.mrb[12].mxu1 %vm483_vm0, %v7381_v11 }
  0x3f   : > { %6060 = vmatprep.mubr.msk.bf16.mxu1 %vm483_vm0, %v7384_v12 }
  0x46   : > { %6061 = vmatmul.mubr.msk.bf16.gmra.mrb[16].mxu1 %vm483_vm0, %v7391_v13 }
  0x47   : > { %6064 = vmatprep.mubr.msk.bf16.mxu1 %vm483_vm0, %v7394_v14 }
  0x4e   : > { %6065 = vmatmul.mubr.msk.bf16.gmra.mrb[20].mxu1 %vm483_vm0, %v7401_v15 }
  0x4f   : > { %6068 = vmatprep.mubr.msk.bf16.mxu1 %vm483_vm0, %v7404_v16 }
  0x56   : > { %6069 = vmatmul.mubr.msk.bf16.gmra.mrb[24].mxu1 %vm483_vm0, %v7411_v17 }
  0x57   : > { %6072 = vmatprep.mubr.msk.bf16.mxu1 %vm483_vm0, %v7414_v18 }
  0x5e   : > { %6073 = vmatmul.mubr.msk.bf16.gmra.mrb[28].mxu1 %vm483_vm0, %v7421_v19 }
  0x5f   : > { %6080 = vmatprep.mubr.msk.bf16.mxu1 %vm483_vm0, %v6668_v3 }
  0x66   : > { %6081 = vmatmul.mubr.msk.bf16.vlgmr.msra.gmra.mrb[32].mxu1 %vm483_vm0, %v7349_v5 }
  0x67   : > { %6084 = vmatprep.mubr.msk.bf16.mxu1 %vm483_vm0, %v7353_v6 }
  0x6e   : > { %6085 = vmatmul.mubr.msk.bf16.gmra.mrb[36].mxu1 %vm483_vm0, %v7361_v7 }
  0x6f   : > { %6088 = vmatprep.mubr.msk.bf16.mxu1 %vm483_vm0, %v7364_v8 }
  0x76   : > { %6089 = vmatmul.mubr.msk.bf16.gmra.mrb[40].mxu1 %vm483_vm0, %v7371_v9 }
  0x77   : > { %6092 = vmatprep.mubr.msk.bf16.mxu1 %vm483_vm0, %v7374_v10 }
  0x7e   : > { %6093 = vmatmul.mubr.msk.bf16.gmra.mrb[44].mxu1 %vm483_vm0, %v7381_v11 }
  0x7f   : > { %6096 = vmatprep.mubr.msk.bf16.mxu1 %vm483_vm0, %v7384_v12 }
  0x86   : > { %6097 = vmatmul.mubr.msk.bf16.gmra.mrb[48].mxu1 %vm483_vm0, %v7391_v13 }
  0x87   : > { %6100 = vmatprep.mubr.msk.bf16.mxu1 %vm483_vm0, %v7394_v14 }
  0x8e   : > { %6101 = vmatmul.mubr.msk.bf16.gmra.mrb[52].mxu1 %vm483_vm0, %v7401_v15 }
  0x8f   : > { %6104 = vmatprep.mubr.msk.bf16.mxu1 %vm483_vm0, %v7404_v16 }
  0x96   : > { %6105 = vmatmul.mubr.msk.bf16.gmra.mrb[56].mxu1 %vm483_vm0, %v7411_v17 }
  0x97   : > { %6108 = vmatprep.mubr.msk.bf16.mxu1 %vm483_vm0, %v7414_v18 }
  0x9e   : > { %6109 = vmatmul.mubr.msk.bf16.gmra.mrb[60].mxu1 %vm483_vm0, %v7421_v19 }
  0xf9   : > { %v7456_v20 = vpop.f32.mrb[0].mxu1 }
  0xfa   : > { %v7458_v21 = vpop.f32.mrb[1].mxu1 }
  0xfb   : > { %v7460_v22 = vpop.f32.mrb[2].mxu1 }
  0xfc   : > { %v7462_v23 = vpop.f32.mrb[3].mxu1 }
 0x101   : > { %v7464_v24 = vpop.f32.mrb[4].mxu1 }
 0x102   : > { %v7466_v25 = vpop.f32.mrb[5].mxu1 }
 0x103   : > { %v7468_v26 = vpop.f32.mrb[6].mxu1 }
 0x104   : > { %v7470_v27 = vpop.f32.mrb[7].mxu1 }
 0x109   : > { %v7472_v28 = vpop.f32.mrb[8].mxu1 }
 0x10a   : > { %v7474_v29 = vpop.f32.mrb[9].mxu1 }
 0x10b   : > { %v7476_v30 = vpop.f32.mrb[10].mxu1 }
 0x10c   : > { %v7478_v31 = vpop.f32.mrb[11].mxu1 }
 0x111   : > { %v7480_v32 = vpop.f32.mrb[12].mxu1 }
 0x112   : > { %v7482_v33 = vpop.f32.mrb[13].mxu1 }
 0x113   : > { %v7484_v34 = vpop.f32.mrb[14].mxu1 }
 0x114   : > { %v7486_v35 = vpop.f32.mrb[15].mxu1 }
 0x119   : > { %v6062_v37 = vpop.f32.mrb[16].mxu1 }
 0x11a   : > { %v7494_v38 = vadd.f32 %v6062_v37, %v7491_v36  ;;  %v630_v39 = vpop.f32.mrb[17].mxu1 }
 0x11b   : > { %v7497_v40 = vadd.f32 %v7491_v36, %v630_v39  ;;  %v6063_v41 = vpop.f32.mrb[18].mxu1 }
 0x11c   : > { %v7500_v42 = vadd.f32 %v6063_v41, %v7491_v36  ;;  %v633_v43 = vpop.f32.mrb[19].mxu1 }
 0x11d   : > { %v7503_v44 = vadd.f32 %v7491_v36, %v633_v43 }
 0x121   : > { %v6066_v45 = vpop.f32.mrb[20].mxu1 }
 0x122   : > { %v7506_v46 = vadd.f32 %v6066_v45, %v7491_v36  ;;  %v646_v47 = vpop.f32.mrb[21].mxu1 }
 0x123   : > { %v7509_v48 = vadd.f32 %v7491_v36, %v646_v47  ;;  %v6067_v49 = vpop.f32.mrb[22].mxu1 }
 0x124   : > { %v7512_v50 = vadd.f32 %v6067_v49, %v7491_v36  ;;  %v649_v51 = vpop.f32.mrb[23].mxu1 }
 0x125   : > { %v7515_v52 = vadd.f32 %v7491_v36, %v649_v51 }
 0x129   : > { %v6070_v53 = vpop.f32.mrb[24].mxu1 }
 0x12a   : > { %v7518_v54 = vadd.f32 %v6070_v53, %v7491_v36  ;;  %v662_v55 = vpop.f32.mrb[25].mxu1 }
 0x12b   : > { %v7521_v56 = vadd.f32 %v7491_v36, %v662_v55  ;;  %v6071_v57 = vpop.f32.mrb[26].mxu1 }
 0x12c   : > { %v7524_v58 = vadd.f32 %v6071_v57, %v7491_v36  ;;  %v665_v59 = vpop.f32.mrb[27].mxu1 }
 0x12d   : > { %v7527_v60 = vadd.f32 %v7491_v36, %v665_v59 }
 0x131   : > { %v6074_v61 = vpop.f32.mrb[28].mxu1 }
 0x132   : > { %v7530_v62 = vadd.f32 %v6074_v61, %v7491_v36  ;;  %v678_v63 = vpop.f32.mrb[29].mxu1 }
 0x133   : > { %v7533_v0 = vadd.f32 %v7491_v36, %v678_v63  ;;  %v6075_v1 = vpop.f32.mrb[30].mxu1 }
 0x134   : > { %v7536_v2 = vadd.f32 %v6075_v1, %v7491_v36  ;;  %v681_v3 = vpop.f32.mrb[31].mxu1 }
 0x135   : > { %v7539_v4 = vadd.f32 %v7491_v36, %v681_v3 }
 0x139   : > { %v7541_v37 = vpop.f32.mrb[32].mxu1 }
 0x13a   : > { %v7543_v39 = vpop.f32.mrb[33].mxu1  ;;  %v1308_v41 = vmul.f32 %v7541_v37, %v7541_v37 }
 0x13b   : > { %v7547_v43 = vpop.f32.mrb[34].mxu1  ;;  %v1306_v45 = vmul.f32 %v7543_v39, %v7543_v39 }
 0x13c   : > { %v1309_v47 = vmul.f32 %v7547_v43, %v7547_v43  ;;  %v7553_v49 = vpop.f32.mrb[35].mxu1  ;;  %v1344_v51 = vsel %vm1079_vm1, %v1308_v41, 0.0 }
 0x13d   : > { %v1307_v53 = vmul.f32 %v7553_v49, %v7553_v49  ;;  %1345 = vadd.xlane.f32.xlu1 %v1344_v51  ;;  %v1338_v55 = vsel %vm1079_vm1, %v1306_v45, 0.0 }
 0x13e   : > { %1339 = vadd.xlane.f32.xlu0 %v1338_v55  ;;  %v1347_v57 = vsel %vm1079_vm1, %v1309_v47, 0.0 }
 0x13f   : > { %v1341_v61 = vsel %vm1079_vm1, %v1307_v53, 0.0  ;;  %v7578_v53 = vadd.f32 %v7491_v36, %v7458_v21 }
 0x141   : > { %1348 = vadd.xlane.f32.xlu1 %v1347_v57  ;;  %v7560_v59 = vpop.f32.mrb[36].mxu1  ;;  %10127 = vst [vmem:[#allocation9_spill] sm:$0xff] %v7578_v53  ;;  %v7584_v57 = vadd.f32 %v7491_v36, %v7462_v23  ;;  %v1047_v21 = vmul.f32 %v7578_v53, %v7578_v53  ;;  %v7599_v23 = vadd.f32 %v7460_v22, %v7491_v36 }
 0x142   : > { %10123 = vst [vmem:[#allocation5_spill] sm:$0xff] %v7560_v59  ;;  %v1312_v63 = vmul.f32 %v7560_v59, %v7560_v59  ;;  %1342 = vadd.xlane.f32.xlu0 %v1341_v61  ;;  %v7565_v1 = vpop.f32.mrb[37].mxu1 }
 0x143   : > { %10124 = vst [vmem:[#allocation6_spill] sm:$0xff] %v7565_v1  ;;  %v1310_v3 = vmul.f32 %v7565_v1, %v7565_v1  ;;  %v7569_v41 = vpop.f32.mrb[38].mxu1  ;;  %10128 = vst [vmem:[#allocation10_spill] sm:$0xff] %v7584_v57 }
 0x144   : > { %10125 = vst [vmem:[#allocation7_spill] sm:$0xff] %v7569_v41  ;;  %v1313_v45 = vmul.f32 %v7569_v41, %v7569_v41  ;;  %v1356_v47 = vsel %vm1079_vm1, %v1312_v63, 0.0  ;;  %v7574_v51 = vpop.f32.mrb[39].mxu1  ;;  %v7591_v41 = vadd.f32 %v7456_v20, %v7491_v36  ;;  %10131 = vst [vmem:[#allocation13_spill] sm:$0xff] %v7599_v23 }
 0x145   : > { %10126 = vst [vmem:[#allocation8_spill] sm:$0xff] %v7574_v51  ;;  %v1311_v55 = vmul.f32 %v7574_v51, %v7574_v51  ;;  %v1350_v1 = vsel %vm1079_vm1, %v1310_v3, 0.0 }
 0x146   : > { %1357 = vadd.xlane.f32.xlu0 %v1356_v47  ;;  %v1359_v61 = vsel %vm1079_vm1, %v1313_v45, 0.0  ;;  %10129 = vst [vmem:[#allocation11_spill] sm:$0xff] %v7591_v41  ;;  %v1048_v45 = vmul.f32 %v7584_v57, %v7584_v57 }
 0x147   : > { %1360 = vadd.xlane.f32.xlu1 %v1359_v61  ;;  %v1353_v63 = vsel %vm1079_vm1, %v1311_v55, 0.0  ;;  %v1080_v55 = vsel %vm1079_vm1, %v1047_v21, 0.0  ;;  %v1049_v61 = vmul.f32 %v7591_v41, %v7591_v41 }
 0x148   : > { %v1083_v22 = vsel %vm1079_vm1, %v1048_v45, 0.0 }
 0x149   : > { %v7595_v51 = vpop.f32.mrb[40].mxu1  ;;  %v1086_v53 = vsel %vm1079_vm1, %v1049_v61, 0.0 }
 0x14a   : > { %10130 = vst [vmem:[#allocation12_spill] sm:$0xff] %v7595_v51  ;;  %1351 = vadd.xlane.f32.xlu0 %v1350_v1  ;;  %v7603_v3 = vpop.f32.mrb[41].mxu1  ;;  %v1050_v1 = vmul.f32 %v7599_v23, %v7599_v23  ;;  %v1316_v57 = vmul.f32 %v7595_v51, %v7595_v51 }
 0x14b   : > { %10132 = vst [vmem:[#allocation14_spill] sm:$0xff] %v7603_v3  ;;  %1354 = vadd.xlane.f32.xlu1 %v1353_v63  ;;  %v7605_v47 = vpop.f32.mrb[42].mxu1  ;;  %v1314_v45 = vmul.f32 %v7603_v3, %v7603_v3 }
 0x14c   : > { %10133 = vst [vmem:[#allocation15_spill] sm:$0xff] %v7605_v47  ;;  %v7607_v20 = vpop.f32.mrb[43].mxu1  ;;  %v1317_v63 = vmul.f32 %v7605_v47, %v7605_v47  ;;  %v1089_v21 = vsel %vm1079_vm1, %v1050_v1, 0.0  ;;  %v7641_v1 = vadd.f32 %v7491_v36, %v7470_v27 }
 0x14d   : > { %10134 = vst [vmem:[#allocation16_spill] sm:$0xff] %v7607_v20  ;;  %v1315_v41 = vmul.f32 %v7607_v20, %v7607_v20  ;;  %v7647_v20 = vadd.f32 %v7464_v24, %v7491_v36 }
 0x14e   : > { %1081 = vadd.xlane.f32.xlu0 %v1080_v55  ;;  %v1371_v61 = vsel %vm1079_vm1, %v1317_v63, 0.0  ;;  %10140 = vst [vmem:[#allocation22_spill] sm:$0xff] %v7641_v1  ;;  %v1052_v27 = vmul.f32 %v7641_v1, %v7641_v1 }
 0x14f   : > { %1084 = vadd.xlane.f32.xlu1 %v1083_v22  ;;  %v1368_v22 = vsel %vm1079_vm1, %v1316_v57, 0.0  ;;  %v1362_v57 = vsel %vm1079_vm1, %v1314_v45, 0.0  ;;  %10141 = vst [vmem:[#allocation23_spill] sm:$0xff] %v7647_v20 }
 0x151   : > { %v7620_v59 = vpop.f32.mrb[44].mxu1 }
 0x152   : > { %10135 = vst [vmem:[#allocation17_spill] sm:$0xff] %v7620_v59  ;;  %1087 = vadd.xlane.f32.xlu0 %v1086_v53  ;;  %v7623_v55 = vpop.f32.mrb[45].mxu1  ;;  %v7637_v53 = vadd.f32 %v7491_v36, %v7466_v25  ;;  %v7655_v25 = vadd.f32 %v7468_v26, %v7491_v36  ;;  %v1095_v26 = vsel %vm1079_vm1, %v1052_v27, 0.0  ;;  %v1320_v1 = vmul.f32 %v7620_v59, %v7620_v59 }
 0x153   : > { %10136 = vst [vmem:[#allocation18_spill] sm:$0xff] %v7623_v55  ;;  %1090 = vadd.xlane.f32.xlu1 %v1089_v21  ;;  %v7628_v23 = vpop.f32.mrb[46].mxu1  ;;  %v1365_v21 = vsel %vm1079_vm1, %v1315_v41, 0.0 }
 0x154   : > { %10137 = vst [vmem:[#allocation19_spill] sm:$0xff] %v7628_v23  ;;  %v7633_v47 = vpop.f32.mrb[47].mxu1  ;;  %10139 = vst [vmem:[#allocation21_spill] sm:$0xff] %v7637_v53  ;;  %v1051_v63 = vmul.f32 %v7637_v53, %v7637_v53  ;;  %v1380_v59 = vsel %vm1079_vm1, %v1320_v1, 0.0 }
 0x155   : > { %10138 = vst [vmem:[#allocation20_spill] sm:$0xff] %v7633_v47  ;;  %10142 = vst [vmem:[#allocation24_spill] sm:$0xff] %v7655_v25 }
 0x156   : > { %1369 = vadd.xlane.f32.xlu0 %v1368_v22  ;;  %v1092_v22 = vsel %vm1079_vm1, %v1051_v63, 0.0  ;;  %v1321_v63 = vmul.f32 %v7628_v23, %v7628_v23 }
 0x157   : > { %1372 = vadd.xlane.f32.xlu1 %v1371_v61  ;;  %v1053_v61 = vmul.f32 %v7647_v20, %v7647_v20 }
 0x159   : > { %v7651_v3 = vpop.f32.mrb[48].mxu1 }
 0x15a   : > { %1363 = vadd.xlane.f32.xlu0 %v1362_v57  ;;  %v7659_v45 = vpop.f32.mrb[49].mxu1  ;;  %v1054_v57 = vmul.f32 %v7655_v25, %v7655_v25 }
 0x15b   : > { %1366 = vadd.xlane.f32.xlu1 %v1365_v21  ;;  %v7661_v41 = vpop.f32.mrb[50].mxu1  ;;  %v1098_v21 = vsel %vm1079_vm1, %v1053_v61, 0.0  ;;  %v1318_v61 = vmul.f32 %v7623_v55, %v7623_v55 }
 0x15c   : > { %v7663_v24 = vpop.f32.mrb[51].mxu1  ;;  %v1101_v20 = vsel %vm1079_vm1, %v1054_v57, 0.0  ;;  %v1383_v57 = vsel %vm1079_vm1, %v1321_v63, 0.0 }
 0x15d   : > { %v1374_v23 = vsel %vm1079_vm1, %v1318_v61, 0.0 }
 0x15e   : > { %1093 = vadd.xlane.f32.xlu0 %v1092_v22 }
 0x15f   : > { %1096 = vadd.xlane.f32.xlu1 %v1095_v26  ;;  %v7687_v26 = vadd.f32 %v7491_v36, %v7474_v29  ;;  %v7701_v29 = vadd.f32 %v7472_v28, %v7491_v36 }
 0x161   : > { %v7674_v53 = vpop.f32.mrb[52].mxu1  ;;  %10143 = vst [vmem:[#allocation25_spill] sm:$0xff] %v7687_v26  ;;  %10145 = vst [vmem:[#allocation27_spill] sm:$0xff] %v7701_v29  ;;  %v1055_v1 = vmul.f32 %v7687_v26, %v7687_v26 }
 0x162   : > { %1099 = vadd.xlane.f32.xlu0 %v1098_v21  ;;  %v7679_v22 = vpop.f32.mrb[53].mxu1  ;;  %v7694_v21 = vadd.f32 %v7491_v36, %v7478_v31  ;;  %v7710_v31 = vadd.f32 %v7476_v30, %v7491_v36 }
 0x163   : > { %1102 = vadd.xlane.f32.xlu1 %v1101_v20  ;;  %v7681_v27 = vpop.f32.mrb[54].mxu1  ;;  %v1319_v20 = vmul.f32 %v7633_v47, %v7633_v47  ;;  %v1104_v26 = vsel %vm1079_vm1, %v1055_v1, 0.0  ;;  %v1057_v47 = vmul.f32 %v7701_v29, %v7701_v29 }
 0x164   : > { %v7683_v25 = vpop.f32.mrb[55].mxu1  ;;  %10144 = vst [vmem:[#allocation26_spill] sm:$0xff] %v7694_v21  ;;  %10146 = vst [vmem:[#allocation28_spill] sm:$0xff] %v7710_v31  ;;  %v1056_v63 = vmul.f32 %v7694_v21, %v7694_v21 }
 0x165   : > { %v1110_v21 = vsel %vm1079_vm1, %v1057_v47, 0.0 }
 0x166   : > { %1381 = vadd.xlane.f32.xlu0 %v1380_v59  ;;  %v1377_v59 = vsel %vm1079_vm1, %v1319_v20, 0.0  ;;  %v1107_v30 = vsel %vm1079_vm1, %v1056_v63, 0.0 }
 0x167   : > { %1384 = vadd.xlane.f32.xlu1 %v1383_v57 }
 0x169   : > { %v7706_v55 = vpop.f32.mrb[56].mxu1 }
 0x16a   : > { %1375 = vadd.xlane.f32.xlu0 %v1374_v23  ;;  %v7715_v57 = vpop.f32.mrb[57].mxu1  ;;  %v1058_v23 = vmul.f32 %v7710_v31, %v7710_v31  ;;  %v1332_v20 = vmul.f32 %v7706_v55, %v7706_v55 }
 0x16b   : > { %1378 = vadd.xlane.f32.xlu1 %v1377_v59  ;;  %v7717_v28 = vpop.f32.mrb[58].mxu1  ;;  %v1330_v63 = vmul.f32 %v7715_v57, %v7715_v57 }
 0x16c   : > { %10147 = vst [vmem:[#allocation29_spill] sm:$0xff] %v7717_v28  ;;  %v7719_v61 = vpop.f32.mrb[59].mxu1  ;;  %v1333_v59 = vmul.f32 %v7717_v28, %v7717_v28  ;;  %v1113_v1 = vsel %vm1079_vm1, %v1058_v23, 0.0  ;;  %v7753_v23 = vadd.f32 %v7491_v36, %v7486_v35 }
 0x16d   : > { %10148 = vst [vmem:[#allocation30_spill] sm:$0xff] %v7719_v61  ;;  %v1331_v29 = vmul.f32 %v7719_v61, %v7719_v61  ;;  %v7759_v61 = vadd.f32 %v7480_v32, %v7491_v36 }
 0x16e   : > { %1105 = vadd.xlane.f32.xlu0 %v1104_v26  ;;  %v1419_v47 = vsel %vm1079_vm1, %v1333_v59, 0.0  ;;  %v1060_v35 = vmul.f32 %v7753_v23, %v7753_v23 }
 0x16f   : > { %1108 = vadd.xlane.f32.xlu1 %v1107_v30  ;;  %v1416_v30 = vsel %vm1079_vm1, %v1332_v20, 0.0  ;;  %v1410_v20 = vsel %vm1079_vm1, %v1330_v63, 0.0 }
 0x170   : > { %v1119_v32 = vsel %vm1079_vm1, %v1060_v35, 0.0 }
 0x171   : > { %v7732_v51 = vpop.f32.mrb[60].mxu1 }
 0x172   : > { %1111 = vadd.xlane.f32.xlu0 %v1110_v21  ;;  %v7735_v26 = vpop.f32.mrb[61].mxu1  ;;  %v7749_v21 = vadd.f32 %v7491_v36, %v7482_v33  ;;  %v7765_v33 = vadd.f32 %v7484_v34, %v7491_v36  ;;  %v1336_v34 = vmul.f32 %v7732_v51, %v7732_v51 }
 0x173   : > { %1114 = vadd.xlane.f32.xlu1 %v1113_v1  ;;  %v7740_v31 = vpop.f32.mrb[62].mxu1  ;;  %v1413_v1 = vsel %vm1079_vm1, %v1331_v29, 0.0  ;;  %v1061_v29 = vmul.f32 %v7759_v61, %v7759_v61 }
 0x174   : > { %v7745_v28 = vpop.f32.mrb[63].mxu1  ;;  %v1059_v59 = vmul.f32 %v7749_v21, %v7749_v21  ;;  %v1337_v36 = vmul.f32 %v7740_v31, %v7740_v31 }
 0x175   : > { %v1335_v35 = vmul.f32 %v7745_v28, %v7745_v28 }
 0x176   : > { %1417 = vadd.xlane.f32.xlu0 %v1416_v30  ;;  %v1116_v63 = vsel %vm1079_vm1, %v1059_v59, 0.0  ;;  %v1062_v30 = vmul.f32 %v7765_v33, %v7765_v33  ;;  %v1428_v59 = vsel %vm1079_vm1, %v1336_v34, 0.0  ;;  %v6686_v34 = vld [vmem:[%s10025_s3] sm:$0xff]  }
 0x177   : > { %1420 = vadd.xlane.f32.xlu1 %v1419_v47  ;;  %v1122_v47 = vsel %vm1079_vm1, %v1061_v29, 0.0  ;;  %v1425_v29 = vsel %vm1079_vm1, %v1335_v35, 0.0  ;;  %6112 = vmatprep.subr.bf16.mxu0 %v6686_v34  ;;  %v6687_v35 = vld [vmem:[%s10025_s3 + $0x8] sm:$0xff]  }
 0x178   : > { %6113 = vmatpush3.bf16.msra.mxu0 %v6686_v34 }
 0x179   : > { %6114 = vmatprep.subr.bf16.mxu0 %v6687_v35 }
 0x17a   : > { %1411 = vadd.xlane.f32.xlu0 %v1410_v20  ;;  %v1125_v20 = vsel %vm1079_vm1, %v1062_v30, 0.0  ;;  %v1322_v30 = vmul.f32 %v7659_v45, %v7659_v45 }
 0x17b   : > { %1414 = vadd.xlane.f32.xlu1 %v1413_v1  ;;  %v1334_v1 = vmul.f32 %v7735_v26, %v7735_v26 }
 0x17c   : > { %6115 = vmatpush3.bf16.msra.mxu0 %v6687_v35 }
 0x17e   : > { %1117 = vadd.xlane.f32.xlu0 %v1116_v63  ;;  %v1431_v63 = vsel %vm1079_vm1, %v1337_v36, 0.0  ;;  %v1386_v36 = vsel %vm1079_vm1, %v1322_v30, 0.0  ;;  %v1074_v30 = vmul.f32 %v7524_v58, %v7524_v58 }
 0x17f   : > { %1120 = vadd.xlane.f32.xlu1 %v1119_v32  ;;  %v1422_v32 = vsel %vm1079_vm1, %v1334_v1, 0.0  ;;  %6117 = vmatmul.mubr.msk.bf16.vlgmr.msra.gmra.mrb[0].mxu0 %vm483_vm0, %v7349_v5  ;;  %v1077_v5 = vmul.f32 %v7530_v62, %v7530_v62 }
 0x180   : > { %6120 = vmatprep.mubr.msk.bf16.mxu0 %vm483_vm0, %v7353_v6 }
 0x182   : > { %1123 = vadd.xlane.f32.xlu0 %v1122_v47  ;;  %v1323_v47 = vmul.f32 %v7663_v24, %v7663_v24 }
 0x183   : > { %1126 = vadd.xlane.f32.xlu1 %v1125_v20  ;;  %v1071_v20 = vmul.f32 %v7521_v56, %v7521_v56 }
 0x184   : > { %v1389_v1 = vsel %vm1079_vm1, %v1323_v47, 0.0  ;;  %v1324_v47 = vmul.f32 %v7651_v3, %v7651_v3 }
 0x186   : > { %1429 = vadd.xlane.f32.xlu0 %v1428_v59  ;;  %v1072_v59 = vmul.f32 %v7527_v60, %v7527_v60 }
 0x187   : > { %1432 = vadd.xlane.f32.xlu1 %v1431_v63  ;;  %v1152_v63 = vsel %vm1079_vm1, %v1071_v20, 0.0  ;;  %v1161_v20 = vsel %vm1079_vm1, %v1074_v30, 0.0  ;;  %6121 = vmatmul.mubr.msk.bf16.gmra.mrb[4].mxu0 %vm483_vm0, %v7361_v7  ;;  %v1326_v30 = vmul.f32 %v7679_v22, %v7679_v22 }
 0x188   : > { %6124 = vmatprep.mubr.msk.bf16.mxu0 %vm483_vm0, %v7364_v8  ;;  %v1329_v8 = vmul.f32 %v7681_v27, %v7681_v27 }
 0x189   : > { %v1398_v7 = vsel %vm1079_vm1, %v1326_v30, 0.0  ;;  %v1067_v30 = vmul.f32 %v7509_v48, %v7509_v48 }
 0x18a   : > { %1423 = vadd.xlane.f32.xlu0 %v1422_v32  ;;  %v1073_v32 = vmul.f32 %v7518_v54, %v7518_v54 }
 0x18b   : > { %1426 = vadd.xlane.f32.xlu1 %v1425_v29  ;;  %v1155_v29 = vsel %vm1079_vm1, %v1072_v59, 0.0  ;;  %v1075_v59 = vmul.f32 %v7533_v0, %v7533_v0 }
 0x18c   : > { %v1158_v34 = vsel %vm1079_vm1, %v1073_v32, 0.0 }
 0x18d   : > { %v1164_v32 = vsel %vm1079_vm1, %v1075_v59, 0.0 }
 0x18e   : > { %1387 = vadd.xlane.f32.xlu0 %v1386_v36  ;;  %v1325_v36 = vmul.f32 %v7661_v41, %v7661_v41 }
 0x18f   : > { %1390 = vadd.xlane.f32.xlu1 %v1389_v1  ;;  %v1392_v1 = vsel %vm1079_vm1, %v1324_v47, 0.0  ;;  %v1170_v47 = vsel %vm1079_vm1, %v1077_v5, 0.0  ;;  %6125 = vmatmul.mubr.msk.bf16.gmra.mrb[8].mxu0 %vm483_vm0, %v7371_v9  ;;  %v1065_v9 = vmul.f32 %v7494_v38, %v7494_v38 }
 0x190   : > { %v1395_v35 = vsel %vm1079_vm1, %v1325_v36, 0.0  ;;  %6128 = vmatprep.mubr.msk.bf16.mxu0 %vm483_vm0, %v7374_v10 }
 0x192   : > { %1153 = vadd.xlane.f32.xlu0 %v1152_v63  ;;  %v1076_v63 = vmul.f32 %v7539_v4, %v7539_v4 }
 0x193   : > { %1156 = vadd.xlane.f32.xlu1 %v1155_v29  ;;  %v1078_v29 = vmul.f32 %v7536_v2, %v7536_v2 }
 0x194   : > { %v1167_v6 = vsel %vm1079_vm1, %v1076_v63, 0.0  ;;  %v1407_v63 = vsel %vm1079_vm1, %v1329_v8, 0.0 }
 0x195   : > { %v1173_v36 = vsel %vm1079_vm1, %v1078_v29, 0.0  ;;  %v1134_v29 = vsel %vm1079_vm1, %v1065_v9, 0.0 }
 0x196   : > { %1159 = vadd.xlane.f32.xlu0 %v1158_v34  ;;  %v1327_v34 = vmul.f32 %v7683_v25, %v7683_v25 }
 0x197   : > { %1162 = vadd.xlane.f32.xlu1 %v1161_v20  ;;  %v1328_v20 = vmul.f32 %v7674_v53, %v7674_v53  ;;  %6129 = vmatmul.mubr.msk.bf16.gmra.mrb[12].mxu0 %vm483_vm0, %v7381_v11  ;;  %v1069_v11 = vmul.f32 %v7506_v46, %v7506_v46 }
 0x198   : > { %6132 = vmatprep.mubr.msk.bf16.mxu0 %vm483_vm0, %v7384_v12 }
 0x199   : > { %v1404_v59 = vsel %vm1079_vm1, %v1328_v20, 0.0  ;;  %v1070_v20 = vmul.f32 %v7512_v50, %v7512_v50 }
 0x19a   : > { %1393 = vadd.xlane.f32.xlu0 %v1392_v1  ;;  %v1401_v1 = vsel %vm1079_vm1, %v1327_v34, 0.0  ;;  %v1068_v34 = vmul.f32 %v7515_v52, %v7515_v52 }
 0x19b   : > { %1396 = vadd.xlane.f32.xlu1 %v1395_v35  ;;  %v1063_v35 = vmul.f32 %v7497_v40, %v7497_v40  ;;  %v1149_v8 = vsel %vm1079_vm1, %v1070_v20, 0.0 }
 0x19c   : > { %v1143_v12 = vsel %vm1079_vm1, %v1068_v34, 0.0 }
 0x19d   : > { %v1128_v5 = vsel %vm1079_vm1, %v1063_v35, 0.0 }
 0x19e   : > { %1165 = vadd.xlane.f32.xlu0 %v1164_v32  ;;  %v1064_v32 = vmul.f32 %v7503_v44, %v7503_v44 }
 0x19f   : > { %1168 = vadd.xlane.f32.xlu1 %v1167_v6  ;;  %v1066_v6 = vmul.f32 %v7500_v42, %v7500_v42  ;;  %6133 = vmatmul.mubr.msk.bf16.gmra.mrb[16].mxu0 %vm483_vm0, %v7391_v13 }
 0x1a0   : > { %v1131_v10 = vsel %vm1079_vm1, %v1064_v32, 0.0  ;;  %6136 = vmatprep.mubr.msk.bf16.mxu0 %vm483_vm0, %v7394_v14 }
 0x1a2   : > { %1171 = vadd.xlane.f32.xlu0 %v1170_v47  ;;  %v1137_v47 = vsel %vm1079_vm1, %v1066_v6, 0.0 }
 0x1a3   : > { %1174 = vadd.xlane.f32.xlu1 %v1173_v36  ;;  %v1140_v36 = vsel %vm1079_vm1, %v1067_v30, 0.0 }
 0x1a6   : > { %1399 = vadd.xlane.f32.xlu0 %v1398_v7  ;;  %v1146_v7 = vsel %vm1079_vm1, %v1069_v11, 0.0 }
 0x1a7   : > { %1402 = vadd.xlane.f32.xlu1 %v1401_v1  ;;  %6137 = vmatmul.mubr.msk.bf16.gmra.mrb[20].mxu0 %vm483_vm0, %v7401_v15 }
 0x1a8   : > { %6140 = vmatprep.mubr.msk.bf16.mxu0 %vm483_vm0, %v7404_v16 }
 0x1aa   : > { %1405 = vadd.xlane.f32.xlu0 %v1404_v59 }
 0x1ab   : > { %1408 = vadd.xlane.f32.xlu1 %v1407_v63 }
 0x1ae   : > { %1129 = vadd.xlane.f32.xlu0 %v1128_v5 }
 0x1af   : > { %1132 = vadd.xlane.f32.xlu1 %v1131_v10  ;;  %6141 = vmatmul.mubr.msk.bf16.gmra.mrb[24].mxu0 %vm483_vm0, %v7411_v17 }
 0x1b0   : > { %6144 = vmatprep.mubr.msk.bf16.mxu0 %vm483_vm0, %v7414_v18 }
 0x1b2   : > { %1135 = vadd.xlane.f32.xlu0 %v1134_v29 }
 0x1b3   : > { %1138 = vadd.xlane.f32.xlu1 %v1137_v47 }
 0x1b6   : > { %1141 = vadd.xlane.f32.xlu0 %v1140_v36 }
 0x1b7   : > { %1144 = vadd.xlane.f32.xlu1 %v1143_v12  ;;  %6145 = vmatmul.mubr.msk.bf16.gmra.mrb[28].mxu0 %vm483_vm0, %v7421_v19 }
 0x1ba   : > { %1147 = vadd.xlane.f32.xlu0 %v1146_v7 }
 0x1bb   : > { %1150 = vadd.xlane.f32.xlu1 %v1149_v8 }
 0x1ca   : > { %v1346_v13 = vpop.xlane.xlu1 %1345 }
 0x1cb   : > { %v1436_v14 = vmax.f32 %v1346_v13, 1e-24  ;;  %v1340_v1 = vpop.xlane.xlu0 %1339 }
 0x1cc   : > { %v1434_v59 = vmax.f32 %v1340_v1, 1e-24 }
 0x1cd   : > { %6696 = vrsqrt.f32 %v1436_v14 }
 0x1ce   : > { %v1349_v35 = vpop.xlane.xlu1 %1348  ;;  %6698 = vrsqrt.f32 %v1434_v59 }
 0x1cf   : > { %v1437_v63 = vmax.f32 %v1349_v35, 1e-24  ;;  %v1343_v15 = vpop.xlane.xlu0 %1342 }
 0x1d0   : > { %v1435_v32 = vmax.f32 %v1343_v15, 1e-24 }
 0x1d1   : > { %6700 = vrsqrt.f32 %v1437_v63 }
 0x1d2   : > { %6702 = vrsqrt.f32 %v1435_v32 }
 0x1d3   : > { %v1358_v16 = vpop.xlane.xlu0 %1357 }
 0x1d4   : > { %v1440_v17 = vmax.f32 %v1358_v16, 1e-24  ;;  %v1361_v5 = vpop.xlane.xlu1 %1360  ;;  %v10149_v16 = vld [vmem:[#allocation5_spill] sm:$0xff] }
 0x1d5   : > { %v1441_v9 = vmax.f32 %v1361_v5, 1e-24 }
 0x1d6   : > { %6704 = vrsqrt.f32 %v1440_v17  ;;  %v10150_v17 = vld [vmem:[#allocation7_spill] sm:$0xff] }
 0x1d7   : > { %6706 = vrsqrt.f32 %v1441_v9  ;;  %v1352_v18 = vpop.xlane.xlu0 %1351  ;;  %v6697_v29 = vpop.eup %6696 }
 0x1d8   : > { %v1438_v10 = vmax.f32 %v1352_v18, 1e-24  ;;  %v1355_v6 = vpop.xlane.xlu1 %1354  ;;  %v6699_v47 = vpop.eup %6698  ;;  %v1500_v20 = vmul.f32 %v6697_v29, %v7541_v37 }
 0x1d9   : > { %v1439_v30 = vmax.f32 %v1355_v6, 1e-24  ;;  %v1498_v13 = vmul.f32 %v6699_v47, %v7543_v39 }
 0x1da   : > { %6708 = vrsqrt.f32 %v1438_v10 }
 0x1db   : > { %v6701_v19 = vpop.eup %6700  ;;  %6710 = vrsqrt.f32 %v1439_v30  ;;  %v1082_v34 = vpop.xlane.xlu0 %1081 }
 0x1dc   : > { %v6703_v36 = vpop.eup %6702  ;;  %v1176_v11 = vmax.f32 %v1082_v34, 1e-24  ;;  %v1085_v12 = vpop.xlane.xlu1 %1084  ;;  %v1501_v7 = vmul.f32 %v6701_v19, %v7547_v43  ;;  %v10151_v19 = vld [vmem:[#allocation6_spill] sm:$0xff] }
 0x1dd   : > { %v1177_v8 = vmax.f32 %v1085_v12, 1e-24  ;;  %v1499_v14 = vmul.f32 %v6703_v36, %v7553_v49  ;;  %v7909_v36 = vstv %s1240_s16 }
 0x1de   : > { %6712 = vrsqrt.f32 %v1176_v11  ;;  %v1547_v1 = vpack.c.bf16 %v1501_v7, %v1500_v20  ;;  %v10152_v11 = vld [vmem:[#allocation8_spill] sm:$0xff] }
 0x1df   : > { %6714 = vrsqrt.f32 %v1177_v8  ;;  %v1088_v59 = vpop.xlane.xlu0 %1087  ;;  %v1546_v35 = vpack.c.bf16 %v1499_v14, %v1498_v13 }
 0x1e0   : > { %v6705_v63 = vpop.eup %6704  ;;  %v1091_v15 = vpop.xlane.xlu1 %1090  ;;  %v1178_v9 = vmax.f32 %v1088_v59, 1e-24 }
 0x1e1   : > { %v6707_v32 = vpop.eup %6706  ;;  %6612 = vmatprep.subr.msk.bf16.mxu1 %vm1079_vm1, %v1546_v35  ;;  %v1623_v37 = vsel %vm1079_vm1, %v1546_v35, 0  ;;  %v1504_v43 = vmul.f32 %v6705_v63, %v10149_v16  ;;  %v1179_v30 = vmax.f32 %v1091_v15, 1e-24  ;;  %v1626_v63 = vsel %vm1079_vm1, %v1547_v1, 0  ;;  %v10153_v16 = vld [vmem:[#allocation9_spill] sm:$0xff] }
 0x1e2   : > { %6149 = vmatpush3.bf16.xpose.msra.mxu1 %v1623_v37  ;;  %v1505_v39 = vmul.f32 %v6707_v32, %v10150_v17 }
 0x1e3   : > { %6613 = vmatprep.subr.msk.bf16.mxu1 %vm1079_vm1, %v1547_v1  ;;  %v1370_v49 = vpop.xlane.xlu0 %1369 }
 0x1e4   : > { %v6709_v5 = vpop.eup %6708  ;;  %v1444_v18 = vmax.f32 %v1370_v49, 1e-24  ;;  %v1373_v10 = vpop.xlane.xlu1 %1372  ;;  %v7906_v6 = vpack.c.bf16 %v1505_v39, %v1504_v43  ;;  %v10154_v49 = vld [vmem:[#allocation10_spill] sm:$0xff] }
 0x1e5   : > { %v6711_v29 = vpop.eup %6710  ;;  %v1445_v47 = vmax.f32 %v1373_v10, 1e-24  ;;  %v1502_v34 = vmul.f32 %v6709_v5, %v10151_v19 }
 0x1e6   : > { %6716 = vrsqrt.f32 %v1444_v18  ;;  %v1503_v12 = vmul.f32 %v6711_v29, %v10152_v11  ;;  %v10155_v11 = vld [vmem:[#allocation12_spill] sm:$0xff] }
 0x1e7   : > { %6718 = vrsqrt.f32 %v1445_v47  ;;  %v1364_v20 = vpop.xlane.xlu0 %1363 }
 0x1e8   : > { %v6713_v7 = vpop.eup %6712  ;;  %6720 = vrsqrt.f32 %v1178_v9  ;;  %v1442_v8 = vmax.f32 %v1364_v20, 1e-24  ;;  %v1367_v13 = vpop.xlane.xlu1 %1366  ;;  %v1548_v14 = vpack.c.bf16 %v1503_v12, %v1502_v34 }
 0x1e9   : > { %v6715_v59 = vpop.eup %6714  ;;  %6722 = vrsqrt.f32 %v1179_v30  ;;  %v1443_v35 = vmax.f32 %v1367_v13, 1e-24  ;;  %v1242_v15 = vmul.f32 %v6713_v7, %v7909_v36  ;;  %v10156_v7 = vld [vmem:[#allocation15_spill] sm:$0xff] }
 0x1ea   : > { %6724 = vrsqrt.f32 %v1442_v8  ;;  %6151 = vmatpush3.bf16.xpose.msra.mxu1 %v1626_v63  ;;  %v1243_v32 = vmul.f32 %v6715_v59, %v7909_v36  ;;  %v1629_v34 = vsel %vm1079_vm1, %v1548_v14, 0 }
 0x1eb   : > { %6726 = vrsqrt.f32 %v1443_v35  ;;  %6614 = vmatprep.subr.msk.bf16.mxu1 %vm1079_vm1, %v1548_v14  ;;  %v1094_v37 = vpop.xlane.xlu0 %1093  ;;  %v1274_v43 = vmul.f32 %v1242_v15, %v10153_v16  ;;  %v10157_v16 = vld [vmem:[#allocation14_spill] sm:$0xff] }
 0x1ec   : > { %v1180_v17 = vmax.f32 %v1094_v37, 1e-24  ;;  %v1097_v39 = vpop.xlane.xlu1 %1096  ;;  %v1275_v5 = vmul.f32 %v1243_v32, %v10154_v49 }
 0x1ed   : > { %v1181_v9 = vmax.f32 %v1097_v39, 1e-24 }
 0x1ee   : > { %6728 = vrsqrt.f32 %v1180_v17  ;;  %v1530_v18 = vpack.c.bf16 %v1275_v5, %v1274_v43  ;;  %v10158_v17 = vld [vmem:[#allocation16_spill] sm:$0xff] }
 0x1ef   : > { %6730 = vrsqrt.f32 %v1181_v9  ;;  %v1100_v1 = vpop.xlane.xlu0 %1099 }
 0x1f0   : > { %v6717_v10 = vpop.eup %6716  ;;  %v1182_v29 = vmax.f32 %v1100_v1, 1e-24  ;;  %v1103_v30 = vpop.xlane.xlu1 %1102  ;;  %6156 = vmatprep.mubr.msk.bf16.mxu1 %vm1079_vm1, %v1530_v18 }
 0x1f1   : > { %v6719_v47 = vpop.eup %6718  ;;  %v1183_v19 = vmax.f32 %v1103_v30, 1e-24  ;;  %v1508_v12 = vmul.f32 %v6717_v10, %v10155_v11 }
 0x1f2   : > { %v6721_v20 = vpop.eup %6720  ;;  %6732 = vrsqrt.f32 %v1182_v29  ;;  %6153 = vmatpush3.bf16.xpose.msra.mxu1 %v1629_v34  ;;  %v1509_v8 = vmul.f32 %v6719_v47, %v10156_v7  ;;  %v10160_v7 = vld [vmem:[#allocation13_spill] sm:$0xff] }
 0x1f3   : > { %v6723_v13 = vpop.eup %6722  ;;  %6734 = vrsqrt.f32 %v1183_v19  ;;  %6615 = vmatprep.subr.msk.bf16.mxu1 %vm1079_vm1, %v7906_v6  ;;  %v1382_v59 = vpop.xlane.xlu0 %1381  ;;  %v1244_v49 = vmul.f32 %v6721_v20, %v7909_v36  ;;  %v1632_v19 = vsel %vm1079_vm1, %v7906_v6, 0  ;;  %v10162_v6 = vld [vmem:[#allocation22_spill] sm:$0xff] }
 0x1f4   : > { %v6725_v35 = vpop.eup %6724  ;;  %v1448_v63 = vmax.f32 %v1382_v59, 1e-24  ;;  %v1385_v15 = vpop.xlane.xlu1 %1384  ;;  %v7924_v32 = vpack.c.bf16 %v1509_v8, %v1508_v12  ;;  %v1245_v5 = vmul.f32 %v6723_v13, %v7909_v36  ;;  %v10159_v12 = vld [vmem:[#allocation11_spill] sm:$0xff] }
 0x1f5   : > { %v6727_v37 = vpop.eup %6726  ;;  %v1449_v14 = vmax.f32 %v1385_v15, 1e-24  ;;  %v1506_v43 = vmul.f32 %v6725_v35, %v10157_v16  ;;  %v1276_v20 = vmul.f32 %v1244_v49, %v10159_v12  ;;  %v10161_v15 = vld [vmem:[#allocation21_spill] sm:$0xff] }
 0x1f6   : > { %6736 = vrsqrt.f32 %v1448_v63  ;;  %v1507_v39 = vmul.f32 %v6727_v37, %v10158_v17  ;;  %v1277_v8 = vmul.f32 %v1245_v5, %v10160_v7 }
 0x1f7   : > { %6738 = vrsqrt.f32 %v1449_v14  ;;  %v1376_v9 = vpop.xlane.xlu0 %1375 }
 0x1f8   : > { %v6729_v18 = vpop.eup %6728  ;;  %v1446_v1 = vmax.f32 %v1376_v9, 1e-24  ;;  %v1379_v10 = vpop.xlane.xlu1 %1378  ;;  %v1550_v29 = vpack.c.bf16 %v1507_v39, %v1506_v43  ;;  %v1531_v17 = vpack.c.bf16 %v1277_v8, %v1276_v20  ;;  %v10165_v20 = vld [vmem:[#allocation23_spill] sm:$0xff]  ;;  %v10166_v8 = vld [vmem:[#allocation24_spill] sm:$0xff] }
 0x1f9   : > { %v6731_v30 = vpop.eup %6730  ;;  %v1447_v47 = vmax.f32 %v1379_v10, 1e-24  ;;  %v1246_v34 = vmul.f32 %v6729_v18, %v7909_v36 }
 0x1fa   : > { %6740 = vrsqrt.f32 %v1446_v1  ;;  %6155 = vmatpush3.bf16.xpose.msra.mxu1 %v1632_v19  ;;  %v1247_v11 = vmul.f32 %v6731_v30, %v7909_v36  ;;  %v1712_v30 = vsel %vm1079_vm1, %v1550_v29, 0 }
 0x1fb   : > { %6742 = vrsqrt.f32 %v1447_v47  ;;  %6616 = vmatprep.subr.msk.bf16.mxu1 %vm1079_vm1, %v1550_v29  ;;  %v1106_v13 = vpop.xlane.xlu0 %1105  ;;  %v1278_v37 = vmul.f32 %v1246_v34, %v10161_v15  ;;  %v10163_v47 = vld [vmem:[#allocation17_spill] sm:$0xff]  ;;  %v10164_v34 = vld [vmem:[#allocation19_spill] sm:$0xff] }
 0x1fc   : > { %v6733_v59 = vpop.eup %6732  ;;  %v1184_v35 = vmax.f32 %v1106_v13, 1e-24  ;;  %v1109_v63 = vpop.xlane.xlu1 %1108  ;;  %v1279_v14 = vmul.f32 %v1247_v11, %v10162_v6 }
 0x1fd   : > { %v6735_v16 = vpop.eup %6734  ;;  %v1185_v43 = vmax.f32 %v1109_v63, 1e-24  ;;  %v1248_v49 = vmul.f32 %v6733_v59, %v7909_v36 }
 0x1fe   : > { %6744 = vrsqrt.f32 %v1184_v35  ;;  %v1249_v5 = vmul.f32 %v6735_v16, %v7909_v36  ;;  %v1532_v1 = vpack.c.bf16 %v1279_v14, %v1278_v37  ;;  %v10167_v16 = vld [vmem:[#allocation18_spill] sm:$0xff] }
 0x1ff   : > { %6746 = vrsqrt.f32 %v1185_v43  ;;  %v1112_v39 = vpop.xlane.xlu0 %1111  ;;  %v1280_v7 = vmul.f32 %v1248_v49, %v10165_v20  ;;  %v10169_v20 = vld [vmem:[#allocation25_spill] sm:$0xff] }
 0x200   : > { %v6737_v9 = vpop.eup %6736  ;;  %v1115_v18 = vpop.xlane.xlu1 %1114  ;;  %v1281_v13 = vmul.f32 %v1249_v5, %v10166_v8  ;;  %v1186_v35 = vmax.f32 %v1112_v39, 1e-24 }
 0x201   : > { %v6739_v10 = vpop.eup %6738  ;;  %6157 = vmatmul.mubr.msk.bf16.vlgmr.msra.gmra.mrb[64].mxu1 %vm1079_vm1, %v1531_v17  ;;  %v1512_v19 = vmul.f32 %v6737_v9, %v10163_v47  ;;  %v1187_v6 = vmax.f32 %v1115_v18, 1e-24  ;;  %v10168_v17 = vld [vmem:[#allocation20_spill] sm:$0xff]  ;;  %v1715_v18 = vsel %vm1079_vm1, %v7924_v32, 0 }
 0x202   : > { %6160 = vmatprep.mubr.msk.bf16.mxu1 %vm1079_vm1, %v1532_v1  ;;  %6165 = vmatpush3.bf16.xpose.msra.mxu1 %v1712_v30  ;;  %v1513_v11 = vmul.f32 %v6739_v10, %v10164_v34  ;;  %v1533_v10 = vpack.c.bf16 %v1281_v13, %v1280_v7 }
 0x203   : > { %6617 = vmatprep.subr.msk.bf16.mxu1 %vm1079_vm1, %v7924_v32  ;;  %v1418_v12 = vpop.xlane.xlu0 %1417 }
 0x204   : > { %v6741_v59 = vpop.eup %6740  ;;  %v1460_v63 = vmax.f32 %v1418_v12, 1e-24  ;;  %v1421_v15 = vpop.xlane.xlu1 %1420  ;;  %v7950_v29 = vpack.c.bf16 %v1513_v11, %v1512_v19 }
 0x205   : > { %v6743_v37 = vpop.eup %6742  ;;  %v1461_v14 = vmax.f32 %v1421_v15, 1e-24  ;;  %v1510_v43 = vmul.f32 %v6741_v59, %v10167_v16  ;;  %v10170_v59 = vld [vmem:[#allocation26_spill] sm:$0xff] }
 0x206   : > { %6748 = vrsqrt.f32 %v1460_v63  ;;  %v1511_v9 = vmul.f32 %v6743_v37, %v10168_v17 }
 0x207   : > { %6750 = vrsqrt.f32 %v1461_v14  ;;  %v1412_v1 = vpop.xlane.xlu0 %1411 }
 0x208   : > { %v6745_v49 = vpop.eup %6744  ;;  %6752 = vrsqrt.f32 %v1186_v35  ;;  %v1458_v5 = vmax.f32 %v1412_v1, 1e-24  ;;  %v1415_v30 = vpop.xlane.xlu1 %1414  ;;  %v1552_v39 = vpack.c.bf16 %v1511_v9, %v1510_v43 }
 0x209   : > { %v6747_v47 = vpop.eup %6746  ;;  %6754 = vrsqrt.f32 %v1187_v6  ;;  %v1459_v19 = vmax.f32 %v1415_v30, 1e-24  ;;  %6161 = vmatmul.mubr.msk.bf16.gmra.mrb[68].mxu1 %vm1079_vm1, %v1533_v10  ;;  %v1250_v34 = vmul.f32 %v6745_v49, %v7909_v36  ;;  %v10171_v10 = vld [vmem:[#allocation29_spill] sm:$0xff] }
 0x20a   : > { %6756 = vrsqrt.f32 %v1458_v5  ;;  %6167 = vmatpush3.bf16.xpose.msra.mxu1 %v1715_v18  ;;  %v1251_v11 = vmul.f32 %v6747_v47, %v7909_v36  ;;  %v1718_v17 = vsel %vm1079_vm1, %v1552_v39, 0 }
 0x20b   : > { %6758 = vrsqrt.f32 %v1459_v19  ;;  %6618 = vmatprep.subr.msk.bf16.mxu1 %vm1079_vm1, %v1552_v39  ;;  %v1118_v12 = vpop.xlane.xlu0 %1117  ;;  %v1282_v7 = vmul.f32 %v1250_v34, %v10169_v20 }
 0x20c   : > { %v1188_v8 = vmax.f32 %v1118_v12, 1e-24  ;;  %v1121_v13 = vpop.xlane.xlu1 %1120  ;;  %v1283_v35 = vmul.f32 %v1251_v11, %v10170_v59  ;;  %v10172_v12 = vld [vmem:[#allocation30_spill] sm:$0xff] }
 0x20d   : > { %v1189_v63 = vmax.f32 %v1121_v13, 1e-24 }
 0x20e   : > { %6760 = vrsqrt.f32 %v1188_v8  ;;  %v1534_v15 = vpack.c.bf16 %v1283_v35, %v1282_v7 }
 0x20f   : > { %6762 = vrsqrt.f32 %v1189_v63  ;;  %v1124_v32 = vpop.xlane.xlu0 %1123 }
 0x210   : > { %v6749_v37 = vpop.eup %6748  ;;  %v1190_v6 = vmax.f32 %v1124_v32, 1e-24  ;;  %v1127_v14 = vpop.xlane.xlu1 %1126  ;;  %6172 = vmatprep.mubr.msk.bf16.mxu1 %vm1079_vm1, %v1534_v15 }
 0x211   : > { %v6751_v16 = vpop.eup %6750  ;;  %v1191_v43 = vmax.f32 %v1127_v14, 1e-24  ;;  %v1524_v9 = vmul.f32 %v6749_v37, %v7706_v55 }
 0x212   : > { %v6753_v1 = vpop.eup %6752  ;;  %6764 = vrsqrt.f32 %v1190_v6  ;;  %6169 = vmatpush3.bf16.xpose.msra.mxu1 %v1718_v17  ;;  %v1525_v49 = vmul.f32 %v6751_v16, %v10171_v10  ;;  %v1721_v6 = vsel %vm1079_vm1, %v7950_v29, 0  ;;  %v10173_v16 = vld [vmem:[#allocation27_spill] sm:$0xff]  ;;  %v10174_v17 = vld [vmem:[#allocation28_spill] sm:$0xff] }
 0x213   : > { %v6755_v5 = vpop.eup %6754  ;;  %6766 = vrsqrt.f32 %v1191_v43  ;;  %6619 = vmatprep.subr.msk.bf16.mxu1 %vm1079_vm1, %v7950_v29  ;;  %v1430_v30 = vpop.xlane.xlu0 %1429  ;;  %v1252_v7 = vmul.f32 %v6753_v1, %v7909_v36 }
 0x214   : > { %v6757_v47 = vpop.eup %6756  ;;  %v1464_v19 = vmax.f32 %v1430_v30, 1e-24  ;;  %v1433_v18 = vpop.xlane.xlu1 %1432  ;;  %v7968_v34 = vpack.c.bf16 %v1525_v49, %v1524_v9  ;;  %v1253_v8 = vmul.f32 %v6755_v5, %v7909_v36 }
 0x215   : > { %v6759_v11 = vpop.eup %6758  ;;  %v1465_v39 = vmax.f32 %v1433_v18, 1e-24  ;;  %v1522_v55 = vmul.f32 %v6757_v47, %v7715_v57  ;;  %v1284_v43 = vmul.f32 %v1252_v7, %v10173_v16 }
 0x216   : > { %6768 = vrsqrt.f32 %v1464_v19  ;;  %v1523_v20 = vmul.f32 %v6759_v11, %v10172_v12  ;;  %v1285_v9 = vmul.f32 %v1253_v8, %v10174_v17 }
 0x217   : > { %6770 = vrsqrt.f32 %v1465_v39  ;;  %v1424_v13 = vpop.xlane.xlu0 %1423 }
 0x218   : > { %v6761_v59 = vpop.eup %6760  ;;  %v1462_v35 = vmax.f32 %v1424_v13, 1e-24  ;;  %v1427_v63 = vpop.xlane.xlu1 %1426  ;;  %v1558_v15 = vpack.c.bf16 %v1523_v20, %v1522_v55  ;;  %v1535_v18 = vpack.c.bf16 %v1285_v9, %v1284_v43 }
 0x219   : > { %v6763_v32 = vpop.eup %6762  ;;  %v1463_v37 = vmax.f32 %v1427_v63, 1e-24  ;;  %v1254_v57 = vmul.f32 %v6761_v59, %v7909_v36 }
 0x21a   : > { %6772 = vrsqrt.f32 %v1462_v35  ;;  %6171 = vmatpush3.bf16.xpose.msra.mxu1 %v1721_v6  ;;  %v1255_v14 = vmul.f32 %v6763_v32, %v7909_v36 }
 0x21b   : > { %6774 = vrsqrt.f32 %v1463_v37  ;;  %6624 = vmatprep.subr.msk.bf16.mxu1 %vm1079_vm1, %v1558_v15  ;;  %v1388_v1 = vpop.xlane.xlu0 %1387  ;;  %v1286_v30 = vmul.f32 %v1254_v57, %v7749_v21  ;;  %v1890_v21 = vsel %vm1079_vm1, %v1558_v15, 0 }
 0x21c   : > { %v6765_v10 = vpop.eup %6764  ;;  %v1450_v49 = vmax.f32 %v1388_v1, 1e-24  ;;  %v1391_v5 = vpop.xlane.xlu1 %1390  ;;  %v1287_v29 = vmul.f32 %v1255_v14, %v7753_v23 }
 0x21d   : > { %v6767_v47 = vpop.eup %6766  ;;  %v1451_v19 = vmax.f32 %v1391_v5, 1e-24  ;;  %v1256_v39 = vmul.f32 %v6765_v10, %v7909_v36 }
 0x21e   : > { %6776 = vrsqrt.f32 %v1450_v49  ;;  %v1257_v55 = vmul.f32 %v6767_v47, %v7909_v36  ;;  %v1536_v8 = vpack.c.bf16 %v1287_v29, %v1286_v30  ;;  %v1893_v30 = vsel %vm1079_vm1, %v7968_v34, 0 }
 0x21f   : > { %6778 = vrsqrt.f32 %v1451_v19  ;;  %v1154_v11 = vpop.xlane.xlu0 %1153  ;;  %v1288_v32 = vmul.f32 %v1256_v39, %v7759_v61 }
 0x220   : > { %v6769_v12 = vpop.eup %6768  ;;  %v1200_v20 = vmax.f32 %v1154_v11, 1e-24  ;;  %v1157_v7 = vpop.xlane.xlu1 %1156  ;;  %v1289_v37 = vmul.f32 %v1257_v55, %v7765_v33 }
 0x221   : > { %v6771_v13 = vpop.eup %6770  ;;  %v1201_v59 = vmax.f32 %v1157_v7, 1e-24  ;;  %6173 = vmatmul.mubr.msk.bf16.vlgmr.msra.gmra.mrb[72].mxu1 %vm1079_vm1, %v1535_v18  ;;  %v1528_v23 = vmul.f32 %v6769_v12, %v7732_v51 }
 0x222   : > { %6780 = vrsqrt.f32 %v1200_v20  ;;  %6176 = vmatprep.mubr.msk.bf16.mxu1 %vm1079_vm1, %v1536_v8  ;;  %6197 = vmatpush3.bf16.xpose.msra.mxu1 %v1890_v21  ;;  %v1529_v35 = vmul.f32 %v6771_v13, %v7740_v31  ;;  %v1537_v9 = vpack.c.bf16 %v1289_v37, %v1288_v32 }
 0x223   : > { %6782 = vrsqrt.f32 %v1201_v59  ;;  %6625 = vmatprep.subr.msk.bf16.mxu1 %vm1079_vm1, %v7968_v34  ;;  %v1160_v63 = vpop.xlane.xlu0 %1159 }
 0x224   : > { %v6773_v6 = vpop.eup %6772  ;;  %v1202_v57 = vmax.f32 %v1160_v63, 1e-24  ;;  %v1163_v15 = vpop.xlane.xlu1 %1162  ;;  %v7994_v14 = vpack.c.bf16 %v1529_v35, %v1528_v23 }
 0x225   : > { %v6775_v51 = vpop.eup %6774  ;;  %v1203_v16 = vmax.f32 %v1163_v15, 1e-24  ;;  %v1526_v43 = vmul.f32 %v6773_v6, %v7735_v26 }
 0x226   : > { %v1527_v31 = vmul.f32 %v6775_v51, %v7745_v28  ;;  %6784 = vrsqrt.f32 %v1202_v57 }
 0x227   : > { %v1394_v17 = vpop.xlane.xlu0 %1393  ;;  %6786 = vrsqrt.f32 %v1203_v16 }
 0x228   : > { %v6777_v1 = vpop.eup %6776  ;;  %v1452_v10 = vmax.f32 %v1394_v17, 1e-24  ;;  %v1397_v49 = vpop.xlane.xlu1 %1396  ;;  %v1560_v61 = vpack.c.bf16 %v1527_v31, %v1526_v43 }
 0x229   : > { %v6779_v5 = vpop.eup %6778  ;;  %v1453_v33 = vmax.f32 %v1397_v49, 1e-24  ;;  %6177 = vmatmul.mubr.msk.bf16.gmra.mrb[76].mxu1 %vm1079_vm1, %v1537_v9  ;;  %v1514_v29 = vmul.f32 %v6777_v1, %v7659_v45 }
 0x22a   : > { %6788 = vrsqrt.f32 %v1452_v10  ;;  %6199 = vmatpush3.bf16.xpose.msra.mxu1 %v1893_v30  ;;  %v1515_v28 = vmul.f32 %v6779_v5, %v7663_v24  ;;  %v1896_v21 = vsel %vm1079_vm1, %v1560_v61, 0  ;;  %v1899_v5 = vsel %vm1079_vm1, %v7994_v14, 0 }
 0x22b   : > { %6790 = vrsqrt.f32 %v1453_v33  ;;  %6626 = vmatprep.subr.msk.bf16.mxu1 %vm1079_vm1, %v1560_v61  ;;  %v1166_v26 = vpop.xlane.xlu0 %1165 }
 0x22c   : > { %v6781_v47 = vpop.eup %6780  ;;  %v1204_v19 = vmax.f32 %v1166_v26, 1e-24  ;;  %v1169_v18 = vpop.xlane.xlu1 %1168  ;;  %v1554_v11 = vpack.c.bf16 %v1515_v28, %v1514_v29 }
 0x22d   : > { %v6783_v39 = vpop.eup %6782  ;;  %v1205_v55 = vmax.f32 %v1169_v18, 1e-24  ;;  %v1266_v12 = vmul.f32 %v6781_v47, %v7909_v36 }
 0x22e   : > { %6792 = vrsqrt.f32 %v1204_v19  ;;  %6620 = vmatprep.subr.msk.bf16.mxu0 %vm1079_vm1, %v1554_v11  ;;  %v1801_v45 = vsel %vm1079_vm1, %v1554_v11, 0  ;;  %v1267_v34 = vmul.f32 %v6783_v39, %v7909_v36 }
 0x22f   : > { %6794 = vrsqrt.f32 %v1205_v55  ;;  %6181 = vmatpush3.bf16.xpose.msra.mxu0 %v1801_v45  ;;  %v1172_v24 = vpop.xlane.xlu0 %1171  ;;  %v1298_v20 = vmul.f32 %v1266_v12, %v7521_v56 }
 0x230   : > { %v1206_v7 = vmax.f32 %v1172_v24, 1e-24  ;;  %v1175_v8 = vpop.xlane.xlu1 %1174  ;;  %v1299_v13 = vmul.f32 %v1267_v34, %v7527_v60  ;;  %v6785_v23 = vpop.eup %6784 }
 0x231   : > { %v1207_v59 = vmax.f32 %v1175_v8, 1e-24  ;;  %v6787_v63 = vpop.eup %6786  ;;  %v1268_v16 = vmul.f32 %v6785_v23, %v7909_v36 }
 0x232   : > { %6796 = vrsqrt.f32 %v1206_v7  ;;  %6201 = vmatpush3.bf16.xpose.msra.mxu1 %v1896_v21  ;;  %v1542_v35 = vpack.c.bf16 %v1299_v13, %v1298_v20  ;;  %v1269_v43 = vmul.f32 %v6787_v63, %v7909_v36 }
 0x233   : > { %6798 = vrsqrt.f32 %v1207_v59  ;;  %6627 = vmatprep.subr.msk.bf16.mxu1 %vm1079_vm1, %v7994_v14  ;;  %v1400_v32 = vpop.xlane.xlu0 %1399  ;;  %v1300_v30 = vmul.f32 %v1268_v16, %v7518_v54 }
 0x234   : > { %v6789_v37 = vpop.eup %6788  ;;  %v1454_v6 = vmax.f32 %v1400_v32, 1e-24  ;;  %v1403_v56 = vpop.xlane.xlu1 %1402  ;;  %6204 = vmatprep.mubr.msk.bf16.mxu1 %vm1079_vm1, %v1542_v35  ;;  %v1301_v29 = vmul.f32 %v1269_v43, %v7524_v58 }
 0x235   : > { %v6791_v57 = vpop.eup %6790  ;;  %v1455_v60 = vmax.f32 %v1403_v56, 1e-24  ;;  %v1516_v15 = vmul.f32 %v6789_v37, %v7651_v3 }
 0x236   : > { %6800 = vrsqrt.f32 %v1454_v6  ;;  %v1517_v51 = vmul.f32 %v6791_v57, %v7661_v41  ;;  %v1543_v55 = vpack.c.bf16 %v1301_v29, %v1300_v30 }
 0x237   : > { %6802 = vrsqrt.f32 %v1455_v60  ;;  %v1406_v31 = vpop.xlane.xlu0 %1405 }
 0x238   : > { %v6793_v17 = vpop.eup %6792  ;;  %v1456_v9 = vmax.f32 %v1406_v31, 1e-24  ;;  %v1409_v1 = vpop.xlane.xlu1 %1408  ;;  %v1555_v10 = vpack.c.bf16 %v1517_v51, %v1516_v15 }
 0x239   : > { %v6795_v49 = vpop.eup %6794  ;;  %v1457_v61 = vmax.f32 %v1409_v1, 1e-24  ;;  %v1270_v3 = vmul.f32 %v6793_v17, %v7909_v36 }
 0x23a   : > { %6804 = vrsqrt.f32 %v1456_v9  ;;  %6621 = vmatprep.subr.msk.bf16.mxu0 %vm1079_vm1, %v1555_v10  ;;  %6203 = vmatpush3.bf16.xpose.msra.mxu1 %v1899_v5  ;;  %v1804_v41 = vsel %vm1079_vm1, %v1555_v10, 0  ;;  %v1271_v33 = vmul.f32 %v6795_v49, %v7909_v36 }
 0x23b   : > { %6806 = vrsqrt.f32 %v1457_v61  ;;  %6183 = vmatpush3.bf16.xpose.msra.mxu0 %v1804_v41  ;;  %v1130_v28 = vpop.xlane.xlu0 %1129  ;;  %v1302_v19 = vmul.f32 %v1270_v3, %v7533_v0 }
 0x23c   : > { %v6797_v26 = vpop.eup %6796  ;;  %v1192_v47 = vmax.f32 %v1130_v28, 1e-24  ;;  %v1133_v14 = vpop.xlane.xlu1 %1132  ;;  %v1303_v18 = vmul.f32 %v1271_v33, %v7539_v4 }
 0x23d   : > { %v6799_v11 = vpop.eup %6798  ;;  %v1193_v39 = vmax.f32 %v1133_v14, 1e-24  ;;  %v1272_v54 = vmul.f32 %v6797_v26, %v7909_v36 }
 0x23e   : > { %6808 = vrsqrt.f32 %v1192_v47  ;;  %v1273_v58 = vmul.f32 %v6799_v11, %v7909_v36  ;;  %v1544_v20 = vpack.c.bf16 %v1303_v18, %v1302_v19 }
 0x23f   : > { %6810 = vrsqrt.f32 %v1193_v39  ;;  %v1136_v12 = vpop.xlane.xlu0 %1135  ;;  %v1304_v59 = vmul.f32 %v1272_v54, %v7530_v62 }
 0x240   : > { %v6801_v45 = vpop.eup %6800  ;;  %v1194_v34 = vmax.f32 %v1136_v12, 1e-24  ;;  %v1139_v24 = vpop.xlane.xlu1 %1138  ;;  %v1305_v21 = vmul.f32 %v1273_v58, %v7536_v2 }
 0x241   : > { %v6803_v7 = vpop.eup %6802  ;;  %v1195_v8 = vmax.f32 %v1139_v24, 1e-24  ;;  %6205 = vmatmul.mubr.msk.bf16.vlgmr.msra.gmra.mrb[80].mxu1 %vm1079_vm1, %v1543_v55  ;;  %v1518_v0 = vmul.f32 %v6801_v45, %v7679_v22 }
 0x242   : > { %6812 = vrsqrt.f32 %v1194_v34  ;;  %6208 = vmatprep.mubr.msk.bf16.mxu1 %vm1079_vm1, %v1544_v20  ;;  %v1519_v4 = vmul.f32 %v6803_v7, %v7683_v25  ;;  %v1545_v57 = vpack.c.bf16 %v1305_v21, %v1304_v59 }
 0x243   : > { %6814 = vrsqrt.f32 %v1195_v8  ;;  %v1142_v13 = vpop.xlane.xlu0 %1141 }
 0x244   : > { %v6805_v23 = vpop.eup %6804  ;;  %v1196_v35 = vmax.f32 %v1142_v13, 1e-24  ;;  %v1145_v63 = vpop.xlane.xlu1 %1144  ;;  %v1556_v32 = vpack.c.bf16 %v1519_v4, %v1518_v0 }
 0x245   : > { %v6807_v37 = vpop.eup %6806  ;;  %v1197_v6 = vmax.f32 %v1145_v63, 1e-24  ;;  %v1520_v56 = vmul.f32 %v6805_v23, %v7674_v53 }
 0x246   : > { %6816 = vrsqrt.f32 %v1196_v35  ;;  %6622 = vmatprep.subr.msk.bf16.mxu0 %vm1079_vm1, %v1556_v32  ;;  %v1807_v22 = vsel %vm1079_vm1, %v1556_v32, 0  ;;  %v1521_v25 = vmul.f32 %v6807_v37, %v7681_v27 }
 0x247   : > { %6818 = vrsqrt.f32 %v1197_v6  ;;  %6185 = vmatpush3.bf16.xpose.msra.mxu0 %v1807_v22  ;;  %v1148_v62 = vpop.xlane.xlu0 %1147 }
 0x248   : > { %v6809_v2 = vpop.eup %6808  ;;  %v1198_v60 = vmax.f32 %v1148_v62, 1e-24  ;;  %v1151_v15 = vpop.xlane.xlu1 %1150  ;;  %v1557_v51 = vpack.c.bf16 %v1521_v25, %v1520_v56 }
 0x249   : > { %v6811_v16 = vpop.eup %6810  ;;  %v1199_v43 = vmax.f32 %v1151_v15, 1e-24  ;;  %6209 = vmatmul.mubr.msk.bf16.gmra.mrb[84].mxu1 %vm1079_vm1, %v1545_v57  ;;  %v1258_v53 = vmul.f32 %v6809_v2, %v7909_v36 }
 0x24a   : > { %6820 = vrsqrt.f32 %v1198_v60  ;;  %6623 = vmatprep.subr.msk.bf16.mxu0 %vm1079_vm1, %v1557_v51  ;;  %v1259_v31 = vmul.f32 %v6811_v16, %v7909_v36  ;;  %v1810_v61 = vsel %vm1079_vm1, %v1557_v51, 0 }
 0x24b   : > { %6822 = vrsqrt.f32 %v1199_v43  ;;  %v1290_v27 = vmul.f32 %v1258_v53, %v7497_v40 }
 0x24c   : > { %v6813_v17 = vpop.eup %6812  ;;  %v1291_v9 = vmul.f32 %v1259_v31, %v7503_v44 }
 0x24d   : > { %v6815_v1 = vpop.eup %6814  ;;  %v1260_v10 = vmul.f32 %v6813_v17, %v7909_v36 }
 0x24e   : > { %v1261_v49 = vmul.f32 %v6815_v1, %v7909_v36  ;;  %v1538_v5 = vpack.c.bf16 %v1291_v9, %v1290_v27 }
 0x24f   : > { %6187 = vmatpush3.bf16.xpose.msra.mxu0 %v1810_v61  ;;  %v1292_v41 = vmul.f32 %v1260_v10, %v7494_v38 }
 0x250   : > { %v6817_v3 = vpop.eup %6816  ;;  %v1293_v33 = vmul.f32 %v1261_v49, %v7500_v42  ;;  %6188 = vmatprep.mubr.msk.bf16.mxu0 %vm1079_vm1, %v1538_v5 }
 0x251   : > { %v6819_v40 = vpop.eup %6818  ;;  %v1262_v30 = vmul.f32 %v6817_v3, %v7909_v36 }
 0x252   : > { %v1263_v44 = vmul.f32 %v6819_v40, %v7909_v36  ;;  %v1539_v26 = vpack.c.bf16 %v1293_v33, %v1292_v41 }
 0x253   : > { %v1294_v29 = vmul.f32 %v1262_v30, %v7509_v48  ;;  %v6118_v48 = vpop.f32.mrb[0].mxu0 }
 0x254   : > { %v6821_v28 = vpop.eup %6820  ;;  %v1295_v47 = vmul.f32 %v1263_v44, %v7515_v52  ;;  %v920_v55 = vpop.f32.mrb[1].mxu0 }
 0x255   : > { %v6823_v14 = vpop.eup %6822  ;;  %v1264_v19 = vmul.f32 %v6821_v28, %v7909_v36  ;;  %v6119_v52 = vpop.f32.mrb[2].mxu0 }
 0x256   : > { %6189 = vmatmul.mubr.msk.bf16.vlgmr.msra.gmra.mrb[32].mxu0 %vm1079_vm1, %v1539_v26  ;;  %v1540_v38 = vpack.c.bf16 %v1295_v47, %v1294_v29  ;;  %v1265_v42 = vmul.f32 %v6823_v14, %v7909_v36  ;;  %v1563_v12 = vpack.c.bf16 %v6119_v52, %v6118_v48  ;;  %v923_v54 = vpop.f32.mrb[3].mxu0  ;;  %v1588_v47 = vld [vmem:[%s10029_s7 + $0x50] sm:$0xff] }
 0x257   : > { %v1296_v18 = vmul.f32 %v1264_v19, %v7506_v46  ;;  %v1562_v58 = vpack.c.bf16 %v923_v54, %v920_v55  ;;  %v1586_v19 = vld [vmem:[%s10029_s7 + $0x40] sm:$0xff] }
 0x258   : > { %6192 = vmatprep.mubr.msk.bf16.mxu0 %vm1079_vm1, %v1540_v38  ;;  %v1297_v11 = vmul.f32 %v1265_v42, %v7512_v50  ;;  %v1589_v38 = vld [vmem:[%s10029_s7 + $0x58] sm:$0xff] }
 0x259   : > { %6212 = vmatprep.subr.bf16.mxu0 %v1562_v58 }
 0x25a   : > { %v1541_v39 = vpack.c.bf16 %v1297_v11, %v1296_v18  ;;  %6213 = vmatpush3.bf16.msra.mxu0 %v1562_v58  ;;  %v6122_v45 = vpop.f32.mrb[4].mxu0 }
 0x25b   : > { %6214 = vmatprep.subr.bf16.mxu0 %v1563_v12  ;;  %v936_v36 = vpop.f32.mrb[5].mxu0 }
 0x25c   : > { %v6123_v34 = vpop.f32.mrb[6].mxu0 }
 0x25d   : > { %v1565_v24 = vpack.c.bf16 %v6123_v34, %v6122_v45  ;;  %v939_v46 = vpop.f32.mrb[7].mxu0  ;;  %v1592_v45 = vld [vmem:[%s10029_s7 + $0x70] sm:$0xff] }
 0x25e   : > { %6193 = vmatmul.mubr.msk.bf16.gmra.mrb[36].mxu0 %vm1079_vm1, %v1541_v39  ;;  %v1564_v20 = vpack.c.bf16 %v939_v46, %v936_v36  ;;  %v1587_v39 = vld [vmem:[%s10029_s7 + $0x48] sm:$0xff]  ;;  %v1593_v46 = vld [vmem:[%s10029_s7 + $0x78] sm:$0xff] }
 0x25f   : > { %6215 = vmatpush3.bf16.msra.mxu0 %v1563_v12 }
 0x260   : > { %6216 = vmatprep.subr.bf16.mxu0 %v1564_v20 }
 0x262   : > { %v6126_v50 = vpop.f32.mrb[8].mxu0 }
 0x263   : > { %6217 = vmatpush3.bf16.msra.mxu0 %v1564_v20  ;;  %v952_v7 = vpop.f32.mrb[9].mxu0 }
 0x264   : > { %6218 = vmatprep.subr.bf16.mxu0 %v1565_v24  ;;  %v6127_v8 = vpop.f32.mrb[10].mxu0 }
 0x265   : > { %v1567_v0 = vpack.c.bf16 %v6127_v8, %v6126_v50  ;;  %v955_v4 = vpop.f32.mrb[11].mxu0 }
 0x266   : > { %v1566_v13 = vpack.c.bf16 %v955_v4, %v952_v7 }
 0x267   : > { %6219 = vmatpush3.bf16.msra.mxu0 %v1565_v24  ;;  %v1590_v24 = vld [vmem:[%s10029_s7 + $0x60] sm:$0xff] }
 0x268   : > { %6228 = vmatprep.subr.bf16.mxu1 %v1566_v13 }
 0x269   : > { %6229 = vmatpush3.bf16.msra.mxu1 %v1566_v13 }
 0x26a   : > { %v6130_v59 = vpop.f32.mrb[12].mxu0  ;;  %6230 = vmatprep.subr.bf16.mxu1 %v1567_v0 }
 0x26b   : > { %v968_v21 = vpop.f32.mrb[13].mxu0 }
 0x26c   : > { %v6131_v23 = vpop.f32.mrb[14].mxu0 }
 0x26d   : > { %v1569_v35 = vpack.c.bf16 %v6131_v23, %v6130_v59  ;;  %v971_v63 = vpop.f32.mrb[15].mxu0  ;;  %6231 = vmatpush3.bf16.msra.mxu1 %v1567_v0  ;;  %v1591_v0 = vld [vmem:[%s10029_s7 + $0x68] sm:$0xff] }
 0x26e   : > { %v1568_v32 = vpack.c.bf16 %v971_v63, %v968_v21 }
 0x270   : > { %6232 = vmatprep.subr.bf16.mxu1 %v1568_v32 }
 0x271   : > { %6233 = vmatpush3.bf16.msra.mxu1 %v1568_v32 }
 0x272   : > { %v6134_v37 = vpop.f32.mrb[16].mxu0  ;;  %6234 = vmatprep.subr.bf16.mxu1 %v1569_v35 }
 0x273   : > { %v984_v6 = vpop.f32.mrb[17].mxu0 }
 0x274   : > { %v6135_v56 = vpop.f32.mrb[18].mxu0 }
 0x275   : > { %v8063_v22 = vpack.c.bf16 %v6135_v56, %v6134_v37  ;;  %v987_v25 = vpop.f32.mrb[19].mxu0  ;;  %6235 = vmatpush3.bf16.msra.mxu1 %v1569_v35  ;;  %v1604_v37 = vld [vmem:[%s10029_s7 + $0xd0] sm:$0xff]  ;;  %v1602_v56 = vld [vmem:[%s10029_s7 + $0xc0] sm:$0xff] }
 0x276   : > { %v8065_v62 = vpack.c.bf16 %v987_v25, %v984_v6  ;;  %v1605_v25 = vld [vmem:[%s10029_s7 + $0xd8] sm:$0xff] }
 0x278   : > { %6244 = vmatprep.subr.bf16.mxu0 %v8065_v62 }
 0x27a   : > { %v6138_v57 = vpop.f32.mrb[20].mxu0 }
 0x27b   : > { %v1000_v2 = vpop.f32.mrb[21].mxu0 }
 0x27c   : > { %v6139_v60 = vpop.f32.mrb[22].mxu0 }
 0x27d   : > { %v8068_v15 = vpack.c.bf16 %v6139_v60, %v6138_v57  ;;  %v1003_v51 = vpop.f32.mrb[23].mxu0 }
 0x27e   : > { %v8070_v16 = vpack.c.bf16 %v1003_v51, %v1000_v2  ;;  %v1603_v51 = vld [vmem:[%s10029_s7 + $0xc8] sm:$0xff] }
 0x282   : > { %v6142_v43 = vpop.f32.mrb[24].mxu0 }
 0x283   : > { %v1016_v53 = vpop.f32.mrb[25].mxu0 }
 0x284   : > { %v6143_v31 = vpop.f32.mrb[26].mxu0 }
 0x285   : > { %v8072_v27 = vpack.c.bf16 %v6143_v31, %v6142_v43  ;;  %v1019_v17 = vpop.f32.mrb[27].mxu0 }
 0x286   : > { %v8074_v9 = vpack.c.bf16 %v1019_v17, %v1016_v53 }
 0x288   : > { %6260 = vmatprep.subr.bf16.mxu1 %v8074_v9 }
 0x28a   : > { %v6146_v1 = vpop.f32.mrb[28].mxu0 }
 0x28b   : > { %v1032_v10 = vpop.f32.mrb[29].mxu0 }
 0x28c   : > { %v6147_v49 = vpop.f32.mrb[30].mxu0 }
 0x28d   : > { %v8077_v61 = vpack.c.bf16 %v6147_v49, %v6146_v1  ;;  %v1035_v5 = vpop.f32.mrb[31].mxu0  ;;  %v1608_v49 = vld [vmem:[%s10029_s7 + $0xf0] sm:$0xff] }
 0x28e   : > { %v8079_v3 = vpack.c.bf16 %v1035_v5, %v1032_v10 }
 0x2d4   : > { %v8081_v41 = vpop.f32.mrb[64].mxu1 }
 0x2d5   : > { %v8083_v33 = vpop.f32.mrb[65].mxu1 }
 0x2d6   : > { %v8085_v40 = vpop.f32.mrb[66].mxu1 }
 0x2d7   : > { %v8087_v30 = vpop.f32.mrb[67].mxu1 }
 0x2dc   : > { %v8089_v44 = vpop.f32.mrb[68].mxu1 }
 0x2dd   : > { %v8091_v29 = vpop.f32.mrb[69].mxu1 }
 0x2de   : > { %v8093_v28 = vpop.f32.mrb[70].mxu1 }
 0x2df   : > { %v8095_v26 = vpop.f32.mrb[71].mxu1 }
 0x2f4   : > { %v6174_v14 = vpop.f32.mrb[72].mxu1 }
 0x2f5   : > { %v8106_v42 = vadd.f32 %v6174_v14, %v1588_v47  ;;  %v1757_v18 = vpop.f32.mrb[73].mxu1  ;;  %v1606_v14 = vld [vmem:[%s10029_s7 + $0xe0] sm:$0xff] }
 0x2f6   : > { %v6175_v11 = vpop.f32.mrb[74].mxu1  ;;  %v8111_v48 = vadd.f32 %v1757_v18, %v1586_v19  ;;  %v1609_v19 = vld [vmem:[%s10029_s7 + $0xf8] sm:$0xff] }
 0x2f7   : > { %v8113_v55 = vadd.f32 %v6175_v11, %v1589_v38  ;;  %v1760_v52 = vpop.f32.mrb[75].mxu1  ;;  %v1997_v12 = vsel %vm1966_vm2, %v8106_v42, -inf }
 0x2f8   : > { %1998 = vmax.xlane.f32.xlu0 %v1997_v12  ;;  %v8117_v54 = vadd.f32 %v1760_v52, %v1587_v39  ;;  %v1991_v36 = vsel %vm1966_vm2, %v8111_v48, -inf  ;;  %v1607_v52 = vld [vmem:[%s10029_s7 + $0xe8] sm:$0xff] }
 0x2f9   : > { %v2000_v58 = vsel %vm1966_vm2, %v8113_v55, -inf }
 0x2fa   : > { %2001 = vmax.xlane.f32.xlu1 %v2000_v58  ;;  %v1994_v7 = vsel %vm1966_vm2, %v8117_v54, -inf }
 0x2fc   : > { %1992 = vmax.xlane.f32.xlu0 %v1991_v36  ;;  %v6178_v34 = vpop.f32.mrb[76].mxu1 }
 0x2fd   : > { %v8132_v20 = vadd.f32 %v6178_v34, %v1592_v45  ;;  %v1773_v50 = vpop.f32.mrb[77].mxu1  ;;  %v1578_v34 = vld [vmem:[%s10029_s7] sm:$0xff] }
 0x2fe   : > { %1995 = vmax.xlane.f32.xlu1 %v1994_v7  ;;  %v6179_v8 = vpop.f32.mrb[78].mxu1  ;;  %v8139_v4 = vadd.f32 %v1773_v50, %v1590_v24  ;;  %v1579_v50 = vld [vmem:[%s10029_s7 + $0x8] sm:$0xff]  ;;  %v8212_v7 = vadd.f32 %v8083_v33, %v1578_v34  ;;  %v1597_v34 = vld [vmem:[%s10029_s7 + $0x98] sm:$0xff] }
 0x2ff   : > { %v8141_v13 = vadd.f32 %v6179_v8, %v1593_v46  ;;  %v1776_v59 = vpop.f32.mrb[79].mxu1  ;;  %v2009_v21 = vsel %vm1966_vm2, %v8132_v20, -inf }
 0x300   : > { %2010 = vmax.xlane.f32.xlu0 %v2009_v21  ;;  %v8145_v23 = vadd.f32 %v1776_v59, %v1591_v0  ;;  %v2003_v63 = vsel %vm1966_vm2, %v8139_v4, -inf  ;;  %v1580_v0 = vld [vmem:[%s10029_s7 + $0x10] sm:$0xff]  ;;  %v8220_v59 = vadd.f32 %v8087_v30, %v1579_v50 }
 0x301   : > { %v2012_v35 = vsel %vm1966_vm2, %v8141_v13, -inf  ;;  %v8228_v33 = vadd.f32 %v8081_v41, %v1580_v0  ;;  %v1583_v41 = vld [vmem:[%s10029_s7 + $0x28] sm:$0xff] }
 0x302   : > { %2013 = vmax.xlane.f32.xlu1 %v2012_v35  ;;  %v2006_v32 = vsel %vm1966_vm2, %v8145_v23, -inf  ;;  %v1581_v35 = vld [vmem:[%s10029_s7 + $0x18] sm:$0xff] }
 0x303   : > { %v8236_v30 = vadd.f32 %v8085_v40, %v1581_v35  ;;  %v1584_v40 = vld [vmem:[%s10029_s7 + $0x30] sm:$0xff]  ;;  %v1599_v35 = vld [vmem:[%s10029_s7 + $0xa8] sm:$0xff] }
 0x304   : > { %2004 = vmax.xlane.f32.xlu0 %v2003_v63  ;;  %v1967_v63 = vsel %vm1966_vm2, %v8212_v7, -inf }
 0x306   : > { %2007 = vmax.xlane.f32.xlu1 %v2006_v32  ;;  %v1582_v32 = vld [vmem:[%s10029_s7 + $0x20] sm:$0xff] }
 0x314   : > { %v6206_v6 = vpop.f32.mrb[80].mxu1 }
 0x315   : > { %v8162_v57 = vadd.f32 %v6206_v6, %v1604_v37  ;;  %v1935_v2 = vpop.f32.mrb[81].mxu1  ;;  %v1970_v6 = vsel %vm1966_vm2, %v8220_v59, -inf }
 0x316   : > { %v6207_v60 = vpop.f32.mrb[82].mxu1  ;;  %v8167_v43 = vadd.f32 %v1935_v2, %v1602_v56 }
 0x317   : > { %v8169_v53 = vadd.f32 %v6207_v60, %v1605_v25  ;;  %v1938_v31 = vpop.f32.mrb[83].mxu1  ;;  %v2045_v17 = vsel %vm1966_vm2, %v8162_v57, -inf  ;;  %v8244_v25 = vadd.f32 %v8091_v29, %v1582_v32  ;;  %v1973_v60 = vsel %vm1966_vm2, %v8228_v33, -inf  ;;  %v1585_v29 = vld [vmem:[%s10029_s7 + $0x38] sm:$0xff] }
 0x318   : > { %2046 = vmax.xlane.f32.xlu0 %v2045_v17  ;;  %v8173_v1 = vadd.f32 %v1938_v31, %v1603_v51  ;;  %v2039_v5 = vsel %vm1966_vm2, %v8167_v43, -inf  ;;  %v8252_v31 = vadd.f32 %v8095_v26, %v1583_v41  ;;  %v1976_v17 = vsel %vm1966_vm2, %v8236_v30, -inf }
 0x319   : > { %v2048_v10 = vsel %vm1966_vm2, %v8169_v53, -inf  ;;  %v8268_v26 = vadd.f32 %v8093_v28, %v1585_v29  ;;  %v1596_v28 = vld [vmem:[%s10029_s7 + $0x90] sm:$0xff] }
 0x31a   : > { %2049 = vmax.xlane.f32.xlu1 %v2048_v10  ;;  %v2042_v11 = vsel %vm1966_vm2, %v8173_v1, -inf  ;;  %v8260_v10 = vadd.f32 %v8089_v44, %v1584_v40  ;;  %v1595_v44 = vld [vmem:[%s10029_s7 + $0x88] sm:$0xff] }
 0x31c   : > { %2040 = vmax.xlane.f32.xlu0 %v2039_v5  ;;  %v6210_v47 = vpop.f32.mrb[84].mxu1  ;;  %v1594_v5 = vld [vmem:[%s10029_s7 + $0x80] sm:$0xff] }
 0x31d   : > { %v8188_v38 = vadd.f32 %v6210_v47, %v1608_v49  ;;  %v1951_v18 = vpop.f32.mrb[85].mxu1  ;;  %v1979_v49 = vsel %vm1966_vm2, %v8244_v25, -inf }
 0x31e   : > { %2043 = vmax.xlane.f32.xlu1 %v2042_v11  ;;  %v6211_v39 = vpop.f32.mrb[86].mxu1  ;;  %v8195_v12 = vadd.f32 %v1951_v18, %v1606_v14  ;;  %v1982_v14 = vsel %vm1966_vm2, %v8252_v31, -inf }
 0x31f   : > { %v8197_v58 = vadd.f32 %v6211_v39, %v1609_v19  ;;  %v1954_v45 = vpop.f32.mrb[87].mxu1  ;;  %v2057_v36 = vsel %vm1966_vm2, %v8188_v38, -inf  ;;  %v1985_v39 = vsel %vm1966_vm2, %v8260_v10, -inf }
 0x320   : > { %2058 = vmax.xlane.f32.xlu0 %v2057_v36  ;;  %v8204_v24 = vadd.f32 %v1954_v45, %v1607_v52  ;;  %v2051_v8 = vsel %vm1966_vm2, %v8195_v12, -inf  ;;  %v1988_v36 = vsel %vm1966_vm2, %v8268_v26, -inf }
 0x321   : > { %v2060_v46 = vsel %vm1966_vm2, %v8197_v58, -inf }
 0x322   : > { %2061 = vmax.xlane.f32.xlu1 %v2060_v46  ;;  %v2054_v21 = vsel %vm1966_vm2, %v8204_v24, -inf }
 0x324   : > { %2052 = vmax.xlane.f32.xlu0 %v2051_v8  ;;  %v1598_v8 = vld [vmem:[%s10029_s7 + $0xa0] sm:$0xff] }
 0x326   : > { %2055 = vmax.xlane.f32.xlu1 %v2054_v21 }
 0x328   : > { %1968 = vmax.xlane.f32.xlu0 %v1967_v63 }
 0x329   : > { %v6190_v37 = vpop.f32.mrb[32].mxu0 }
 0x32a   : > { %1971 = vmax.xlane.f32.xlu1 %v1970_v6  ;;  %v1846_v56 = vpop.f32.mrb[33].mxu0  ;;  %v8289_v46 = vadd.f32 %v6190_v37, %v1596_v28  ;;  %v1600_v37 = vld [vmem:[%s10029_s7 + $0xb0] sm:$0xff] }
 0x32b   : > { %v6191_v2 = vpop.f32.mrb[34].mxu0  ;;  %v8275_v18 = vadd.f32 %v1846_v56, %v1594_v5  ;;  %v1601_v56 = vld [vmem:[%s10029_s7 + $0xb8] sm:$0xff] }
 0x32c   : > { %1974 = vmax.xlane.f32.xlu0 %v1973_v60  ;;  %v1849_v51 = vpop.f32.mrb[35].mxu0  ;;  %v8296_v0 = vadd.f32 %v6191_v2, %v1597_v34  ;;  %v2021_v32 = vsel %vm1966_vm2, %v8289_v46, -inf }
 0x32d   : > { %v8282_v45 = vadd.f32 %v1849_v51, %v1595_v44  ;;  %v2015_v50 = vsel %vm1966_vm2, %v8275_v18, -inf }
 0x32e   : > { %1977 = vmax.xlane.f32.xlu1 %v1976_v17  ;;  %v2024_v41 = vsel %vm1966_vm2, %v8296_v0, -inf }
 0x32f   : > { %v2018_v21 = vsel %vm1966_vm2, %v8282_v45, -inf }
 0x330   : > { %1980 = vmax.xlane.f32.xlu0 %v1979_v49 }
 0x331   : > { %v6194_v47 = vpop.f32.mrb[36].mxu0 }
 0x332   : > { %1983 = vmax.xlane.f32.xlu1 %v1982_v14  ;;  %v1862_v19 = vpop.f32.mrb[37].mxu0  ;;  %v8317_v2 = vadd.f32 %v6194_v47, %v1600_v37 }
 0x333   : > { %v6195_v11 = vpop.f32.mrb[38].mxu0  ;;  %v8303_v63 = vadd.f32 %v1862_v19, %v1598_v8 }
 0x334   : > { %1986 = vmax.xlane.f32.xlu0 %v1985_v39  ;;  %v1865_v52 = vpop.f32.mrb[39].mxu0  ;;  %v8321_v40 = vadd.f32 %v6195_v11, %v1601_v56  ;;  %v2033_v17 = vsel %vm1966_vm2, %v8317_v2, -inf }
 0x335   : > { %v8310_v6 = vadd.f32 %v1865_v52, %v1599_v35  ;;  %v2027_v60 = vsel %vm1966_vm2, %v8303_v63, -inf }
 0x336   : > { %1989 = vmax.xlane.f32.xlu1 %v1988_v36  ;;  %v2036_v29 = vsel %vm1966_vm2, %v8321_v40, -inf }
 0x337   : > { %v2030_v51 = vsel %vm1966_vm2, %v8310_v6, -inf }
 0x338   : > { %2016 = vmax.xlane.f32.xlu0 %v2015_v50 }
 0x33a   : > { %2019 = vmax.xlane.f32.xlu1 %v2018_v21 }
 0x33c   : > { %2022 = vmax.xlane.f32.xlu0 %v2021_v32 }
 0x33e   : > { %2025 = vmax.xlane.f32.xlu1 %v2024_v41 }
 0x340   : > { %2028 = vmax.xlane.f32.xlu0 %v2027_v60 }
 0x342   : > { %2031 = vmax.xlane.f32.xlu1 %v2030_v51 }
 0x344   : > { %2034 = vmax.xlane.f32.xlu0 %v2033_v17 }
 0x346   : > { %2037 = vmax.xlane.f32.xlu1 %v2036_v29 }
 0x385   : > { %v1999_v49 = vpop.xlane.xlu0 %1998 }
 0x386   : > { %v2073_v5 = vsub.f32 %v8106_v42, %v1999_v49 }
 0x387   : > { %v2002_v47 = vpop.xlane.xlu1 %2001 }
 0x388   : > { %v2115_v14 = vmul.f32 1.442695, %v2073_v5  ;;  %v2074_v44 = vsub.f32 %v8113_v55, %v2002_v47 }
 0x389   : > { %v1993_v19 = vpop.xlane.xlu0 %1992 }
 0x38a   : > { %6824 = vpow2.f32 %v2115_v14  ;;  %v2117_v11 = vmul.f32 1.442695, %v2074_v44  ;;  %v2071_v39 = vsub.f32 %v8111_v48, %v1993_v19 }
 0x38b   : > { %v1996_v28 = vpop.xlane.xlu1 %1995 }
 0x38c   : > { %6826 = vpow2.f32 %v2117_v11  ;;  %v2111_v52 = vmul.f32 1.442695, %v2071_v39  ;;  %v2072_v36 = vsub.f32 %v8117_v54, %v1996_v28 }
 0x38d   : > { %v2011_v34 = vpop.xlane.xlu0 %2010 }
 0x38e   : > { %6828 = vpow2.f32 %v2111_v52  ;;  %v2113_v50 = vmul.f32 1.442695, %v2072_v36  ;;  %v2077_v8 = vsub.f32 %v8132_v20, %v2011_v34 }
 0x38f   : > { %v2014_v42 = vpop.xlane.xlu1 %2013 }
 0x390   : > { %6830 = vpow2.f32 %v2113_v50  ;;  %v2123_v21 = vmul.f32 1.442695, %v2077_v8  ;;  %v2078_v55 = vsub.f32 %v8141_v13, %v2014_v42 }
 0x391   : > { %v2005_v35 = vpop.xlane.xlu0 %2004 }
 0x392   : > { %6832 = vpow2.f32 %v2123_v21  ;;  %v2125_v32 = vmul.f32 1.442695, %v2078_v55  ;;  %v2075_v48 = vsub.f32 %v8139_v4, %v2005_v35 }
 0x393   : > { %v2008_v37 = vpop.xlane.xlu1 %2007 }
 0x394   : > { %v8336_v41 = vpop.eup %6824  ;;  %6834 = vpow2.f32 %v2125_v32  ;;  %v2119_v54 = vmul.f32 1.442695, %v2075_v48  ;;  %v2076_v56 = vsub.f32 %v8145_v23, %v2008_v37 }
 0x395   : > { %v2189_v20 = vsel %vm1966_vm2, %v8336_v41, 0.0 }
 0x396   : > { %v8341_v60 = vpop.eup %6826  ;;  %6836 = vpow2.f32 %v2119_v54  ;;  %v2121_v51 = vmul.f32 1.442695, %v2076_v56  ;;  %2190 = vadd.xlane.f32.xlu0 %v2189_v20 }
 0x397   : > { %v2192_v13 = vsel %vm1966_vm2, %v8341_v60, 0.0 }
 0x398   : > { %v8345_v17 = vpop.eup %6828  ;;  %6838 = vpow2.f32 %v2121_v51  ;;  %2193 = vadd.xlane.f32.xlu1 %v2192_v13 }
 0x399   : > { %v2183_v4 = vsel %vm1966_vm2, %v8345_v17, 0.0 }
 0x39a   : > { %v8349_v29 = vpop.eup %6830  ;;  %2184 = vadd.xlane.f32.xlu0 %v2183_v4 }
 0x39b   : > { %v2186_v23 = vsel %vm1966_vm2, %v8349_v29, 0.0 }
 0x39c   : > { %v8353_v49 = vpop.eup %6832  ;;  %2187 = vadd.xlane.f32.xlu1 %v2186_v23 }
 0x39d   : > { %v2201_v5 = vsel %vm1966_vm2, %v8353_v49, 0.0 }
 0x39e   : > { %v8357_v47 = vpop.eup %6834  ;;  %2202 = vadd.xlane.f32.xlu0 %v2201_v5 }
 0x39f   : > { %v2204_v14 = vsel %vm1966_vm2, %v8357_v47, 0.0 }
 0x3a0   : > { %v8361_v44 = vpop.eup %6836  ;;  %2205 = vadd.xlane.f32.xlu1 %v2204_v14 }
 0x3a1   : > { %v2195_v19 = vsel %vm1966_vm2, %v8361_v44, 0.0 }
 0x3a2   : > { %v8365_v11 = vpop.eup %6838  ;;  %2196 = vadd.xlane.f32.xlu0 %v2195_v19 }
 0x3a3   : > { %v2198_v39 = vsel %vm1966_vm2, %v8365_v11, 0.0 }
 0x3a4   : > { %2199 = vadd.xlane.f32.xlu1 %v2198_v39 }
 0x3a5   : > { %v2047_v28 = vpop.xlane.xlu0 %2046 }
 0x3a6   : > { %v2089_v52 = vsub.f32 %v8162_v57, %v2047_v28 }
 0x3a7   : > { %v2050_v36 = vpop.xlane.xlu1 %2049 }
 0x3a8   : > { %v2147_v34 = vmul.f32 1.442695, %v2089_v52  ;;  %v2090_v50 = vsub.f32 %v8169_v53, %v2050_v36 }
 0x3a9   : > { %v2041_v8 = vpop.xlane.xlu0 %2040 }
 0x3aa   : > { %6840 = vpow2.f32 %v2147_v34  ;;  %v2149_v42 = vmul.f32 1.442695, %v2090_v50  ;;  %v2087_v21 = vsub.f32 %v8167_v43, %v2041_v8 }
 0x3ab   : > { %v2044_v55 = vpop.xlane.xlu1 %2043 }
 0x3ac   : > { %6842 = vpow2.f32 %v2149_v42  ;;  %v2143_v35 = vmul.f32 1.442695, %v2087_v21  ;;  %v2088_v32 = vsub.f32 %v8173_v1, %v2044_v55 }
 0x3ad   : > { %v2059_v48 = vpop.xlane.xlu0 %2058 }
 0x3ae   : > { %6844 = vpow2.f32 %v2143_v35  ;;  %v2145_v37 = vmul.f32 1.442695, %v2088_v32  ;;  %v2093_v54 = vsub.f32 %v8188_v38, %v2059_v48 }
 0x3af   : > { %v2062_v57 = vpop.xlane.xlu1 %2061 }
 0x3b0   : > { %6846 = vpow2.f32 %v2145_v37  ;;  %v2155_v56 = vmul.f32 1.442695, %v2093_v54  ;;  %v2094_v53 = vsub.f32 %v8197_v58, %v2062_v57 }
 0x3b1   : > { %v2053_v20 = vpop.xlane.xlu0 %2052 }
 0x3b2   : > { %6848 = vpow2.f32 %v2155_v56  ;;  %v2157_v51 = vmul.f32 1.442695, %v2094_v53  ;;  %v2091_v43 = vsub.f32 %v8195_v12, %v2053_v20 }
 0x3b3   : > { %v2056_v13 = vpop.xlane.xlu1 %2055 }
 0x3b4   : > { %v8376_v4 = vpop.eup %6840  ;;  %6850 = vpow2.f32 %v2157_v51  ;;  %v2151_v1 = vmul.f32 1.442695, %v2091_v43  ;;  %v2092_v23 = vsub.f32 %v8204_v24, %v2056_v13 }
 0x3b5   : > { %v1969_v5 = vpop.xlane.xlu0 %1968  ;;  %v2237_v38 = vsel %vm1966_vm2, %v8376_v4, 0.0 }
 0x3b6   : > { %v8381_v14 = vpop.eup %6842  ;;  %6852 = vpow2.f32 %v2151_v1  ;;  %v2153_v58 = vmul.f32 1.442695, %v2092_v23  ;;  %v2063_v19 = vsub.f32 %v8212_v7, %v1969_v5  ;;  %2238 = vadd.xlane.f32.xlu0 %v2237_v38 }
 0x3b7   : > { %v1972_v39 = vpop.xlane.xlu1 %1971  ;;  %v2240_v12 = vsel %vm1966_vm2, %v8381_v14, 0.0 }
 0x3b8   : > { %v8386_v28 = vpop.eup %6844  ;;  %6854 = vpow2.f32 %v2153_v58  ;;  %v2095_v52 = vmul.f32 1.442695, %v2063_v19  ;;  %v2064_v24 = vsub.f32 %v8220_v59, %v1972_v39  ;;  %2241 = vadd.xlane.f32.xlu1 %v2240_v12 }
 0x3b9   : > { %v1975_v36 = vpop.xlane.xlu0 %1974  ;;  %v2231_v34 = vsel %vm1966_vm2, %v8386_v28, 0.0 }
 0x3ba   : > { %v8391_v50 = vpop.eup %6846  ;;  %6856 = vpow2.f32 %v2095_v52  ;;  %v2097_v7 = vmul.f32 1.442695, %v2064_v24  ;;  %v2065_v8 = vsub.f32 %v8228_v33, %v1975_v36  ;;  %2232 = vadd.xlane.f32.xlu0 %v2231_v34 }
 0x3bb   : > { %v1978_v42 = vpop.xlane.xlu1 %1977  ;;  %v2234_v21 = vsel %vm1966_vm2, %v8391_v50, 0.0 }
 0x3bc   : > { %v8396_v55 = vpop.eup %6848  ;;  %6858 = vpow2.f32 %v2097_v7  ;;  %v2099_v59 = vmul.f32 1.442695, %v2065_v8  ;;  %v2066_v35 = vsub.f32 %v8236_v30, %v1978_v42  ;;  %2235 = vadd.xlane.f32.xlu1 %v2234_v21 }
 0x3bd   : > { %v1981_v32 = vpop.xlane.xlu0 %1980  ;;  %v2249_v48 = vsel %vm1966_vm2, %v8396_v55, 0.0 }
 0x3be   : > { %v8401_v37 = vpop.eup %6850  ;;  %6860 = vpow2.f32 %v2099_v59  ;;  %v2101_v33 = vmul.f32 1.442695, %v2066_v35  ;;  %v2067_v54 = vsub.f32 %v8244_v25, %v1981_v32  ;;  %2250 = vadd.xlane.f32.xlu0 %v2249_v48 }
 0x3bf   : > { %v1984_v57 = vpop.xlane.xlu1 %1983  ;;  %v2252_v56 = vsel %vm1966_vm2, %v8401_v37, 0.0 }
 0x3c0   : > { %v8406_v53 = vpop.eup %6852  ;;  %6862 = vpow2.f32 %v2101_v33  ;;  %v2103_v30 = vmul.f32 1.442695, %v2067_v54  ;;  %v2068_v20 = vsub.f32 %v8252_v31, %v1984_v57  ;;  %2253 = vadd.xlane.f32.xlu1 %v2252_v56 }
 0x3c1   : > { %v1987_v51 = vpop.xlane.xlu0 %1986  ;;  %v2243_v43 = vsel %vm1966_vm2, %v8406_v53, 0.0 }
 0x3c2   : > { %v8411_v13 = vpop.eup %6854  ;;  %6864 = vpow2.f32 %v2103_v30  ;;  %v2105_v25 = vmul.f32 1.442695, %v2068_v20  ;;  %v2069_v1 = vsub.f32 %v8260_v10, %v1987_v51  ;;  %2244 = vadd.xlane.f32.xlu0 %v2243_v43 }
 0x3c3   : > { %v1990_v23 = vpop.xlane.xlu1 %1989  ;;  %v2246_v5 = vsel %vm1966_vm2, %v8411_v13, 0.0 }
 0x3c4   : > { %v8416_v38 = vpop.eup %6856  ;;  %6866 = vpow2.f32 %v2105_v25  ;;  %v2107_v31 = vmul.f32 1.442695, %v2069_v1  ;;  %v2070_v58 = vsub.f32 %v8268_v26, %v1990_v23  ;;  %2247 = vadd.xlane.f32.xlu1 %v2246_v5 }
 0x3c5   : > { %v2017_v19 = vpop.xlane.xlu0 %2016  ;;  %v2159_v39 = vsel %vm1966_vm2, %v8416_v38, 0.0 }
 0x3c6   : > { %v8421_v12 = vpop.eup %6858  ;;  %6868 = vpow2.f32 %v2107_v31  ;;  %v2109_v10 = vmul.f32 1.442695, %v2070_v58  ;;  %v2079_v52 = vsub.f32 %v8275_v18, %v2017_v19  ;;  %2160 = vadd.xlane.f32.xlu0 %v2159_v39 }
 0x3c7   : > { %v2020_v24 = vpop.xlane.xlu1 %2019  ;;  %v2162_v36 = vsel %vm1966_vm2, %v8421_v12, 0.0 }
 0x3c8   : > { %v8426_v34 = vpop.eup %6860  ;;  %6870 = vpow2.f32 %v2109_v10  ;;  %v2127_v26 = vmul.f32 1.442695, %v2079_v52  ;;  %v2080_v7 = vsub.f32 %v8282_v45, %v2020_v24  ;;  %2163 = vadd.xlane.f32.xlu1 %v2162_v36 }
 0x3c9   : > { %v2023_v8 = vpop.xlane.xlu0 %2022  ;;  %v2165_v42 = vsel %vm1966_vm2, %v8426_v34, 0.0 }
 0x3ca   : > { %v8431_v21 = vpop.eup %6862  ;;  %6872 = vpow2.f32 %v2127_v26  ;;  %v2129_v18 = vmul.f32 1.442695, %v2080_v7  ;;  %v2081_v59 = vsub.f32 %v8289_v46, %v2023_v8  ;;  %2166 = vadd.xlane.f32.xlu0 %v2165_v42 }
 0x3cb   : > { %v2026_v35 = vpop.xlane.xlu1 %2025  ;;  %v2168_v32 = vsel %vm1966_vm2, %v8431_v21, 0.0 }
 0x3cc   : > { %v8436_v48 = vpop.eup %6864  ;;  %6874 = vpow2.f32 %v2129_v18  ;;  %v2131_v45 = vmul.f32 1.442695, %v2081_v59  ;;  %v2082_v33 = vsub.f32 %v8296_v0, %v2026_v35  ;;  %2169 = vadd.xlane.f32.xlu1 %v2168_v32 }
 0x3cd   : > { %v2029_v54 = vpop.xlane.xlu0 %2028  ;;  %v2171_v57 = vsel %vm1966_vm2, %v8436_v48, 0.0 }
 0x3ce   : > { %v8441_v56 = vpop.eup %6866  ;;  %6876 = vpow2.f32 %v2131_v45  ;;  %v2133_v46 = vmul.f32 1.442695, %v2082_v33  ;;  %v2083_v30 = vsub.f32 %v8303_v63, %v2029_v54  ;;  %2172 = vadd.xlane.f32.xlu0 %v2171_v57 }
 0x3cf   : > { %v2032_v20 = vpop.xlane.xlu1 %2031  ;;  %v2174_v51 = vsel %vm1966_vm2, %v8441_v56, 0.0 }
 0x3d0   : > { %v8446_v43 = vpop.eup %6868  ;;  %6878 = vpow2.f32 %v2133_v46  ;;  %v2135_v0 = vmul.f32 1.442695, %v2083_v30  ;;  %v2084_v25 = vsub.f32 %v8310_v6, %v2032_v20  ;;  %2175 = vadd.xlane.f32.xlu1 %v2174_v51 }
 0x3d1   : > { %v2035_v1 = vpop.xlane.xlu0 %2034  ;;  %v2177_v23 = vsel %vm1966_vm2, %v8446_v43, 0.0 }
 0x3d2   : > { %v8451_v5 = vpop.eup %6870  ;;  %6880 = vpow2.f32 %v2135_v0  ;;  %v2137_v63 = vmul.f32 1.442695, %v2084_v25  ;;  %v2085_v31 = vsub.f32 %v8317_v2, %v2035_v1  ;;  %2178 = vadd.xlane.f32.xlu0 %v2177_v23 }
 0x3d3   : > { %v2038_v58 = vpop.xlane.xlu1 %2037  ;;  %v2180_v19 = vsel %vm1966_vm2, %v8451_v5, 0.0 }
 0x3d4   : > { %v8456_v39 = vpop.eup %6872  ;;  %6882 = vpow2.f32 %v2137_v63  ;;  %v2139_v6 = vmul.f32 1.442695, %v2085_v31  ;;  %v2086_v10 = vsub.f32 %v8321_v40, %v2038_v58  ;;  %2181 = vadd.xlane.f32.xlu1 %v2180_v19 }
 0x3d5   : > { %v2207_v52 = vsel %vm1966_vm2, %v8456_v39, 0.0 }
 0x3d6   : > { %v8461_v24 = vpop.eup %6874  ;;  %6884 = vpow2.f32 %v2139_v6  ;;  %v2141_v36 = vmul.f32 1.442695, %v2086_v10  ;;  %2208 = vadd.xlane.f32.xlu0 %v2207_v52 }
 0x3d7   : > { %v2210_v2 = vsel %vm1966_vm2, %v8461_v24, 0.0 }
 0x3d8   : > { %v8465_v26 = vpop.eup %6876  ;;  %6886 = vpow2.f32 %v2141_v36  ;;  %2211 = vadd.xlane.f32.xlu1 %v2210_v2 }
 0x3d9   : > { %v2213_v7 = vsel %vm1966_vm2, %v8465_v26, 0.0 }
 0x3da   : > { %v8469_v40 = vpop.eup %6878  ;;  %2214 = vadd.xlane.f32.xlu0 %v2213_v7 }
 0x3db   : > { %v2216_v8 = vsel %vm1966_vm2, %v8469_v40, 0.0 }
 0x3dc   : > { %v8473_v42 = vpop.eup %6880  ;;  %2217 = vadd.xlane.f32.xlu1 %v2216_v8 }
 0x3dd   : > { %v2219_v18 = vsel %vm1966_vm2, %v8473_v42, 0.0 }
 0x3de   : > { %v8477_v59 = vpop.eup %6882  ;;  %2220 = vadd.xlane.f32.xlu0 %v2219_v18 }
 0x3df   : > { %v2222_v35 = vsel %vm1966_vm2, %v8477_v59, 0.0 }
 0x3e0   : > { %v8481_v32 = vpop.eup %6884  ;;  %2223 = vadd.xlane.f32.xlu1 %v2222_v35 }
 0x3e1   : > { %v2225_v45 = vsel %vm1966_vm2, %v8481_v32, 0.0 }
 0x3e2   : > { %v8485_v33 = vpop.eup %6886  ;;  %2226 = vadd.xlane.f32.xlu0 %v2225_v45 }
 0x3e3   : > { %v2228_v54 = vsel %vm1966_vm2, %v8485_v33, 0.0 }
 0x3e4   : > { %2229 = vadd.xlane.f32.xlu1 %v2228_v54 }
 0x423   : > { %v2191_v57 = vpop.xlane.xlu0 %2190 }
 0x425   : > { %v2194_v46 = vpop.xlane.xlu1 %2193 }
 0x426   : > { %6888 = vrcp.f32 %v2194_v46 }
 0x427   : > { %v2185_v30 = vpop.xlane.xlu0 %2184 }
 0x428   : > { %6890 = vrcp.f32 %v2185_v30 }
 0x429   : > { %6892 = vrcp.f32 %v2191_v57  ;;  %v2188_v20 = vpop.xlane.xlu1 %2187 }
 0x42a   : > { %6894 = vrcp.f32 %v2188_v20 }
 0x42b   : > { %v2203_v51 = vpop.xlane.xlu0 %2202 }
 0x42d   : > { %v2206_v0 = vpop.xlane.xlu1 %2205 }
 0x42e   : > { %6896 = vrcp.f32 %v2206_v0 }
 0x42f   : > { %v2197_v25 = vpop.xlane.xlu0 %2196 }
 0x430   : > { %6898 = vrcp.f32 %v2197_v25  ;;  %v6889_v1 = vpop.eup %6888 }
 0x431   : > { %6900 = vrcp.f32 %v2203_v51  ;;  %v2200_v23 = vpop.xlane.xlu1 %2199  ;;  %v2298_v19 = vmul.f32 %v6889_v1, %v8341_v60 }
 0x432   : > { %v6891_v63 = vpop.eup %6890  ;;  %6902 = vrcp.f32 %v2200_v23 }
 0x433   : > { %v6893_v31 = vpop.eup %6892  ;;  %v2295_v6 = vmul.f32 %v6891_v63, %v8345_v17 }
 0x434   : > { %v6895_v58 = vpop.eup %6894  ;;  %v2297_v52 = vmul.f32 %v6893_v31, %v8336_v41 }
 0x435   : > { %v2296_v10 = vmul.f32 %v6895_v58, %v8349_v29 }
 0x436   : > { %v2324_v2 = vpack.c.bf16 %v2298_v19, %v2297_v52 }
 0x437   : > { %v2323_v36 = vpack.c.bf16 %v2296_v10, %v2295_v6  ;;  %v6691_v10 = vld [vmem:[%s10024_s2 + $0x18] sm:$0xff]  }
 0x438   : > { %v6897_v7 = vpop.eup %6896 }
 0x439   : > { %6236 = vmatprep.mubr.msk.bf16.mxu1 %vm1966_vm2, %v2323_v36  ;;  %v2302_v60 = vmul.f32 %v6897_v7, %v8357_v47  ;;  %v6690_v47 = vld [vmem:[%s10024_s2 + $0x10] sm:$0xff]  }
 0x43a   : > { %v6899_v8 = vpop.eup %6898  ;;  %6237 = vmatmul.mubr.msk.bf16.vlgmr.msra.gmra.mrb[88].mxu1 %vm1966_vm2, %v2324_v2 }
 0x43b   : > { %v6901_v18 = vpop.eup %6900  ;;  %6261 = vmatpush3.bf16.msra.mxu1 %v8074_v9  ;;  %v2299_v17 = vmul.f32 %v6899_v8, %v8361_v44 }
 0x43c   : > { %v6903_v35 = vpop.eup %6902  ;;  %6262 = vmatprep.subr.bf16.mxu1 %v8072_v27  ;;  %v2301_v29 = vmul.f32 %v6901_v18, %v8353_v49 }
 0x43d   : > { %v2300_v41 = vmul.f32 %v6903_v35, %v8365_v11 }
 0x43e   : > { %v2326_v54 = vpack.c.bf16 %v2302_v60, %v2301_v29 }
 0x43f   : > { %6263 = vmatpush3.bf16.msra.mxu1 %v8072_v27  ;;  %v2325_v45 = vpack.c.bf16 %v2300_v41, %v2299_v17 }
 0x440   : > { %6264 = vmatprep.subr.bf16.mxu1 %v8079_v3 }
 0x441   : > { %6240 = vmatprep.mubr.msk.bf16.mxu1 %vm1966_vm2, %v2325_v45 }
 0x442   : > { %6241 = vmatmul.mubr.msk.bf16.gmra.mrb[92].mxu1 %vm1966_vm2, %v2326_v54 }
 0x443   : > { %6265 = vmatpush3.bf16.msra.mxu1 %v8079_v3  ;;  %v2239_v9 = vpop.xlane.xlu0 %2238 }
 0x444   : > { %6266 = vmatprep.subr.bf16.mxu1 %v8077_v61 }
 0x445   : > { %v2242_v49 = vpop.xlane.xlu1 %2241 }
 0x446   : > { %6904 = vrcp.f32 %v2242_v49 }
 0x447   : > { %6267 = vmatpush3.bf16.msra.mxu1 %v8077_v61  ;;  %v2233_v27 = vpop.xlane.xlu0 %2232 }
 0x448   : > { %6906 = vrcp.f32 %v2233_v27  ;;  %6312 = vmatprep.subr.bf16.mxu1 %v6690_v47 }
 0x449   : > { %6908 = vrcp.f32 %v2239_v9  ;;  %v2236_v44 = vpop.xlane.xlu1 %2235 }
 0x44a   : > { %6910 = vrcp.f32 %v2236_v44 }
 0x44b   : > { %v2251_v11 = vpop.xlane.xlu0 %2250 }
 0x44d   : > { %v2254_v57 = vpop.xlane.xlu1 %2253 }
 0x44e   : > { %6912 = vrcp.f32 %v2254_v57 }
 0x44f   : > { %v2245_v3 = vpop.xlane.xlu0 %2244 }
 0x450   : > { %6914 = vrcp.f32 %v2245_v3  ;;  %v6905_v46 = vpop.eup %6904 }
 0x451   : > { %6916 = vrcp.f32 %v2251_v11  ;;  %v2248_v30 = vpop.xlane.xlu1 %2247  ;;  %v2314_v61 = vmul.f32 %v6905_v46, %v8381_v14 }
 0x452   : > { %v6907_v20 = vpop.eup %6906  ;;  %6918 = vrcp.f32 %v2248_v30 }
 0x453   : > { %v6909_v51 = vpop.eup %6908  ;;  %v2161_v0 = vpop.xlane.xlu0 %2160  ;;  %v2311_v23 = vmul.f32 %v6907_v20, %v8386_v28 }
 0x454   : > { %v6911_v25 = vpop.eup %6910  ;;  %6920 = vrcp.f32 %v2161_v0  ;;  %v2313_v31 = vmul.f32 %v6909_v51, %v8376_v4 }
 0x455   : > { %v2164_v1 = vpop.xlane.xlu1 %2163  ;;  %v2312_v63 = vmul.f32 %v6911_v25, %v8391_v50  ;;  %v8547_v25 = vld [vmem:[%s7342_s26 + $0x10] sm:$0xff]  }
 0x456   : > { %6922 = vrcp.f32 %v2164_v1  ;;  %v2332_v6 = vpack.c.bf16 %v2314_v61, %v2313_v31 }
 0x457   : > { %v2167_v58 = vpop.xlane.xlu0 %2166  ;;  %v2331_v19 = vpack.c.bf16 %v2312_v63, %v2311_v23 }
 0x458   : > { %6924 = vrcp.f32 %v2167_v58  ;;  %v6913_v52 = vpop.eup %6912 }
 0x459   : > { %v2170_v36 = vpop.xlane.xlu1 %2169  ;;  %6268 = vmatprep.mubr.msk.bf16.mxu1 %vm1966_vm2, %v2331_v19  ;;  %v2318_v2 = vmul.f32 %v6913_v52, %v8401_v37  ;;  %v8570_v52 = vld [vmem:[%s7342_s26 + $0x20] sm:$0xff]  }
 0x45a   : > { %v6915_v14 = vpop.eup %6914  ;;  %6926 = vrcp.f32 %v2170_v36  ;;  %6269 = vmatmul.mubr.msk.bf16.vlgmr.msra.gmra.mrb[96].mxu1 %vm1966_vm2, %v2332_v6  ;;  %v8561_v6 = vld [vmem:[%s7342_s26 + $0x18] sm:$0xff]  }
 0x45b   : > { %v6917_v28 = vpop.eup %6916  ;;  %v2173_v50 = vpop.xlane.xlu0 %2172  ;;  %6313 = vmatpush3.bf16.msra.mxu1 %v6690_v47  ;;  %v2315_v8 = vmul.f32 %v6915_v14, %v8406_v53  ;;  %v8529_v47 = vld [vmem:[%s7342_s26] sm:$0xff]  }
 0x45c   : > { %v6919_v4 = vpop.eup %6918  ;;  %6928 = vrcp.f32 %v2173_v50  ;;  %6314 = vmatprep.subr.bf16.mxu1 %v6691_v10  ;;  %v2317_v60 = vmul.f32 %v6917_v28, %v8396_v55  ;;  %v6689_v28 = vld [vmem:[%s10023_s1 + $0x18] sm:$0xff]  }
 0x45d   : > { %v2176_v7 = vpop.xlane.xlu1 %2175  ;;  %v2316_v18 = vmul.f32 %v6919_v4, %v8411_v13 }
 0x45e   : > { %v6921_v35 = vpop.eup %6920  ;;  %6930 = vrcp.f32 %v2176_v7  ;;  %v2334_v45 = vpack.c.bf16 %v2318_v2, %v2317_v60  ;;  %v8585_v2 = vld [vmem:[%s7342_s26 + $0x28] sm:$0xff]   ;;  %v8590_v7 = vld [vmem:[%s7342_s26 + $0x30] sm:$0xff]   ;;  %v8606_v60 = vld [vmem:[%s7342_s26 + $0x40] sm:$0xff]  }
 0x45f   : > { %v2179_v17 = vpop.xlane.xlu0 %2178  ;;  %v2333_v41 = vpack.c.bf16 %v2316_v18, %v2315_v8  ;;  %6315 = vmatpush3.bf16.msra.mxu1 %v6691_v10  ;;  %v2287_v37 = vmul.f32 %v6921_v35, %v8416_v38  ;;  %v6688_v10 = vld [vmem:[%s10023_s1 + $0x10] sm:$0xff]   ;;  %v8601_v35 = vld [vmem:[%s7342_s26 + $0x38] sm:$0xff]  }
 0x460   : > { %v6923_v29 = vpop.eup %6922  ;;  %6932 = vrcp.f32 %v2179_v17  ;;  %v8629_v17 = vld [vmem:[%s7342_s26 + $0x58] sm:$0xff]  }
 0x461   : > { %v2182_v54 = vpop.xlane.xlu1 %2181  ;;  %6272 = vmatprep.mubr.msk.bf16.mxu1 %vm1966_vm2, %v2333_v41  ;;  %v2288_v53 = vmul.f32 %v6923_v29, %v8421_v12  ;;  %v8634_v41 = vld [vmem:[%s7342_s26 + $0x60] sm:$0xff]   ;;  %v8643_v29 = vld [vmem:[%s7342_s26 + $0x68] sm:$0xff]  }
 0x462   : > { %v6925_v9 = vpop.eup %6924  ;;  %6934 = vrcp.f32 %v2182_v54  ;;  %6273 = vmatmul.mubr.msk.bf16.gmra.mrb[100].mxu1 %vm1966_vm2, %v2334_v45  ;;  %v8648_v45 = vld [vmem:[%s7342_s26 + $0x70] sm:$0xff]   ;;  %v8657_v54 = vld [vmem:[%s7342_s26 + $0x78] sm:$0xff]  }
 0x463   : > { %v2209_v13 = vpop.xlane.xlu0 %2208  ;;  %v2319_v55 = vpack.c.bf16 %v2288_v53, %v2287_v37  ;;  %6316 = vmatprep.mubr.msk.bf16.mxu1 %vm483_vm0, %v8529_v47  ;;  %v2289_v27 = vmul.f32 %v6925_v9, %v8426_v34 }
 0x464   : > { %v6927_v49 = vpop.eup %6926  ;;  %6936 = vrcp.f32 %v2209_v13 }
 0x465   : > { %v2290_v44 = vmul.f32 %v6927_v49, %v8431_v21  ;;  %v2212_v38 = vpop.xlane.xlu1 %2211  ;;  %6220 = vmatprep.mubr.msk.bf16.mxu0 %vm1966_vm2, %v2319_v55  ;;  %v8541_v21 = vld [vmem:[%s7342_s26 + $0x8] sm:$0xff]  }
 0x466   : > { %v6929_v12 = vpop.eup %6928  ;;  %6938 = vrcp.f32 %v2212_v38 }
 0x467   : > { %v2320_v11 = vpack.c.bf16 %v2290_v44, %v2289_v27  ;;  %v2215_v57 = vpop.xlane.xlu0 %2214  ;;  %v2291_v30 = vmul.f32 %v6929_v12, %v8436_v48 }
 0x468   : > { %v6931_v3 = vpop.eup %6930  ;;  %6940 = vrcp.f32 %v2215_v57 }
 0x469   : > { %v2218_v46 = vpop.xlane.xlu1 %2217  ;;  %6221 = vmatmul.mubr.msk.bf16.vlgmr.msra.gmra.mrb[40].mxu0 %vm1966_vm2, %v2320_v11  ;;  %v2292_v34 = vmul.f32 %v6931_v3, %v8441_v56 }
 0x46a   : > { %v6933_v20 = vpop.eup %6932  ;;  %6942 = vrcp.f32 %v2218_v46  ;;  %6245 = vmatpush3.bf16.msra.mxu0 %v8065_v62  ;;  %6317 = vmatmul.mubr.msk.bf16.vlgmr.msra.gmra.mrb[104].mxu1 %vm483_vm0, %v8541_v21 }
 0x46b   : > { %6246 = vmatprep.subr.bf16.mxu0 %v8063_v22  ;;  %v2221_v51 = vpop.xlane.xlu0 %2220  ;;  %v2321_v0 = vpack.c.bf16 %v2292_v34, %v2291_v30  ;;  %6320 = vmatprep.mubr.msk.bf16.mxu1 %vm483_vm0, %v8547_v25  ;;  %v2293_v62 = vmul.f32 %v6933_v20, %v8446_v43 }
 0x46c   : > { %v6935_v48 = vpop.eup %6934  ;;  %6944 = vrcp.f32 %v2221_v51 }
 0x46d   : > { %v2224_v56 = vpop.xlane.xlu1 %2223  ;;  %6224 = vmatprep.mubr.msk.bf16.mxu0 %vm1966_vm2, %v2321_v0  ;;  %v2294_v61 = vmul.f32 %v6935_v48, %v8451_v5 }
 0x46e   : > { %v6937_v1 = vpop.eup %6936  ;;  %6946 = vrcp.f32 %v2224_v56  ;;  %6247 = vmatpush3.bf16.msra.mxu0 %v8063_v22 }
 0x46f   : > { %6248 = vmatprep.subr.bf16.mxu0 %v8070_v16  ;;  %v2227_v23 = vpop.xlane.xlu0 %2226  ;;  %v2322_v63 = vpack.c.bf16 %v2294_v61, %v2293_v62  ;;  %v2303_v19 = vmul.f32 %v6937_v1, %v8456_v39 }
 0x470   : > { %v6939_v31 = vpop.eup %6938  ;;  %6948 = vrcp.f32 %v2227_v23 }
 0x471   : > { %v2230_v58 = vpop.xlane.xlu1 %2229  ;;  %6225 = vmatmul.mubr.msk.bf16.gmra.mrb[44].mxu0 %vm1966_vm2, %v2322_v63  ;;  %v2304_v43 = vmul.f32 %v6939_v31, %v8461_v24 }
 0x472   : > { %v6941_v5 = vpop.eup %6940  ;;  %6950 = vrcp.f32 %v2230_v58  ;;  %6249 = vmatpush3.bf16.msra.mxu0 %v8070_v16  ;;  %6321 = vmatmul.mubr.msk.bf16.gmra.mrb[108].mxu1 %vm483_vm0, %v8561_v6 }
 0x473   : > { %6250 = vmatprep.subr.bf16.mxu0 %v8068_v15  ;;  %v2327_v22 = vpack.c.bf16 %v2304_v43, %v2303_v19  ;;  %6324 = vmatprep.mubr.msk.bf16.mxu1 %vm483_vm0, %v8570_v52  ;;  %v2305_v16 = vmul.f32 %v6941_v5, %v8465_v26 }
 0x474   : > { %v6943_v39 = vpop.eup %6942 }
 0x475   : > { %v2306_v24 = vmul.f32 %v6943_v39, %v8469_v40  ;;  %6252 = vmatprep.mubr.msk.bf16.mxu0 %vm1966_vm2, %v2327_v22 }
 0x476   : > { %v6945_v36 = vpop.eup %6944  ;;  %6251 = vmatpush3.bf16.msra.mxu0 %v8068_v15 }
 0x477   : > { %v2328_v14 = vpack.c.bf16 %v2306_v24, %v2305_v16  ;;  %6276 = vmatprep.subr.bf16.mxu0 %v6688_v10  ;;  %v2307_v4 = vmul.f32 %v6945_v36, %v8473_v42 }
 0x478   : > { %v6947_v50 = vpop.eup %6946 }
 0x479   : > { %6253 = vmatmul.mubr.msk.bf16.vlgmr.msra.gmra.mrb[48].mxu0 %vm1966_vm2, %v2328_v14  ;;  %v2308_v26 = vmul.f32 %v6947_v50, %v8477_v59 }
 0x47a   : > { %v6949_v40 = vpop.eup %6948  ;;  %6277 = vmatpush3.bf16.msra.mxu0 %v6688_v10  ;;  %6325 = vmatmul.mubr.msk.bf16.gmra.mrb[112].mxu1 %vm483_vm0, %v8585_v2 }
 0x47b   : > { %v2329_v15 = vpack.c.bf16 %v2308_v26, %v2307_v4  ;;  %6278 = vmatprep.subr.bf16.mxu0 %v6689_v28  ;;  %6328 = vmatprep.mubr.msk.bf16.mxu1 %vm483_vm0, %v8590_v7  ;;  %v2309_v59 = vmul.f32 %v6949_v40, %v8481_v32  ;;  %v8615_v32 = vld [vmem:[%s7342_s26 + $0x48] sm:$0xff]  }
 0x47c   : > { %v6951_v42 = vpop.eup %6950 }
 0x47d   : > { %6256 = vmatprep.mubr.msk.bf16.mxu0 %vm1966_vm2, %v2329_v15  ;;  %v2310_v8 = vmul.f32 %v6951_v42, %v8485_v33  ;;  %v8620_v33 = vld [vmem:[%s7342_s26 + $0x50] sm:$0xff]  }
 0x47e   : > { %6279 = vmatpush3.bf16.msra.mxu0 %v6689_v28 }
 0x47f   : > { %v2330_v18 = vpack.c.bf16 %v2310_v8, %v2309_v59 }
 0x481   : > { %6257 = vmatmul.mubr.msk.bf16.gmra.mrb[52].mxu0 %vm1966_vm2, %v2330_v18 }
 0x482   : > { %6280 = vmatprep.mubr.msk.bf16.mxu0 %vm483_vm0, %v8529_v47  ;;  %6329 = vmatmul.mubr.msk.bf16.gmra.mrb[116].mxu1 %vm483_vm0, %v8601_v35 }
 0x483   : > { %6332 = vmatprep.mubr.msk.bf16.mxu1 %vm483_vm0, %v8606_v60 }
 0x489   : > { %6281 = vmatmul.mubr.msk.bf16.vlgmr.msra.gmra.mrb[56].mxu0 %vm483_vm0, %v8541_v21 }
 0x48a   : > { %6284 = vmatprep.mubr.msk.bf16.mxu0 %vm483_vm0, %v8547_v25  ;;  %6333 = vmatmul.mubr.msk.bf16.gmra.mrb[120].mxu1 %vm483_vm0, %v8615_v32 }
 0x48b   : > { %6336 = vmatprep.mubr.msk.bf16.mxu1 %vm483_vm0, %v8620_v33 }
 0x491   : > { %6285 = vmatmul.mubr.msk.bf16.gmra.mrb[60].mxu0 %vm483_vm0, %v8561_v6 }
 0x492   : > { %6288 = vmatprep.mubr.msk.bf16.mxu0 %vm483_vm0, %v8570_v52  ;;  %6337 = vmatmul.mubr.msk.bf16.gmra.mrb[124].mxu1 %vm483_vm0, %v8629_v17 }
 0x493   : > { %6340 = vmatprep.mubr.msk.bf16.mxu1 %vm483_vm0, %v8634_v41 }
 0x499   : > { %6289 = vmatmul.mubr.msk.bf16.gmra.mrb[64].mxu0 %vm483_vm0, %v8585_v2 }
 0x49a   : > { %6292 = vmatprep.mubr.msk.bf16.mxu0 %vm483_vm0, %v8590_v7  ;;  %6341 = vmatmul.mubr.msk.bf16.gmra.mrb[128].mxu1 %vm483_vm0, %v8643_v29 }
 0x49b   : > { %6344 = vmatprep.mubr.msk.bf16.mxu1 %vm483_vm0, %v8648_v45 }
 0x4a1   : > { %6293 = vmatmul.mubr.msk.bf16.gmra.mrb[68].mxu0 %vm483_vm0, %v8601_v35 }
 0x4a2   : > { %6296 = vmatprep.mubr.msk.bf16.mxu0 %vm483_vm0, %v8606_v60  ;;  %6345 = vmatmul.mubr.msk.bf16.gmra.mrb[132].mxu1 %vm483_vm0, %v8657_v54 }
 0x4a9   : > { %6297 = vmatmul.mubr.msk.bf16.gmra.mrb[72].mxu0 %vm483_vm0, %v8615_v32 }
 0x4aa   : > { %6300 = vmatprep.mubr.msk.bf16.mxu0 %vm483_vm0, %v8620_v33 }
 0x4b1   : > { %6301 = vmatmul.mubr.msk.bf16.gmra.mrb[76].mxu0 %vm483_vm0, %v8629_v17 }
 0x4b2   : > { %6304 = vmatprep.mubr.msk.bf16.mxu0 %vm483_vm0, %v8634_v41 }
 0x4b9   : > { %6305 = vmatmul.mubr.msk.bf16.gmra.mrb[80].mxu0 %vm483_vm0, %v8643_v29 }
 0x4ba   : > { %6308 = vmatprep.mubr.msk.bf16.mxu0 %vm483_vm0, %v8648_v45 }
 0x4c1   : > { %6309 = vmatmul.mubr.msk.bf16.gmra.mrb[84].mxu0 %vm483_vm0, %v8657_v54 }
 0x4c2   : > { %6352 = vmatprep.mubr.msk.bf16.mxu0 %vm483_vm0, %v8529_v47 }
 0x50d   : > { %v8677_v37 = vpop.f32.mrb[88].mxu1 }
 0x50e   : > { %10175 = vst [vmem:[#allocation5_spill] sm:$0xff] %v8677_v37  ;;  %v8679_v53 = vpop.f32.mrb[89].mxu1 }
 0x50f   : > { %10176 = vst [vmem:[#allocation7_spill] sm:$0xff] %v8679_v53  ;;  %v8681_v9 = vpop.f32.mrb[90].mxu1 }
 0x510   : > { %10177 = vst [vmem:[#allocation6_spill] sm:$0xff] %v8681_v9  ;;  %v8685_v55 = vpop.f32.mrb[91].mxu1 }
 0x511   : > { %10178 = vst [vmem:[#allocation8_spill] sm:$0xff] %v8685_v55 }
 0x515   : > { %v8689_v27 = vpop.f32.mrb[92].mxu1 }
 0x516   : > { %10179 = vst [vmem:[#allocation9_spill] sm:$0xff] %v8689_v27  ;;  %v8691_v44 = vpop.f32.mrb[93].mxu1 }
 0x517   : > { %10180 = vst [vmem:[#allocation10_spill] sm:$0xff] %v8691_v44  ;;  %v8693_v38 = vpop.f32.mrb[94].mxu1 }
 0x518   : > { %10181 = vst [vmem:[#allocation12_spill] sm:$0xff] %v8693_v38  ;;  %v8697_v12 = vpop.f32.mrb[95].mxu1 }
 0x519   : > { %10182 = vst [vmem:[#allocation15_spill] sm:$0xff] %v8697_v12 }
 0x52d   : > { %v8701_v57 = vpop.f32.mrb[96].mxu1 }
 0x52e   : > { %10183 = vst [vmem:[#allocation14_spill] sm:$0xff] %v8701_v57  ;;  %v8703_v3 = vpop.f32.mrb[97].mxu1 }
 0x52f   : > { %10184 = vst [vmem:[#allocation16_spill] sm:$0xff] %v8703_v3  ;;  %v8705_v46 = vpop.f32.mrb[98].mxu1 }
 0x530   : > { %10185 = vst [vmem:[#allocation11_spill] sm:$0xff] %v8705_v46  ;;  %v8709_v34 = vpop.f32.mrb[99].mxu1 }
 0x531   : > { %10186 = vst [vmem:[#allocation13_spill] sm:$0xff] %v8709_v34 }
 0x535   : > { %v8713_v51 = vpop.f32.mrb[100].mxu1 }
 0x536   : > { %10187 = vst [vmem:[#allocation21_spill] sm:$0xff] %v8713_v51  ;;  %v8715_v0 = vpop.f32.mrb[101].mxu1 }
 0x537   : > { %10188 = vst [vmem:[#allocation22_spill] sm:$0xff] %v8715_v0  ;;  %v8717_v48 = vpop.f32.mrb[102].mxu1 }
 0x538   : > { %10189 = vst [vmem:[#allocation17_spill] sm:$0xff] %v8717_v48  ;;  %v8721_v62 = vpop.f32.mrb[103].mxu1  ;;  %v8808_v48 = vld [vmem:[%s10026_s4 + $0x1] ss:$0 sm:$0xff] }
 0x539   : > { %10190 = vst [vmem:[#allocation19_spill] sm:$0xff] %v8721_v62 }
 0x53c   : > { %v8725_v1 = vpop.f32.mrb[40].mxu0 }
 0x53d   : > { %10191 = vst [vmem:[#allocation23_spill] sm:$0xff] %v8725_v1  ;;  %v8727_v23 = vpop.f32.mrb[41].mxu0  ;;  %v8729_v63 = vpop.f32.mrb[104].mxu1 }
 0x53e   : > { %10192 = vst [vmem:[#allocation24_spill] sm:$0xff] %v8727_v23  ;;  %v8731_v31 = vpop.f32.mrb[42].mxu0  ;;  %v8733_v58 = vpop.f32.mrb[105].mxu1  ;;  %v3463_v55 = vmul.f32 %v8729_v63, %v8729_v63 }
 0x53f   : > { %10193 = vst [vmem:[#allocation18_spill] sm:$0xff] %v8731_v31  ;;  %10194 = vst [vmem:[#allocation20_spill] sm:$0xff] %v8733_v58  ;;  %v8737_v43 = vpop.f32.mrb[43].mxu0  ;;  %v8739_v5 = vpop.f32.mrb[106].mxu1 }
 0x540   : > { %10195 = vst [vmem:[#allocation25_spill] sm:$0xff] %v8737_v43  ;;  %10196 = vst [vmem:[#allocation26_spill] sm:$0xff] %v8739_v5  ;;  %v8743_v10 = vpop.f32.mrb[107].mxu1 }
 0x541   : > { %10197 = vst [vmem:[#allocation29_spill] sm:$0xff] %v8743_v10  ;;  %v3462_v43 = vmul.f32 %v8743_v10, %v8743_v10 }
 0x544   : > { %v8745_v39 = vpop.f32.mrb[44].mxu0 }
 0x545   : > { %10198 = vst [vmem:[#allocation30_spill] sm:$0xff] %v8745_v39  ;;  %v8747_v16 = vpop.f32.mrb[45].mxu0  ;;  %v8749_v24 = vpop.f32.mrb[108].mxu1 }
 0x546   : > { %10199 = vst [vmem:[#allocation27_spill] sm:$0xff] %v8747_v16  ;;  %10200 = vst [vmem:[#allocation28_spill] sm:$0xff] %v8749_v24  ;;  %v8751_v36 = vpop.f32.mrb[46].mxu0  ;;  %v8753_v14 = vpop.f32.mrb[109].mxu1 }
 0x547   : > { %10201 = vst [vmem:[#allocation31_spill] sm:$0xff] %v8751_v36  ;;  %10202 = vst [vmem:[#allocation32_spill] sm:$0xff] %v8753_v14  ;;  %v8757_v50 = vpop.f32.mrb[47].mxu0  ;;  %v8759_v4 = vpop.f32.mrb[110].mxu1 }
 0x548   : > { %10203 = vst [vmem:[#allocation33_spill] sm:$0xff] %v8757_v50  ;;  %10204 = vst [vmem:[#allocation34_spill] sm:$0xff] %v8759_v4  ;;  %v8763_v40 = vpop.f32.mrb[111].mxu1 }
 0x549   : > { %10205 = vst [vmem:[#allocation35_spill] sm:$0xff] %v8763_v40 }
 0x54c   : > { %v8765_v15 = vpop.f32.mrb[48].mxu0 }
 0x54d   : > { %10206 = vst [vmem:[#allocation36_spill] sm:$0xff] %v8765_v15  ;;  %v8767_v42 = vpop.f32.mrb[49].mxu0  ;;  %v8769_v59 = vpop.f32.mrb[112].mxu1 }
 0x54e   : > { %10207 = vst [vmem:[#allocation37_spill] sm:$0xff] %v8767_v42  ;;  %10208 = vst [vmem:[#allocation38_spill] sm:$0xff] %v8769_v59  ;;  %v8771_v8 = vpop.f32.mrb[50].mxu0  ;;  %v8773_v18 = vpop.f32.mrb[113].mxu1 }
 0x54f   : > { %10209 = vst [vmem:[#allocation39_spill] sm:$0xff] %v8771_v8  ;;  %10210 = vst [vmem:[#allocation40_spill] sm:$0xff] %v8773_v18  ;;  %v8777_v61 = vpop.f32.mrb[51].mxu0  ;;  %v8779_v30 = vpop.f32.mrb[114].mxu1 }
 0x550   : > { %10211 = vst [vmem:[#allocation41_spill] sm:$0xff] %v8777_v61  ;;  %v8783_v47 = vpop.f32.mrb[115].mxu1 }
 0x551   : > { %10212 = vst [vmem:[#allocation42_spill] sm:$0xff] %v8783_v47 }
 0x554   : > { %v8785_v11 = vpop.f32.mrb[52].mxu0 }
 0x555   : > { %10213 = vst [vmem:[#allocation43_spill] sm:$0xff] %v8785_v11  ;;  %v8787_v13 = vpop.f32.mrb[53].mxu0  ;;  %v8789_v49 = vpop.f32.mrb[116].mxu1 }
 0x556   : > { %10214 = vst [vmem:[#allocation44_spill] sm:$0xff] %v8787_v13  ;;  %10215 = vst [vmem:[#allocation45_spill] sm:$0xff] %v8789_v49  ;;  %v8791_v28 = vpop.f32.mrb[54].mxu0  ;;  %v8793_v26 = vpop.f32.mrb[117].mxu1 }
 0x557   : > { %10216 = vst [vmem:[#allocation46_spill] sm:$0xff] %v8791_v28  ;;  %v8797_v19 = vpop.f32.mrb[55].mxu0  ;;  %v8799_v22 = vpop.f32.mrb[118].mxu1 }
 0x558   : > { %10217 = vst [vmem:[#allocation47_spill] sm:$0xff] %v8797_v19  ;;  %v8803_v51 = vpop.f32.mrb[119].mxu1 }
 0x55c   : > { %v6282_v0 = vpop.f32.mrb[56].mxu0 }
 0x55d   : > { %v8811_v62 = vadd.f32 %v6282_v0, %v8808_v48  ;;  %v2720_v57 = vpop.f32.mrb[57].mxu0  ;;  %v8813_v56 = vpop.f32.mrb[120].mxu1 }
 0x55e   : > { %v8816_v46 = vadd.f32 %v8808_v48, %v2720_v57  ;;  %v6283_v3 = vpop.f32.mrb[58].mxu0  ;;  %v8818_v34 = vpop.f32.mrb[121].mxu1 }
 0x55f   : > { %10218 = vst [vmem:[#allocation48_spill] sm:$0xff] %v8811_v62  ;;  %v3205_v20 = vmul.f32 %v8811_v62, %v8811_v62  ;;  %v8823_v11 = vadd.f32 %v6283_v3, %v8808_v48  ;;  %v2723_v28 = vpop.f32.mrb[59].mxu0  ;;  %v8825_v13 = vpop.f32.mrb[122].mxu1 }
 0x560   : > { %v8828_v0 = vadd.f32 %v8808_v48, %v2723_v28  ;;  %v8830_v19 = vpop.f32.mrb[123].mxu1  ;;  %v3203_v57 = vmul.f32 %v8816_v46, %v8816_v46 }
 0x561   : > { %10219 = vst [vmem:[#allocation49_spill] sm:$0xff] %v8823_v11  ;;  %v3206_v15 = vmul.f32 %v8823_v11, %v8823_v11  ;;  %v3241_v8 = vsel %vm1079_vm1, %v3205_v20, 0.0 }
 0x562   : > { %3242 = vadd.xlane.f32.xlu0 %v3241_v8  ;;  %v3204_v3 = vmul.f32 %v8828_v0, %v8828_v0  ;;  %v3235_v38 = vsel %vm1079_vm1, %v3203_v57, 0.0 }
 0x563   : > { %v3244_v42 = vsel %vm1079_vm1, %v3206_v15, 0.0 }
 0x564   : > { %3245 = vadd.xlane.f32.xlu1 %v3244_v42  ;;  %v6286_v61 = vpop.f32.mrb[60].mxu0  ;;  %v3238_v37 = vsel %vm1079_vm1, %v3204_v3, 0.0 }
 0x565   : > { %v8841_v28 = vadd.f32 %v6286_v61, %v8808_v48  ;;  %v2736_v27 = vpop.f32.mrb[61].mxu0  ;;  %v8844_v44 = vpop.f32.mrb[124].mxu1 }
 0x566   : > { %v8847_v12 = vadd.f32 %v8808_v48, %v2736_v27  ;;  %v6287_v20 = vpop.f32.mrb[62].mxu0  ;;  %3236 = vadd.xlane.f32.xlu0 %v3235_v38  ;;  %v8849_v8 = vpop.f32.mrb[125].mxu1 }
 0x567   : > { %10220 = vst [vmem:[#allocation50_spill] sm:$0xff] %v8841_v28  ;;  %v3209_v15 = vmul.f32 %v8841_v28, %v8841_v28  ;;  %v8854_v42 = vadd.f32 %v6287_v20, %v8808_v48  ;;  %v2739_v61 = vpop.f32.mrb[63].mxu0  ;;  %v8857_v9 = vpop.f32.mrb[126].mxu1 }
 0x568   : > { %10221 = vst [vmem:[#allocation51_spill] sm:$0xff] %v8847_v12  ;;  %v8860_v57 = vadd.f32 %v8808_v48, %v2739_v61  ;;  %3239 = vadd.xlane.f32.xlu1 %v3238_v37  ;;  %v8862_v27 = vpop.f32.mrb[127].mxu1  ;;  %v3207_v38 = vmul.f32 %v8847_v12, %v8847_v12 }
 0x569   : > { %10222 = vst [vmem:[#allocation52_spill] sm:$0xff] %v8854_v42  ;;  %v3210_v53 = vmul.f32 %v8854_v42, %v8854_v42  ;;  %v3253_v20 = vsel %vm1079_vm1, %v3209_v15, 0.0  ;;  %v3464_v15 = vmul.f32 %v8739_v5, %v8739_v5 }
 0x56a   : > { %10223 = vst [vmem:[#allocation53_spill] sm:$0xff] %v8860_v57  ;;  %3254 = vadd.xlane.f32.xlu0 %v3253_v20  ;;  %v3208_v3 = vmul.f32 %v8860_v57, %v8860_v57  ;;  %v3247_v39 = vsel %vm1079_vm1, %v3207_v38, 0.0 }
 0x56b   : > { %v3256_v61 = vsel %vm1079_vm1, %v3210_v53, 0.0  ;;  %v3499_v53 = vsel %vm1079_vm1, %v3463_v55, 0.0  ;;  %v3502_v55 = vsel %vm1079_vm1, %v3464_v15, 0.0 }
 0x56c   : > { %3257 = vadd.xlane.f32.xlu1 %v3256_v61  ;;  %v6290_v37 = vpop.f32.mrb[64].mxu0  ;;  %v3250_v20 = vsel %vm1079_vm1, %v3208_v3, 0.0 }
 0x56d   : > { %v2752_v36 = vpop.f32.mrb[65].mxu0  ;;  %v8875_v16 = vpop.f32.mrb[128].mxu1 }
 0x56e   : > { %3248 = vadd.xlane.f32.xlu0 %v3247_v39  ;;  %v6291_v50 = vpop.f32.mrb[66].mxu0  ;;  %v8877_v1 = vpop.f32.mrb[129].mxu1  ;;  %v8883_v31 = vadd.f32 %v8808_v48, %v2752_v36  ;;  %v3461_v39 = vmul.f32 %v8733_v58, %v8733_v58 }
 0x56f   : > { %v2755_v61 = vpop.f32.mrb[67].mxu0  ;;  %v8886_v23 = vpop.f32.mrb[130].mxu1 }
 0x570   : > { %10224 = vst [vmem:[#allocation54_spill] sm:$0xff] %v8883_v31  ;;  %3251 = vadd.xlane.f32.xlu1 %v3250_v20  ;;  %v8888_v38 = vpop.f32.mrb[131].mxu1  ;;  %v3211_v3 = vmul.f32 %v8883_v31, %v8883_v31  ;;  %v8897_v36 = vadd.f32 %v8808_v48, %v2755_v61  ;;  %v8901_v20 = vadd.f32 %v6290_v37, %v8808_v48  ;;  %v3493_v42 = vsel %vm1079_vm1, %v3461_v39, 0.0 }
 0x571   : > { %v8909_v31 = vadd.f32 %v6291_v50, %v8808_v48  ;;  %v3496_v61 = vsel %vm1079_vm1, %v3462_v43, 0.0 }
 0x572   : > { %3500 = vadd.xlane.f32.xlu0 %v3499_v53  ;;  %10225 = vst [vmem:[#allocation55_spill] sm:$0xff] %v8897_v36  ;;  %10226 = vst [vmem:[#allocation56_spill] sm:$0xff] %v8901_v20  ;;  %v3212_v15 = vmul.f32 %v8897_v36, %v8897_v36  ;;  %v3259_v37 = vsel %vm1079_vm1, %v3211_v3, 0.0  ;;  %v3467_v36 = vmul.f32 %v8749_v24, %v8749_v24 }
 0x573   : > { %10227 = vst [vmem:[#allocation57_spill] sm:$0xff] %v8909_v31  ;;  %v3214_v50 = vmul.f32 %v8909_v31, %v8909_v31 }
 0x574   : > { %3503 = vadd.xlane.f32.xlu1 %v3502_v55  ;;  %v6294_v28 = vpop.f32.mrb[68].mxu0  ;;  %v3262_v43 = vsel %vm1079_vm1, %v3212_v15, 0.0 }
 0x575   : > { %v2768_v12 = vpop.f32.mrb[69].mxu0  ;;  %v8904_v53 = vpop.f32.mrb[132].mxu1  ;;  %v3268_v24 = vsel %vm1079_vm1, %v3214_v50, 0.0  ;;  %v8957_v50 = vadd.f32 %v6294_v28, %v8808_v48 }
 0x576   : > { %3494 = vadd.xlane.f32.xlu0 %v3493_v42  ;;  %v6295_v62 = vpop.f32.mrb[70].mxu0  ;;  %v8906_v57 = vpop.f32.mrb[133].mxu1  ;;  %v3213_v42 = vmul.f32 %v8901_v20, %v8901_v20  ;;  %v3468_v20 = vmul.f32 %v8759_v4, %v8759_v4  ;;  %v8937_v15 = vadd.f32 %v8808_v48, %v2768_v12 }
 0x577   : > { %v2771_v55 = vpop.f32.mrb[71].mxu0  ;;  %v8915_v11 = vpop.f32.mrb[134].mxu1  ;;  %10230 = vst [vmem:[#allocation60_spill] sm:$0xff] %v8957_v50 }
 0x578   : > { %3497 = vadd.xlane.f32.xlu1 %v3496_v61  ;;  %v8917_v39 = vpop.f32.mrb[135].mxu1  ;;  %v3265_v10 = vsel %vm1079_vm1, %v3213_v42, 0.0  ;;  %10228 = vst [vmem:[#allocation58_spill] sm:$0xff] %v8937_v15  ;;  %v3215_v12 = vmul.f32 %v8937_v15, %v8937_v15 }
 0x57a   : > { %3260 = vadd.xlane.f32.xlu0 %v3259_v37 }
 0x57c   : > { %3263 = vadd.xlane.f32.xlu1 %v3262_v43  ;;  %v6298_v3 = vpop.f32.mrb[72].mxu0  ;;  %v3511_v43 = vsel %vm1079_vm1, %v3467_v36, 0.0  ;;  %v8953_v36 = vadd.f32 %v8808_v48, %v2771_v55 }
 0x57d   : > { %v8928_v61 = vadd.f32 %v6298_v3, %v8808_v48  ;;  %v2784_v58 = vpop.f32.mrb[73].mxu0 }
 0x57e   : > { %3266 = vadd.xlane.f32.xlu0 %v3265_v10  ;;  %v8933_v37 = vadd.f32 %v8808_v48, %v2784_v58  ;;  %v6299_v31 = vpop.f32.mrb[74].mxu0  ;;  %v3465_v58 = vmul.f32 %v8753_v14, %v8753_v14  ;;  %v3466_v10 = vmul.f32 %v8763_v40, %v8763_v40  ;;  %10229 = vst [vmem:[#allocation59_spill] sm:$0xff] %v8953_v36 }
 0x57f   : > { %v8941_v42 = vadd.f32 %v6299_v31, %v8808_v48  ;;  %v2787_v3 = vpop.f32.mrb[75].mxu0  ;;  %v3514_v31 = vsel %vm1079_vm1, %v3468_v20, 0.0  ;;  %v8968_v20 = vadd.f32 %v6295_v62, %v8808_v48  ;;  %v3216_v28 = vmul.f32 %v8953_v36, %v8953_v36  ;;  %v6692_v62 = vld [vmem:[%s10025_s3 + $0x10] sm:$0xff]  }
 0x580   : > { %3269 = vadd.xlane.f32.xlu1 %v3268_v24  ;;  %v8944_v5 = vadd.f32 %v8808_v48, %v2787_v3  ;;  %v3505_v3 = vsel %vm1079_vm1, %v3465_v58, 0.0  ;;  %6348 = vmatprep.subr.bf16.mxu0 %v6692_v62 }
 0x581   : > { %10231 = vst [vmem:[#allocation61_spill] sm:$0xff] %v8968_v20  ;;  %6349 = vmatpush3.bf16.msra.mxu0 %v6692_v62  ;;  %v3469_v62 = vmul.f32 %v8773_v18, %v8773_v18 }
 0x582   : > { %3512 = vadd.xlane.f32.xlu0 %v3511_v43  ;;  %v3508_v43 = vsel %vm1079_vm1, %v3466_v10, 0.0  ;;  %v3218_v10 = vmul.f32 %v8968_v20, %v8968_v20 }
 0x584   : > { %3515 = vadd.xlane.f32.xlu1 %v3514_v31  ;;  %v6302_v24 = vpop.f32.mrb[76].mxu0  ;;  %v3271_v31 = vsel %vm1079_vm1, %v3215_v12, 0.0  ;;  %v3471_v12 = vmul.f32 %v8769_v59, %v8769_v59  ;;  %v3472_v59 = vmul.f32 %v8779_v30, %v8779_v30 }
 0x585   : > { %v8961_v14 = vadd.f32 %v6302_v24, %v8808_v48  ;;  %v2800_v40 = vpop.f32.mrb[77].mxu0 }
 0x586   : > { %3506 = vadd.xlane.f32.xlu0 %v3505_v3  ;;  %v8965_v15 = vadd.f32 %v8808_v48, %v2800_v40  ;;  %v6303_v55 = vpop.f32.mrb[78].mxu0  ;;  %v3217_v40 = vmul.f32 %v8957_v50, %v8957_v50 }
 0x587   : > { %v8974_v58 = vadd.f32 %v6303_v55, %v8808_v48  ;;  %v2803_v24 = vpop.f32.mrb[79].mxu0  ;;  %v3274_v55 = vsel %vm1079_vm1, %v3216_v28, 0.0  ;;  %v3280_v28 = vsel %vm1079_vm1, %v3218_v10, 0.0  ;;  %v3475_v10 = vmul.f32 %v8789_v49, %v8789_v49 }
 0x588   : > { %3509 = vadd.xlane.f32.xlu1 %v3508_v43  ;;  %v8977_v3 = vadd.f32 %v8808_v48, %v2803_v24  ;;  %v3277_v24 = vsel %vm1079_vm1, %v3217_v40, 0.0 }
 0x58a   : > { %3272 = vadd.xlane.f32.xlu0 %v3271_v31 }
 0x58c   : > { %3275 = vadd.xlane.f32.xlu1 %v3274_v55  ;;  %v6306_v43 = vpop.f32.mrb[80].mxu0  ;;  %v3523_v55 = vsel %vm1079_vm1, %v3471_v12, 0.0  ;;  %v3526_v12 = vsel %vm1079_vm1, %v3472_v59, 0.0  ;;  %v3535_v59 = vsel %vm1079_vm1, %v3475_v10, 0.0 }
 0x58d   : > { %v8991_v50 = vadd.f32 %v6306_v43, %v8808_v48  ;;  %v2816_v31 = vpop.f32.mrb[81].mxu0 }
 0x58e   : > { %3278 = vadd.xlane.f32.xlu0 %v3277_v24  ;;  %v8994_v36 = vadd.f32 %v8808_v48, %v2816_v31  ;;  %v6307_v20 = vpop.f32.mrb[82].mxu0  ;;  %v3470_v24 = vmul.f32 %v8783_v47, %v8783_v47  ;;  %v3517_v31 = vsel %vm1079_vm1, %v3469_v62, 0.0  ;;  %v3476_v47 = vmul.f32 %v8799_v22, %v8799_v22 }
 0x58f   : > { %10232 = vst [vmem:[#allocation62_spill] sm:$0xff] %v8991_v50  ;;  %v9001_v4 = vadd.f32 %v6307_v20, %v8808_v48  ;;  %v2819_v40 = vpop.f32.mrb[83].mxu0 }
 0x590   : > { %3281 = vadd.xlane.f32.xlu1 %v3280_v28  ;;  %v9004_v43 = vadd.f32 %v8808_v48, %v2819_v40  ;;  %v3520_v49 = vsel %vm1079_vm1, %v3470_v24, 0.0  ;;  %v3479_v24 = vmul.f32 %v8813_v56, %v8813_v56  ;;  %v3538_v10 = vsel %vm1079_vm1, %v3476_v47, 0.0 }
 0x591   : > { %10233 = vst [vmem:[#allocation63_spill] sm:$0xff] %v9001_v4  ;;  %v3477_v47 = vmul.f32 %v8818_v34, %v8818_v34 }
 0x592   : > { %10234 = vst [vmem:[#allocation64_spill] sm:$0xff] %v9004_v43  ;;  %3524 = vadd.xlane.f32.xlu0 %v3523_v55 }
 0x594   : > { %3527 = vadd.xlane.f32.xlu1 %v3526_v12  ;;  %v6310_v20 = vpop.f32.mrb[84].mxu0 }
 0x595   : > { %v9015_v28 = vadd.f32 %v6310_v20, %v8808_v48  ;;  %v2832_v40 = vpop.f32.mrb[85].mxu0 }
 0x596   : > { %3518 = vadd.xlane.f32.xlu0 %v3517_v31  ;;  %v9018_v18 = vadd.f32 %v8808_v48, %v2832_v40  ;;  %v6311_v55 = vpop.f32.mrb[86].mxu0  ;;  %v3473_v31 = vmul.f32 %v8793_v26, %v8793_v26  ;;  %v3474_v40 = vmul.f32 %v8803_v51, %v8803_v51 }
 0x597   : > { %10235 = vst [vmem:[#allocation65_spill] sm:$0xff] %v9015_v28  ;;  %v9025_v12 = vadd.f32 %v6311_v55, %v8808_v48  ;;  %v2835_v62 = vpop.f32.mrb[87].mxu0  ;;  %v3480_v55 = vmul.f32 %v8825_v13, %v8825_v13 }
 0x598   : > { %10236 = vst [vmem:[#allocation66_spill] sm:$0xff] %v9018_v18  ;;  %3521 = vadd.xlane.f32.xlu1 %v3520_v49  ;;  %v9028_v20 = vadd.f32 %v8808_v48, %v2835_v62  ;;  %v6693_v49 = vld [vmem:[%s10025_s3 + $0x18] sm:$0xff]   ;;  %v3529_v48 = vsel %vm1079_vm1, %v3473_v31, 0.0  ;;  %v3547_v62 = vsel %vm1079_vm1, %v3479_v24, 0.0  ;;  %v3478_v31 = vmul.f32 %v8830_v19, %v8830_v19 }
 0x599   : > { %10237 = vst [vmem:[#allocation67_spill] sm:$0xff] %v9025_v12  ;;  %6350 = vmatprep.subr.bf16.mxu0 %v6693_v49  ;;  %v3484_v24 = vmul.f32 %v8857_v9, %v8857_v9 }
 0x59a   : > { %10238 = vst [vmem:[#allocation68_spill] sm:$0xff] %v9028_v20  ;;  %3536 = vadd.xlane.f32.xlu0 %v3535_v59  ;;  %v3532_v59 = vsel %vm1079_vm1, %v3474_v40, 0.0  ;;  %6351 = vmatpush3.bf16.msra.mxu0 %v6693_v49  ;;  %v3541_v40 = vsel %vm1079_vm1, %v3477_v47, 0.0 }
 0x59c   : > { %3539 = vadd.xlane.f32.xlu1 %v3538_v10  ;;  %v3550_v10 = vsel %vm1079_vm1, %v3480_v55, 0.0  ;;  %v3481_v55 = vmul.f32 %v8849_v8, %v8849_v8 }
 0x59d   : > { %6353 = vmatmul.mubr.msk.bf16.vlgmr.msra.gmra.mrb[88].mxu0 %vm483_vm0, %v8541_v21  ;;  %v3544_v21 = vsel %vm1079_vm1, %v3478_v31, 0.0  ;;  %v3488_v31 = vmul.f32 %v8886_v23, %v8886_v23 }
 0x59e   : > { %3530 = vadd.xlane.f32.xlu0 %v3529_v48  ;;  %v3483_v48 = vmul.f32 %v8844_v44, %v8844_v44  ;;  %6356 = vmatprep.mubr.msk.bf16.mxu0 %vm483_vm0, %v8547_v25  ;;  %v3482_v25 = vmul.f32 %v8862_v27, %v8862_v27  ;;  %v3553_v47 = vsel %vm1079_vm1, %v3481_v55, 0.0 }
 0x5a0   : > { %3533 = vadd.xlane.f32.xlu1 %v3532_v59  ;;  %v3559_v49 = vsel %vm1079_vm1, %v3483_v48, 0.0  ;;  %v3562_v59 = vsel %vm1079_vm1, %v3484_v24, 0.0  ;;  %v3485_v48 = vmul.f32 %v8877_v1, %v8877_v1  ;;  %v3574_v24 = vsel %vm1079_vm1, %v3488_v31, 0.0 }
 0x5a1   : > { %v3224_v31 = vmul.f32 %v8977_v3, %v8977_v3 }
 0x5a2   : > { %3548 = vadd.xlane.f32.xlu0 %v3547_v62  ;;  %v3487_v62 = vmul.f32 %v8875_v16, %v8875_v16 }
 0x5a4   : > { %3551 = vadd.xlane.f32.xlu1 %v3550_v10  ;;  %v3571_v10 = vsel %vm1079_vm1, %v3487_v62, 0.0 }
 0x5a5   : > { %6357 = vmatmul.mubr.msk.bf16.gmra.mrb[92].mxu0 %vm483_vm0, %v8561_v6  ;;  %v3556_v6 = vsel %vm1079_vm1, %v3482_v25, 0.0  ;;  %v3221_v25 = vmul.f32 %v8928_v61, %v8928_v61 }
 0x5a6   : > { %3542 = vadd.xlane.f32.xlu0 %v3541_v40  ;;  %6360 = vmatprep.mubr.msk.bf16.mxu0 %vm483_vm0, %v8570_v52  ;;  %v3219_v52 = vmul.f32 %v8933_v37, %v8933_v37  ;;  %v3486_v40 = vmul.f32 %v8888_v38, %v8888_v38 }
 0x5a8   : > { %3545 = vadd.xlane.f32.xlu1 %v3544_v21  ;;  %v3565_v21 = vsel %vm1079_vm1, %v3485_v48, 0.0  ;;  %v3283_v55 = vsel %vm1079_vm1, %v3219_v52, 0.0  ;;  %v3298_v48 = vsel %vm1079_vm1, %v3224_v31, 0.0 }
 0x5aa   : > { %3560 = vadd.xlane.f32.xlu0 %v3559_v49  ;;  %v3220_v49 = vmul.f32 %v8944_v5, %v8944_v5 }
 0x5ac   : > { %3563 = vadd.xlane.f32.xlu1 %v3562_v59  ;;  %v3223_v59 = vmul.f32 %v8965_v15, %v8965_v15  ;;  %v3286_v62 = vsel %vm1079_vm1, %v3220_v49, 0.0 }
 0x5ad   : > { %6361 = vmatmul.mubr.msk.bf16.gmra.mrb[96].mxu0 %vm483_vm0, %v8585_v2  ;;  %v3568_v2 = vsel %vm1079_vm1, %v3486_v40, 0.0  ;;  %v3225_v40 = vmul.f32 %v8961_v14, %v8961_v14 }
 0x5ae   : > { %3554 = vadd.xlane.f32.xlu0 %v3553_v47  ;;  %6364 = vmatprep.mubr.msk.bf16.mxu0 %vm483_vm0, %v8590_v7  ;;  %v3222_v7 = vmul.f32 %v8941_v42, %v8941_v42  ;;  %v3289_v47 = vsel %vm1079_vm1, %v3221_v25, 0.0 }
 0x5af   : > { %v3301_v49 = vsel %vm1079_vm1, %v3225_v40, 0.0 }
 0x5b0   : > { %3557 = vadd.xlane.f32.xlu1 %v3556_v6  ;;  %v3489_v6 = vmul.f32 %v8906_v57, %v8906_v57 }
 0x5b2   : > { %3572 = vadd.xlane.f32.xlu0 %v3571_v10  ;;  %v3295_v10 = vsel %vm1079_vm1, %v3223_v59, 0.0  ;;  %v3577_v52 = vsel %vm1079_vm1, %v3489_v6, 0.0  ;;  %v3232_v6 = vmul.f32 %v9028_v20, %v9028_v20 }
 0x5b4   : > { %3575 = vadd.xlane.f32.xlu1 %v3574_v24  ;;  %v3226_v24 = vmul.f32 %v8974_v58, %v8974_v58 }
 0x5b5   : > { %6365 = vmatmul.mubr.msk.bf16.gmra.mrb[100].mxu0 %vm483_vm0, %v8601_v35  ;;  %v3292_v35 = vsel %vm1079_vm1, %v3222_v7, 0.0  ;;  %v3228_v7 = vmul.f32 %v9004_v43, %v9004_v43 }
 0x5b6   : > { %3566 = vadd.xlane.f32.xlu0 %v3565_v21  ;;  %6368 = vmatprep.mubr.msk.bf16.mxu0 %vm483_vm0, %v8606_v60  ;;  %v3490_v60 = vmul.f32 %v8917_v39, %v8917_v39  ;;  %v3491_v21 = vmul.f32 %v8904_v53, %v8904_v53 }
 0x5b7   : > { %v3310_v31 = vsel %vm1079_vm1, %v3228_v7, 0.0 }
 0x5b8   : > { %3569 = vadd.xlane.f32.xlu1 %v3568_v2  ;;  %v3227_v2 = vmul.f32 %v8994_v36, %v8994_v36  ;;  %v3583_v25 = vsel %vm1079_vm1, %v3491_v21, 0.0 }
 0x5ba   : > { %3284 = vadd.xlane.f32.xlu0 %v3283_v55  ;;  %v3304_v55 = vsel %vm1079_vm1, %v3226_v24, 0.0  ;;  %v3307_v59 = vsel %vm1079_vm1, %v3227_v2, 0.0 }
 0x5bc   : > { %3287 = vadd.xlane.f32.xlu1 %v3286_v62  ;;  %v3229_v62 = vmul.f32 %v8991_v50, %v8991_v50 }
 0x5bd   : > { %6369 = vmatmul.mubr.msk.bf16.gmra.mrb[104].mxu0 %vm483_vm0, %v8615_v32  ;;  %v3580_v32 = vsel %vm1079_vm1, %v3490_v60, 0.0  ;;  %v3233_v60 = vmul.f32 %v9015_v28, %v9015_v28 }
 0x5be   : > { %3290 = vadd.xlane.f32.xlu0 %v3289_v47  ;;  %6372 = vmatprep.mubr.msk.bf16.mxu0 %vm483_vm0, %v8620_v33  ;;  %v3492_v33 = vmul.f32 %v8915_v11, %v8915_v11  ;;  %v3231_v47 = vmul.f32 %v9018_v18, %v9018_v18 }
 0x5c0   : > { %3293 = vadd.xlane.f32.xlu1 %v3292_v35  ;;  %v3313_v35 = vsel %vm1079_vm1, %v3229_v62, 0.0  ;;  %v9178_v62 = vstv %s5664_s22 }
 0x5c2   : > { %3296 = vadd.xlane.f32.xlu0 %v3295_v10  ;;  %v3319_v10 = vsel %vm1079_vm1, %v3231_v47, 0.0 }
 0x5c4   : > { %3299 = vadd.xlane.f32.xlu1 %v3298_v48  ;;  %v3322_v48 = vsel %vm1079_vm1, %v3232_v6, 0.0 }
 0x5c5   : > { %6373 = vmatmul.mubr.msk.bf16.gmra.mrb[108].mxu0 %vm483_vm0, %v8629_v17  ;;  %v3586_v17 = vsel %vm1079_vm1, %v3492_v33, 0.0 }
 0x5c6   : > { %3578 = vadd.xlane.f32.xlu0 %v3577_v52  ;;  %6376 = vmatprep.mubr.msk.bf16.mxu0 %vm483_vm0, %v8634_v41  ;;  %v3230_v41 = vmul.f32 %v9001_v4, %v9001_v4  ;;  %v3325_v52 = vsel %vm1079_vm1, %v3233_v60, 0.0 }
 0x5c8   : > { %3581 = vadd.xlane.f32.xlu1 %v3580_v32 }
 0x5ca   : > { %3302 = vadd.xlane.f32.xlu0 %v3301_v49 }
 0x5cc   : > { %3305 = vadd.xlane.f32.xlu1 %v3304_v55 }
 0x5cd   : > { %6377 = vmatmul.mubr.msk.bf16.gmra.mrb[112].mxu0 %vm483_vm0, %v8643_v29  ;;  %v3316_v29 = vsel %vm1079_vm1, %v3230_v41, 0.0 }
 0x5ce   : > { %3584 = vadd.xlane.f32.xlu0 %v3583_v25  ;;  %6380 = vmatprep.mubr.msk.bf16.mxu0 %vm483_vm0, %v8648_v45  ;;  %v3234_v45 = vmul.f32 %v9025_v12, %v9025_v12 }
 0x5d0   : > { %3587 = vadd.xlane.f32.xlu1 %v3586_v17  ;;  %v3328_v40 = vsel %vm1079_vm1, %v3234_v45, 0.0 }
 0x5d2   : > { %3308 = vadd.xlane.f32.xlu0 %v3307_v59 }
 0x5d4   : > { %3311 = vadd.xlane.f32.xlu1 %v3310_v31 }
 0x5d5   : > { %6381 = vmatmul.mubr.msk.bf16.gmra.mrb[116].mxu0 %vm483_vm0, %v8657_v54 }
 0x5d6   : > { %3314 = vadd.xlane.f32.xlu0 %v3313_v35 }
 0x5d8   : > { %3317 = vadd.xlane.f32.xlu1 %v3316_v29 }
 0x5da   : > { %3320 = vadd.xlane.f32.xlu0 %v3319_v10 }
 0x5dc   : > { %3323 = vadd.xlane.f32.xlu1 %v3322_v48 }
 0x5de   : > { %3326 = vadd.xlane.f32.xlu0 %v3325_v52 }
 0x5e0   : > { %3329 = vadd.xlane.f32.xlu1 %v3328_v40 }
 0x5ef   : > { %v9166_v24 = vpop.xlane.xlu0 %3242 }
 0x5f1   : > { %v9168_v32 = vpop.xlane.xlu1 %3245 }
 0x5f3   : > { %v3237_v21 = vpop.xlane.xlu0 %3236 }
 0x5f4   : > { %v3331_v49 = vmax.f32 %v3237_v21, 1e-24 }
 0x5f5   : > { %v3240_v33 = vpop.xlane.xlu1 %3239 }
 0x5f6   : > { %6952 = vrsqrt.f32 %v3331_v49  ;;  %v3332_v54 = vmax.f32 %v3240_v33, 1e-24 }
 0x5f7   : > { %v9170_v2 = vpop.xlane.xlu0 %3254 }
 0x5f8   : > { %6954 = vrsqrt.f32 %v3332_v54 }
 0x5f9   : > { %v9172_v55 = vpop.xlane.xlu1 %3257 }
 0x5fb   : > { %v9174_v25 = vpop.xlane.xlu0 %3248 }
 0x5fd   : > { %v9176_v7 = vpop.xlane.xlu1 %3251 }
 0x5ff   : > { %v3501_v17 = vpop.xlane.xlu0 %3500 }
 0x600   : > { %v6953_v59 = vpop.eup %6952  ;;  %v3591_v41 = vmax.f32 %v3501_v17, 1e-24 }
 0x601   : > { %v3504_v47 = vpop.xlane.xlu1 %3503  ;;  %v3397_v31 = vmul.f32 %v6953_v59, %v9178_v62 }
 0x602   : > { %v6955_v35 = vpop.eup %6954  ;;  %6956 = vrsqrt.f32 %v3591_v41  ;;  %v3592_v6 = vmax.f32 %v3504_v47, 1e-24 }
 0x603   : > { %v3495_v29 = vpop.xlane.xlu0 %3494  ;;  %v3398_v10 = vmul.f32 %v6955_v35, %v9178_v62  ;;  %v3429_v48 = vmul.f32 %v3397_v31, %v8816_v46 }
 0x604   : > { %6958 = vrsqrt.f32 %v3592_v6  ;;  %v3589_v60 = vmax.f32 %v3495_v29, 1e-24 }
 0x605   : > { %v3498_v45 = vpop.xlane.xlu1 %3497  ;;  %v3430_v52 = vmul.f32 %v3398_v10, %v8828_v0  ;;  %v10239_v0 = vld [vmem:[#allocation26_spill] sm:$0xff] }
 0x606   : > { %6960 = vrsqrt.f32 %v3589_v60  ;;  %v3590_v40 = vmax.f32 %v3498_v45, 1e-24 }
 0x607   : > { %v9184_v21 = vpop.xlane.xlu0 %3260  ;;  %v3685_v49 = vpack.c.bf16 %v3430_v52, %v3429_v48  ;;  %v10240_v52 = vld [vmem:[#allocation20_spill] sm:$0xff] }
 0x608   : > { %6962 = vrsqrt.f32 %v3590_v40 }
 0x609   : > { %v9186_v33 = vpop.xlane.xlu1 %3263  ;;  %6392 = vmatprep.mubr.msk.bf16.mxu1 %vm1079_vm1, %v3685_v49  ;;  %v10241_v49 = vld [vmem:[#allocation29_spill] sm:$0xff] }
 0x60b   : > { %v9189_v54 = vpop.xlane.xlu0 %3266 }
 0x60c   : > { %v6957_v17 = vpop.eup %6956 }
 0x60d   : > { %v9191_v59 = vpop.xlane.xlu1 %3269  ;;  %v3655_v46 = vmul.f32 %v6957_v17, %v8729_v63 }
 0x60e   : > { %v6959_v41 = vpop.eup %6958 }
 0x60f   : > { %v3513_v47 = vpop.xlane.xlu0 %3512  ;;  %v3656_v31 = vmul.f32 %v6959_v41, %v10239_v0 }
 0x610   : > { %v6961_v35 = vpop.eup %6960  ;;  %v3595_v6 = vmax.f32 %v3513_v47, 1e-24 }
 0x611   : > { %v3516_v29 = vpop.xlane.xlu1 %3515  ;;  %v3702_v10 = vpack.c.bf16 %v3656_v31, %v3655_v46  ;;  %v3653_v40 = vmul.f32 %v6961_v35, %v10240_v52  ;;  %v3333_v46 = vmax.f32 %v9166_v24, 1e-24 }
 0x612   : > { %v6963_v60 = vpop.eup %6962  ;;  %6964 = vrsqrt.f32 %v3595_v6  ;;  %v3596_v45 = vmax.f32 %v3516_v29, 1e-24 }
 0x613   : > { %v3507_v48 = vpop.xlane.xlu0 %3506  ;;  %v3654_v12 = vmul.f32 %v6963_v60, %v10241_v49  ;;  %v3782_v29 = vsel %vm1079_vm1, %v3702_v10, 0  ;;  %v10242_v60 = vld [vmem:[#allocation28_spill] sm:$0xff] }
 0x614   : > { %6966 = vrsqrt.f32 %v3596_v45  ;;  %v3593_v28 = vmax.f32 %v3507_v48, 1e-24  ;;  %v10243_v48 = vld [vmem:[#allocation34_spill] sm:$0xff] }
 0x615   : > { %v3510_v20 = vpop.xlane.xlu1 %3509  ;;  %v3701_v18 = vpack.c.bf16 %v3654_v12, %v3653_v40  ;;  %v3336_v12 = vmax.f32 %v9176_v7, 1e-24 }
 0x616   : > { %6968 = vrsqrt.f32 %v3593_v28  ;;  %v3594_v63 = vmax.f32 %v3510_v20, 1e-24  ;;  %v3334_v28 = vmax.f32 %v9168_v32, 1e-24  ;;  %v3337_v32 = vmax.f32 %v9170_v2, 1e-24 }
 0x617   : > { %6628 = vmatprep.subr.msk.bf16.mxu1 %vm1079_vm1, %v3701_v18  ;;  %v9198_v17 = vpop.xlane.xlu0 %3272  ;;  %v3779_v41 = vsel %vm1079_vm1, %v3701_v18, 0  ;;  %v3335_v18 = vmax.f32 %v9174_v25, 1e-24  ;;  %v3338_v25 = vmax.f32 %v9172_v55, 1e-24 }
 0x618   : > { %6970 = vrsqrt.f32 %v3594_v63  ;;  %6385 = vmatpush3.bf16.xpose.msra.mxu1 %v3779_v41 }
 0x619   : > { %v9201_v47 = vpop.xlane.xlu1 %3275  ;;  %6629 = vmatprep.subr.msk.bf16.mxu1 %vm1079_vm1, %v3702_v10  ;;  %6972 = vrsqrt.f32 %v3333_v46  ;;  %v10244_v46 = vld [vmem:[#allocation32_spill] sm:$0xff] }
 0x61a   : > { %6974 = vrsqrt.f32 %v3334_v28 }
 0x61b   : > { %v9205_v0 = vpop.xlane.xlu0 %3278  ;;  %6976 = vrsqrt.f32 %v3336_v12 }
 0x61c   : > { %v6965_v31 = vpop.eup %6964 }
 0x61d   : > { %v9209_v20 = vpop.xlane.xlu1 %3281  ;;  %v3659_v45 = vmul.f32 %v6965_v31, %v10242_v60  ;;  %v10245_v60 = vld [vmem:[#allocation35_spill] sm:$0xff] }
 0x61e   : > { %v6967_v35 = vpop.eup %6966 }
 0x61f   : > { %v3525_v6 = vpop.xlane.xlu0 %3524  ;;  %v3660_v24 = vmul.f32 %v6967_v35, %v10243_v48 }
 0x620   : > { %v6969_v52 = vpop.eup %6968  ;;  %v3599_v40 = vmax.f32 %v3525_v6, 1e-24  ;;  %6387 = vmatpush3.bf16.xpose.msra.mxu1 %v3782_v29  ;;  %v3340_v6 = vmax.f32 %v9186_v33, 1e-24 }
 0x621   : > { %v3528_v7 = vpop.xlane.xlu1 %3527  ;;  %v3704_v49 = vpack.c.bf16 %v3660_v24, %v3659_v45  ;;  %v3657_v31 = vmul.f32 %v6969_v52, %v10244_v46  ;;  %v3339_v45 = vmax.f32 %v9184_v21, 1e-24 }
 0x622   : > { %v6971_v63 = vpop.eup %6970  ;;  %6978 = vrsqrt.f32 %v3599_v40  ;;  %v3600_v41 = vmax.f32 %v3528_v7, 1e-24 }
 0x623   : > { %6980 = vrsqrt.f32 %v3335_v18  ;;  %v3519_v10 = vpop.xlane.xlu0 %3518  ;;  %v3658_v35 = vmul.f32 %v6971_v63, %v10245_v60  ;;  %v6973_v48 = vpop.eup %6972 }
 0x624   : > { %6982 = vrsqrt.f32 %v3600_v41  ;;  %v3597_v28 = vmax.f32 %v3519_v10, 1e-24  ;;  %v6975_v33 = vpop.eup %6974 }
 0x625   : > { %6984 = vrsqrt.f32 %v3337_v32  ;;  %v3522_v2 = vpop.xlane.xlu1 %3521  ;;  %v3703_v12 = vpack.c.bf16 %v3658_v35, %v3657_v31  ;;  %v6977_v32 = vpop.eup %6976 }
 0x626   : > { %6986 = vrsqrt.f32 %v3597_v28  ;;  %v3598_v29 = vmax.f32 %v3522_v2, 1e-24  ;;  %v3402_v60 = vmul.f32 %v6977_v32, %v9178_v62  ;;  %v3399_v28 = vmul.f32 %v6973_v48, %v9178_v62 }
 0x627   : > { %6988 = vrsqrt.f32 %v3338_v25  ;;  %6630 = vmatprep.subr.msk.bf16.mxu1 %vm1079_vm1, %v3703_v12  ;;  %v3537_v55 = vpop.xlane.xlu0 %3536  ;;  %v3785_v18 = vsel %vm1079_vm1, %v3703_v12, 0  ;;  %v3400_v25 = vmul.f32 %v6975_v33, %v9178_v62  ;;  %v3788_v2 = vsel %vm1079_vm1, %v3704_v49, 0  ;;  %v10246_v12 = vld [vmem:[#allocation38_spill] sm:$0xff]  ;;  %v10247_v33 = vld [vmem:[#allocation49_spill] sm:$0xff] }
 0x628   : > { %6990 = vrsqrt.f32 %v3598_v29  ;;  %v3603_v24 = vmax.f32 %v3537_v55, 1e-24  ;;  %6389 = vmatpush3.bf16.xpose.msra.mxu1 %v3785_v18 }
 0x629   : > { %6992 = vrsqrt.f32 %v3340_v6  ;;  %v3540_v52 = vpop.xlane.xlu1 %3539  ;;  %6631 = vmatprep.subr.msk.bf16.mxu1 %vm1079_vm1, %v3704_v49  ;;  %v10248_v49 = vld [vmem:[#allocation53_spill] sm:$0xff] }
 0x62a   : > { %6994 = vrsqrt.f32 %v3603_v24  ;;  %v3604_v40 = vmax.f32 %v3540_v52, 1e-24 }
 0x62b   : > { %6996 = vrsqrt.f32 %v3339_v45  ;;  %v3531_v7 = vpop.xlane.xlu0 %3530 }
 0x62c   : > { %v6979_v21 = vpop.eup %6978  ;;  %6998 = vrsqrt.f32 %v3604_v40  ;;  %v3601_v63 = vmax.f32 %v3531_v7, 1e-24  ;;  %v3432_v40 = vmul.f32 %v3400_v25, %v10247_v33  ;;  %v10252_v25 = vld [vmem:[#allocation51_spill] sm:$0xff] }
 0x62d   : > { %v6981_v41 = vpop.eup %6980  ;;  %v3534_v10 = vpop.xlane.xlu1 %3533  ;;  %v3663_v29 = vmul.f32 %v6979_v21, %v10246_v12  ;;  %v10249_v12 = vld [vmem:[#allocation48_spill] sm:$0xff] }
 0x62e   : > { %v6983_v46 = vpop.eup %6982  ;;  %7000 = vrsqrt.f32 %v3601_v63  ;;  %v3602_v31 = vmax.f32 %v3534_v10, 1e-24  ;;  %v3401_v24 = vmul.f32 %v6981_v41, %v9178_v62  ;;  %v3434_v10 = vmul.f32 %v3402_v60, %v10248_v49 }
 0x62f   : > { %v6985_v35 = vpop.eup %6984  ;;  %v3549_v6 = vpop.xlane.xlu0 %3548  ;;  %v3664_v45 = vmul.f32 %v6983_v46, %v8779_v30  ;;  %v3431_v30 = vmul.f32 %v3399_v28, %v10249_v12 }
 0x630   : > { %v6987_v55 = vpop.eup %6986  ;;  %7002 = vrsqrt.f32 %v3602_v31  ;;  %v3607_v18 = vmax.f32 %v3549_v6, 1e-24  ;;  %6391 = vmatpush3.bf16.xpose.msra.mxu1 %v3788_v2  ;;  %v10250_v31 = vld [vmem:[#allocation40_spill] sm:$0xff]  ;;  %v10251_v2 = vld [vmem:[#allocation42_spill] sm:$0xff]  ;;  %v3433_v33 = vmul.f32 %v3401_v24, %v10252_v25 }
 0x631   : > { %v6989_v52 = vpop.eup %6988  ;;  %v3552_v32 = vpop.xlane.xlu1 %3551  ;;  %v9232_v7 = vpack.c.bf16 %v3664_v45, %v3663_v29  ;;  %v3661_v6 = vmul.f32 %v6987_v55, %v10250_v31  ;;  %v3686_v45 = vpack.c.bf16 %v3432_v40, %v3431_v30  ;;  %v10256_v25 = vld [vmem:[#allocation50_spill] sm:$0xff] }
 0x632   : > { %v6991_v48 = vpop.eup %6990  ;;  %7004 = vrsqrt.f32 %v3607_v18  ;;  %v3608_v63 = vmax.f32 %v3552_v32, 1e-24  ;;  %v3403_v32 = vmul.f32 %v6985_v35, %v9178_v62  ;;  %v3404_v60 = vmul.f32 %v6989_v52, %v9178_v62 }
 0x633   : > { %v6993_v21 = vpop.eup %6992  ;;  %v3543_v46 = vpop.xlane.xlu0 %3542  ;;  %v3662_v4 = vmul.f32 %v6991_v48, %v10251_v2  ;;  %v3687_v12 = vpack.c.bf16 %v3434_v10, %v3433_v33  ;;  %v3341_v48 = vmax.f32 %v9189_v54, 1e-24  ;;  %v3342_v54 = vmax.f32 %v9191_v59, 1e-24 }
 0x634   : > { %v6995_v41 = vpop.eup %6994  ;;  %7006 = vrsqrt.f32 %v3608_v63  ;;  %v3605_v50 = vmax.f32 %v3543_v46, 1e-24  ;;  %v3406_v55 = vmul.f32 %v6993_v21, %v9178_v62  ;;  %v10254_v21 = vld [vmem:[#allocation52_spill] sm:$0xff]  ;;  %v3435_v33 = vmul.f32 %v3403_v32, %v10256_v25 }
 0x635   : > { %v6997_v29 = vpop.eup %6996  ;;  %v3546_v43 = vpop.xlane.xlu1 %3545  ;;  %v3705_v18 = vpack.c.bf16 %v3662_v4, %v3661_v6  ;;  %v10253_v4 = vld [vmem:[#allocation45_spill] sm:$0xff]  ;;  %v3436_v30 = vmul.f32 %v3404_v60, %v10254_v21  ;;  %v10255_v6 = vld [vmem:[#allocation55_spill] sm:$0xff]  ;;  %v3343_v32 = vmax.f32 %v9198_v17, 1e-24 }
 0x636   : > { %v6999_v49 = vpop.eup %6998  ;;  %7008 = vrsqrt.f32 %v3605_v50  ;;  %v3606_v28 = vmax.f32 %v3546_v43, 1e-24  ;;  %v3667_v63 = vmul.f32 %v6995_v41, %v10253_v4  ;;  %v3405_v43 = vmul.f32 %v6997_v29, %v9178_v62 }
 0x637   : > { %6393 = vmatmul.mubr.msk.bf16.vlgmr.msra.gmra.mrb[136].mxu1 %vm1079_vm1, %v3686_v45  ;;  %6632 = vmatprep.subr.msk.bf16.mxu1 %vm1079_vm1, %v3705_v18  ;;  %v3561_v24 = vpop.xlane.xlu0 %3560  ;;  %v3868_v40 = vsel %vm1079_vm1, %v3705_v18, 0  ;;  %v3668_v35 = vmul.f32 %v6999_v49, %v8799_v22  ;;  %v3438_v2 = vmul.f32 %v3406_v55, %v10255_v6  ;;  %v10257_v49 = vld [vmem:[#allocation54_spill] sm:$0xff] }
 0x638   : > { %v7001_v52 = vpop.eup %7000  ;;  %7010 = vrsqrt.f32 %v3606_v28  ;;  %v3611_v50 = vmax.f32 %v3561_v24, 1e-24  ;;  %6396 = vmatprep.mubr.msk.bf16.mxu1 %vm1079_vm1, %v3687_v12  ;;  %6401 = vmatpush3.bf16.xpose.msra.mxu1 %v3868_v40  ;;  %v3437_v60 = vmul.f32 %v3405_v43, %v10257_v49  ;;  %v3344_v28 = vmax.f32 %v9201_v47, 1e-24 }
 0x639   : > { %v3564_v10 = vpop.xlane.xlu1 %3563  ;;  %6633 = vmatprep.subr.msk.bf16.mxu1 %vm1079_vm1, %v9232_v7  ;;  %v9254_v46 = vpack.c.bf16 %v3668_v35, %v3667_v63  ;;  %v3665_v29 = vmul.f32 %v7001_v52, %v8793_v26  ;;  %v3688_v24 = vpack.c.bf16 %v3436_v30, %v3435_v33  ;;  %v3871_v26 = vsel %vm1079_vm1, %v9232_v7, 0 }
 0x63a   : > { %v7003_v31 = vpop.eup %7002  ;;  %7012 = vrsqrt.f32 %v3611_v50  ;;  %v3612_v22 = vmax.f32 %v3564_v10, 1e-24  ;;  %v3689_v4 = vpack.c.bf16 %v3438_v2, %v3437_v60  ;;  %v3346_v50 = vmax.f32 %v9209_v20, 1e-24 }
 0x63b   : > { %7014 = vrsqrt.f32 %v3341_v48  ;;  %v3555_v41 = vpop.xlane.xlu0 %3554  ;;  %v3666_v59 = vmul.f32 %v7003_v31, %v8803_v51 }
 0x63c   : > { %v7005_v45 = vpop.eup %7004  ;;  %7016 = vrsqrt.f32 %v3612_v22  ;;  %v3609_v18 = vmax.f32 %v3555_v41, 1e-24  ;;  %v3345_v22 = vmax.f32 %v9205_v0, 1e-24 }
 0x63d   : > { %7018 = vrsqrt.f32 %v3342_v54  ;;  %v3558_v12 = vpop.xlane.xlu1 %3557  ;;  %v3707_v40 = vpack.c.bf16 %v3666_v59, %v3665_v29  ;;  %v3671_v63 = vmul.f32 %v7005_v45, %v8813_v56 }
 0x63e   : > { %v7007_v55 = vpop.eup %7006  ;;  %7020 = vrsqrt.f32 %v3609_v18  ;;  %v3610_v48 = vmax.f32 %v3558_v12, 1e-24 }
 0x63f   : > { %6397 = vmatmul.mubr.msk.bf16.gmra.mrb[140].mxu1 %vm1079_vm1, %v3688_v24  ;;  %v3573_v51 = vpop.xlane.xlu0 %3572  ;;  %v3672_v35 = vmul.f32 %v7007_v55, %v8825_v13 }
 0x640   : > { %v7009_v47 = vpop.eup %7008  ;;  %7022 = vrsqrt.f32 %v3610_v48  ;;  %v3615_v52 = vmax.f32 %v3573_v51, 1e-24  ;;  %6403 = vmatpush3.bf16.xpose.msra.mxu1 %v3871_v26  ;;  %6408 = vmatprep.mubr.msk.bf16.mxu1 %vm1079_vm1, %v3689_v4 }
 0x641   : > { %7024 = vrsqrt.f32 %v3344_v28  ;;  %v3576_v17 = vpop.xlane.xlu1 %3575  ;;  %6634 = vmatprep.subr.msk.bf16.mxu1 %vm1079_vm1, %v3707_v40  ;;  %v3710_v43 = vpack.c.bf16 %v3672_v35, %v3671_v63  ;;  %v3669_v13 = vmul.f32 %v7009_v47, %v8818_v34  ;;  %v3874_v34 = vsel %vm1079_vm1, %v3707_v40, 0 }
 0x642   : > { %v7011_v54 = vpop.eup %7010  ;;  %7026 = vrsqrt.f32 %v3615_v52  ;;  %v3616_v7 = vmax.f32 %v3576_v17, 1e-24 }
 0x643   : > { %7028 = vrsqrt.f32 %v3343_v32  ;;  %v3567_v56 = vpop.xlane.xlu0 %3566  ;;  %v3670_v10 = vmul.f32 %v7011_v54, %v8830_v19 }
 0x644   : > { %v7013_v21 = vpop.eup %7012  ;;  %7030 = vrsqrt.f32 %v3616_v7  ;;  %v3613_v30 = vmax.f32 %v3567_v56, 1e-24 }
 0x645   : > { %v7015_v31 = vpop.eup %7014  ;;  %7032 = vrsqrt.f32 %v3346_v50  ;;  %v3570_v20 = vpop.xlane.xlu1 %3569  ;;  %v3709_v6 = vpack.c.bf16 %v3670_v10, %v3669_v13  ;;  %v3675_v29 = vmul.f32 %v7013_v21, %v8844_v44  ;;  %v10258_v10 = vld [vmem:[#allocation57_spill] sm:$0xff] }
 0x646   : > { %v7017_v2 = vpop.eup %7016  ;;  %7034 = vrsqrt.f32 %v3613_v30  ;;  %v3614_v41 = vmax.f32 %v3570_v20, 1e-24  ;;  %v3407_v26 = vmul.f32 %v7015_v31, %v9178_v62  ;;  %v10260_v20 = vld [vmem:[#allocation56_spill] sm:$0xff] }
 0x647   : > { %v7019_v25 = vpop.eup %7018  ;;  %6636 = vmatprep.subr.msk.bf16.mxu0 %vm1079_vm1, %v3709_v6  ;;  %v3285_v33 = vpop.xlane.xlu0 %3284  ;;  %v3957_v19 = vsel %vm1079_vm1, %v3709_v6, 0  ;;  %v3676_v59 = vmul.f32 %v7017_v2, %v8857_v9 }
 0x648   : > { %v7021_v45 = vpop.eup %7020  ;;  %7036 = vrsqrt.f32 %v3614_v41  ;;  %v3347_v0 = vmax.f32 %v3285_v33, 1e-24  ;;  %6405 = vmatpush3.bf16.xpose.msra.mxu1 %v3874_v34  ;;  %6417 = vmatpush3.bf16.xpose.msra.mxu0 %v3957_v19  ;;  %v3408_v48 = vmul.f32 %v7019_v25, %v9178_v62  ;;  %v3439_v6 = vmul.f32 %v3407_v26, %v10260_v20  ;;  %v10261_v19 = vld [vmem:[#allocation58_spill] sm:$0xff] }
 0x649   : > { %7038 = vrsqrt.f32 %v3345_v22  ;;  %v3288_v18 = vpop.xlane.xlu1 %3287  ;;  %6635 = vmatprep.subr.msk.bf16.mxu1 %vm1079_vm1, %v9254_v46  ;;  %6637 = vmatprep.subr.msk.bf16.mxu0 %vm1079_vm1, %v3710_v43  ;;  %v9282_v49 = vpack.c.bf16 %v3676_v59, %v3675_v29  ;;  %v3673_v9 = vmul.f32 %v7021_v45, %v8849_v8  ;;  %v3877_v8 = vsel %vm1079_vm1, %v9254_v46, 0 }
 0x64a   : > { %v7023_v60 = vpop.eup %7022  ;;  %7040 = vrsqrt.f32 %v3347_v0  ;;  %v3348_v28 = vmax.f32 %v3288_v18, 1e-24  ;;  %v3440_v21 = vmul.f32 %v3408_v48, %v10258_v10 }
 0x64b   : > { %v7025_v44 = vpop.eup %7024  ;;  %v3291_v12 = vpop.xlane.xlu0 %3290  ;;  %v3674_v24 = vmul.f32 %v7023_v60, %v8862_v27  ;;  %v3960_v27 = vsel %vm1079_vm1, %v3710_v43, 0 }
 0x64c   : > { %v7027_v40 = vpop.eup %7026  ;;  %7042 = vrsqrt.f32 %v3348_v28  ;;  %v3349_v63 = vmax.f32 %v3291_v12, 1e-24  ;;  %v3410_v47 = vmul.f32 %v7025_v44, %v9178_v62  ;;  %v3690_v59 = vpack.c.bf16 %v3440_v21, %v3439_v6 }
 0x64d   : > { %v7029_v55 = vpop.eup %7028  ;;  %v3294_v4 = vpop.xlane.xlu1 %3293  ;;  %v3711_v32 = vpack.c.bf16 %v3674_v24, %v3673_v9  ;;  %v3679_v17 = vmul.f32 %v7027_v40, %v8875_v16  ;;  %v10259_v16 = vld [vmem:[#allocation59_spill] sm:$0xff] }
 0x64e   : > { %v7031_v51 = vpop.eup %7030  ;;  %v3350_v35 = vmax.f32 %v3294_v4, 1e-24  ;;  %v3409_v13 = vmul.f32 %v7029_v55, %v9178_v62  ;;  %v3442_v22 = vmul.f32 %v3410_v47, %v10259_v16 }
 0x64f   : > { %v7033_v52 = vpop.eup %7032  ;;  %v3297_v50 = vpop.xlane.xlu0 %3296  ;;  %v3680_v54 = vmul.f32 %v7031_v51, %v8886_v23  ;;  %v10262_v51 = vld [vmem:[#allocation61_spill] sm:$0xff] }
 0x650   : > { %v7035_v7 = vpop.eup %7034  ;;  %7044 = vrsqrt.f32 %v3350_v35  ;;  %v3351_v56 = vmax.f32 %v3297_v50, 1e-24  ;;  %6407 = vmatpush3.bf16.xpose.msra.mxu1 %v3877_v8  ;;  %6419 = vmatpush3.bf16.xpose.msra.mxu0 %v3960_v27  ;;  %v3441_v29 = vmul.f32 %v3409_v13, %v10261_v19  ;;  %v3412_v60 = vmul.f32 %v7033_v52, %v9178_v62  ;;  %v10263_v50 = vld [vmem:[#allocation60_spill] sm:$0xff] }
 0x651   : > { %v3300_v30 = vpop.xlane.xlu1 %3299  ;;  %6638 = vmatprep.subr.msk.bf16.mxu0 %vm1079_vm1, %v3711_v32  ;;  %v9297_v31 = vpack.c.bf16 %v3680_v54, %v3679_v17  ;;  %7046 = vrsqrt.f32 %v3349_v63  ;;  %v3677_v41 = vmul.f32 %v7035_v7, %v8877_v1 }
 0x652   : > { %v7037_v46 = vpop.eup %7036  ;;  %v3352_v43 = vmax.f32 %v3300_v30, 1e-24  ;;  %7048 = vrsqrt.f32 %v3351_v56  ;;  %v3691_v12 = vpack.c.bf16 %v3442_v22, %v3441_v29  ;;  %v3444_v26 = vmul.f32 %v3412_v60, %v10262_v51 }
 0x653   : > { %v7039_v23 = vpop.eup %7038  ;;  %v3579_v2 = vpop.xlane.xlu0 %3578  ;;  %v3678_v25 = vmul.f32 %v7037_v46, %v8888_v38  ;;  %v3963_v38 = vsel %vm1079_vm1, %v3711_v32, 0  ;;  %v3966_v30 = vsel %vm1079_vm1, %v9282_v49, 0  ;;  %v4049_v22 = vsel %vm1079_vm1, %v9297_v31, 0 }
 0x654   : > { %v7041_v33 = vpop.eup %7040  ;;  %7050 = vrsqrt.f32 %v3352_v43  ;;  %v3617_v34 = vmax.f32 %v3579_v2, 1e-24  ;;  %v3411_v40 = vmul.f32 %v7039_v23, %v9178_v62 }
 0x655   : > { %v3582_v45 = vpop.xlane.xlu1 %3581  ;;  %v3713_v0 = vpack.c.bf16 %v3678_v25, %v3677_v41  ;;  %v3413_v18 = vmul.f32 %v7041_v33, %v9178_v62 }
 0x656   : > { %v7043_v28 = vpop.eup %7042  ;;  %7052 = vrsqrt.f32 %v3617_v34  ;;  %v3618_v44 = vmax.f32 %v3582_v45, 1e-24  ;;  %v3443_v8 = vmul.f32 %v3411_v40, %v10263_v50 }
 0x657   : > { %6409 = vmatmul.mubr.msk.bf16.vlgmr.msra.gmra.mrb[144].mxu1 %vm1079_vm1, %v3690_v59  ;;  %6640 = vmatprep.subr.msk.bf16.mxu1 %vm1079_vm1, %v3713_v0  ;;  %v3303_v1 = vpop.xlane.xlu0 %3302  ;;  %v4046_v9 = vsel %vm1079_vm1, %v3713_v0, 0  ;;  %v3414_v24 = vmul.f32 %v7043_v28, %v9178_v62  ;;  %v3445_v4 = vmul.f32 %v3413_v18, %v8933_v37 }
 0x658   : > { %7054 = vrsqrt.f32 %v3618_v44  ;;  %v3353_v55 = vmax.f32 %v3303_v1, 1e-24  ;;  %6412 = vmatprep.mubr.msk.bf16.mxu1 %vm1079_vm1, %v3691_v12  ;;  %6421 = vmatpush3.bf16.xpose.msra.mxu0 %v3963_v38 }
 0x659   : > { %6433 = vmatpush3.bf16.xpose.msra.mxu1 %v4046_v9  ;;  %v3306_v48 = vpop.xlane.xlu1 %3305  ;;  %6639 = vmatprep.subr.msk.bf16.mxu0 %vm1079_vm1, %v9282_v49  ;;  %v3446_v32 = vmul.f32 %v3414_v24, %v8944_v5  ;;  %v3692_v5 = vpack.c.bf16 %v3444_v26, %v3443_v8  ;;  %v10264_v8 = vld [vmem:[#allocation64_spill] sm:$0xff] }
 0x65a   : > { %v7045_v63 = vpop.eup %7044  ;;  %7056 = vrsqrt.f32 %v3353_v55  ;;  %v3354_v35 = vmax.f32 %v3306_v48, 1e-24  ;;  %6641 = vmatprep.subr.msk.bf16.mxu1 %vm1079_vm1, %v9297_v31 }
 0x65b   : > { %v3585_v47 = vpop.xlane.xlu0 %3584  ;;  %v3693_v52 = vpack.c.bf16 %v3446_v32, %v3445_v4  ;;  %v7047_v27 = vpop.eup %7046  ;;  %v3416_v37 = vmul.f32 %v7045_v63, %v9178_v62 }
 0x65c   : > { %7058 = vrsqrt.f32 %v3354_v35  ;;  %v3619_v17 = vmax.f32 %v3585_v47, 1e-24  ;;  %v7049_v54 = vpop.eup %7048  ;;  %v3415_v10 = vmul.f32 %v7047_v27, %v9178_v62 }
 0x65d   : > { %v3588_v7 = vpop.xlane.xlu1 %3587  ;;  %6424 = vmatprep.mubr.msk.bf16.mxu0 %vm1079_vm1, %v3693_v52  ;;  %v3417_v23 = vmul.f32 %v7049_v54, %v9178_v62  ;;  %v3448_v20 = vmul.f32 %v3416_v37, %v8941_v42 }
 0x65e   : > { %v7051_v56 = vpop.eup %7050  ;;  %7060 = vrsqrt.f32 %v3619_v17  ;;  %v3620_v13 = vmax.f32 %v3588_v7, 1e-24  ;;  %v3447_v25 = vmul.f32 %v3415_v10, %v8928_v61 }
 0x65f   : > { %6413 = vmatmul.mubr.msk.bf16.gmra.mrb[148].mxu1 %vm1079_vm1, %v3692_v5  ;;  %v3309_v21 = vpop.xlane.xlu0 %3308  ;;  %v3418_v46 = vmul.f32 %v7051_v56, %v9178_v62  ;;  %v3449_v59 = vmul.f32 %v3417_v23, %v8965_v15  ;;  %v10265_v5 = vld [vmem:[#allocation62_spill] sm:$0xff] }
 0x660   : > { %v7053_v43 = vpop.eup %7052  ;;  %7062 = vrsqrt.f32 %v3620_v13  ;;  %v3355_v16 = vmax.f32 %v3309_v21, 1e-24  ;;  %6423 = vmatpush3.bf16.xpose.msra.mxu0 %v3966_v30  ;;  %v3694_v42 = vpack.c.bf16 %v3448_v20, %v3447_v25  ;;  %v10266_v13 = vld [vmem:[#allocation63_spill] sm:$0xff] }
 0x661   : > { %6435 = vmatpush3.bf16.xpose.msra.mxu1 %v4049_v22  ;;  %v3312_v6 = vpop.xlane.xlu1 %3311  ;;  %v3450_v49 = vmul.f32 %v3418_v46, %v8977_v3  ;;  %v3681_v34 = vmul.f32 %v7053_v43, %v8906_v57 }
 0x662   : > { %v7055_v2 = vpop.eup %7054  ;;  %7064 = vrsqrt.f32 %v3355_v16  ;;  %v3356_v41 = vmax.f32 %v3312_v6, 1e-24  ;;  %v10267_v6 = vld [vmem:[#allocation66_spill] sm:$0xff] }
 0x663   : > { %v3315_v33 = vpop.xlane.xlu0 %3314  ;;  %v3682_v19 = vmul.f32 %v7055_v2, %v8917_v39  ;;  %v3695_v28 = vpack.c.bf16 %v3450_v49, %v3449_v59 }
 0x664   : > { %v7057_v29 = vpop.eup %7056  ;;  %7066 = vrsqrt.f32 %v3356_v41  ;;  %v3357_v31 = vmax.f32 %v3315_v33, 1e-24  ;;  %v10268_v41 = vld [vmem:[#allocation68_spill] sm:$0xff] }
 0x665   : > { %v3318_v45 = vpop.xlane.xlu1 %3317  ;;  %v3715_v0 = vpack.c.bf16 %v3682_v19, %v3681_v34  ;;  %v3419_v39 = vmul.f32 %v7057_v29, %v9178_v62 }
 0x666   : > { %v7059_v18 = vpop.eup %7058  ;;  %7068 = vrsqrt.f32 %v3357_v31  ;;  %v3358_v60 = vmax.f32 %v3318_v45, 1e-24  ;;  %v10269_v31 = vld [vmem:[#allocation65_spill] sm:$0xff] }
 0x667   : > { %6425 = vmatmul.mubr.msk.bf16.vlgmr.msra.gmra.mrb[120].mxu0 %vm1079_vm1, %v3694_v42  ;;  %6642 = vmatprep.subr.msk.bf16.mxu1 %vm1079_vm1, %v3715_v0  ;;  %v3321_v61 = vpop.xlane.xlu0 %3320  ;;  %v4052_v57 = vsel %vm1079_vm1, %v3715_v0, 0  ;;  %v3420_v3 = vmul.f32 %v7059_v18, %v9178_v62  ;;  %v3451_v40 = vmul.f32 %v3419_v39, %v8961_v14  ;;  %v10270_v42 = vld [vmem:[#allocation67_spill] sm:$0xff] }
 0x668   : > { %v7061_v44 = vpop.eup %7060  ;;  %7070 = vrsqrt.f32 %v3358_v60  ;;  %v3359_v15 = vmax.f32 %v3321_v61, 1e-24  ;;  %6428 = vmatprep.mubr.msk.bf16.mxu0 %vm1079_vm1, %v3695_v28 }
 0x669   : > { %6437 = vmatpush3.bf16.xpose.msra.mxu1 %v4052_v57  ;;  %v3324_v12 = vpop.xlane.xlu1 %3323  ;;  %v3452_v1 = vmul.f32 %v3420_v3, %v8974_v58  ;;  %v3683_v55 = vmul.f32 %v7061_v44, %v8904_v53 }
 0x66a   : > { %v7063_v38 = vpop.eup %7062  ;;  %7072 = vrsqrt.f32 %v3359_v15  ;;  %v3360_v9 = vmax.f32 %v3324_v12, 1e-24 }
 0x66b   : > { %v3327_v24 = vpop.xlane.xlu0 %3326  ;;  %v3684_v48 = vmul.f32 %v7063_v38, %v8915_v11  ;;  %v3696_v26 = vpack.c.bf16 %v3452_v1, %v3451_v40 }
 0x66c   : > { %v7065_v4 = vpop.eup %7064  ;;  %7074 = vrsqrt.f32 %v3360_v9  ;;  %v3361_v32 = vmax.f32 %v3327_v24, 1e-24 }
 0x66d   : > { %v3330_v51 = vpop.xlane.xlu1 %3329  ;;  %v3716_v63 = vpack.c.bf16 %v3684_v48, %v3683_v55  ;;  %v3421_v35 = vmul.f32 %v7065_v4, %v9178_v62 }
 0x66e   : > { %v7067_v47 = vpop.eup %7066  ;;  %7076 = vrsqrt.f32 %v3361_v32  ;;  %v3362_v58 = vmax.f32 %v3330_v51, 1e-24 }
 0x66f   : > { %6429 = vmatmul.mubr.msk.bf16.gmra.mrb[124].mxu0 %vm1079_vm1, %v3696_v26  ;;  %6643 = vmatprep.subr.msk.bf16.mxu1 %vm1079_vm1, %v3716_v63  ;;  %v4055_v14 = vsel %vm1079_vm1, %v3716_v63, 0  ;;  %v3422_v53 = vmul.f32 %v7067_v47, %v9178_v62  ;;  %v3453_v50 = vmul.f32 %v3421_v35, %v8994_v36 }
 0x670   : > { %v7069_v11 = vpop.eup %7068  ;;  %7078 = vrsqrt.f32 %v3362_v58  ;;  %v6354_v30 = vpop.f32.mrb[88].mxu0 }
 0x671   : > { %v3423_v52 = vmul.f32 %v7069_v11, %v9178_v62  ;;  %6439 = vmatpush3.bf16.xpose.msra.mxu1 %v4055_v14  ;;  %v3454_v27 = vmul.f32 %v3422_v53, %v10264_v8  ;;  %v3076_v43 = vpop.f32.mrb[89].mxu0 }
 0x672   : > { %v7071_v17 = vpop.eup %7070  ;;  %v6355_v22 = vpop.f32.mrb[90].mxu0 }
 0x673   : > { %v3424_v54 = vmul.f32 %v7071_v17, %v9178_v62  ;;  %v3697_v37 = vpack.c.bf16 %v3454_v27, %v3453_v50  ;;  %v3455_v56 = vmul.f32 %v3423_v52, %v10265_v5  ;;  %v3079_v20 = vpop.f32.mrb[91].mxu0  ;;  %v3718_v0 = vpack.c.bf16 %v6355_v22, %v6354_v30  ;;  %v5666_v22 = vld [vmem:[%s10029_s7 + $0x108] sm:$0xff] }
 0x674   : > { %v7073_v7 = vpop.eup %7072  ;;  %v3717_v33 = vpack.c.bf16 %v3079_v20, %v3076_v43 }
 0x675   : > { %v3456_v10 = vmul.f32 %v3424_v54, %v10266_v13  ;;  %6440 = vmatprep.mubr.msk.bf16.mxu1 %vm1079_vm1, %v3697_v37  ;;  %v3425_v21 = vmul.f32 %v7073_v7, %v9178_v62 }
 0x676   : > { %v7075_v46 = vpop.eup %7074  ;;  %6448 = vmatprep.subr.bf16.mxu0 %v3717_v33 }
 0x677   : > { %v3698_v16 = vpack.c.bf16 %v3456_v10, %v3455_v56  ;;  %v3426_v36 = vmul.f32 %v7075_v46, %v9178_v62  ;;  %v3457_v2 = vmul.f32 %v3425_v21, %v10267_v6  ;;  %6449 = vmatpush3.bf16.msra.mxu0 %v3717_v33  ;;  %v5665_v46 = vld [vmem:[%s10029_s7 + $0x100] sm:$0xff]  ;;  %v5668_v6 = vld [vmem:[%s10029_s7 + $0x118] sm:$0xff] }
 0x678   : > { %v7077_v23 = vpop.eup %7076  ;;  %v6358_v18 = vpop.f32.mrb[92].mxu0  ;;  %6450 = vmatprep.subr.bf16.mxu0 %v3718_v0 }
 0x679   : > { %6441 = vmatmul.mubr.msk.bf16.vlgmr.msra.gmra.mrb[152].mxu1 %vm1079_vm1, %v3698_v16  ;;  %v3458_v49 = vmul.f32 %v3426_v36, %v10268_v41  ;;  %v3427_v25 = vmul.f32 %v7077_v23, %v9178_v62  ;;  %v3092_v60 = vpop.f32.mrb[93].mxu0  ;;  %v5667_v16 = vld [vmem:[%s10029_s7 + $0x110] sm:$0xff] }
 0x67a   : > { %v7079_v34 = vpop.eup %7078  ;;  %v6359_v61 = vpop.f32.mrb[94].mxu0 }
 0x67b   : > { %v3699_v19 = vpack.c.bf16 %v3458_v49, %v3457_v2  ;;  %v3428_v29 = vmul.f32 %v7079_v34, %v9178_v62  ;;  %v3459_v59 = vmul.f32 %v3427_v25, %v10269_v31  ;;  %v3095_v57 = vpop.f32.mrb[95].mxu0  ;;  %6451 = vmatpush3.bf16.msra.mxu0 %v3718_v0  ;;  %v3720_v62 = vpack.c.bf16 %v6359_v61, %v6358_v18 }
 0x67c   : > { %v3719_v39 = vpack.c.bf16 %v3095_v57, %v3092_v60 }
 0x67d   : > { %6444 = vmatprep.mubr.msk.bf16.mxu1 %vm1079_vm1, %v3699_v19  ;;  %v3460_v45 = vmul.f32 %v3428_v29, %v10270_v42  ;;  %v5669_v19 = vld [vmem:[%s10029_s7 + $0x120] sm:$0xff] }
 0x67e   : > { %6452 = vmatprep.subr.bf16.mxu0 %v3719_v39 }
 0x67f   : > { %v3700_v28 = vpack.c.bf16 %v3460_v45, %v3459_v59  ;;  %6453 = vmatpush3.bf16.msra.mxu0 %v3719_v39  ;;  %v5671_v59 = vld [vmem:[%s10029_s7 + $0x130] sm:$0xff]  ;;  %v5670_v45 = vld [vmem:[%s10029_s7 + $0x128] sm:$0xff] }
 0x680   : > { %v6362_v3 = vpop.f32.mrb[96].mxu0  ;;  %6454 = vmatprep.subr.bf16.mxu0 %v3720_v62 }
 0x681   : > { %6445 = vmatmul.mubr.msk.bf16.gmra.mrb[156].mxu1 %vm1079_vm1, %v3700_v28  ;;  %v3108_v44 = vpop.f32.mrb[97].mxu0  ;;  %v5672_v28 = vld [vmem:[%s10029_s7 + $0x138] sm:$0xff] }
 0x682   : > { %v6363_v15 = vpop.f32.mrb[98].mxu0 }
 0x683   : > { %v3111_v12 = vpop.f32.mrb[99].mxu0  ;;  %6455 = vmatpush3.bf16.msra.mxu0 %v3720_v62  ;;  %v3722_v38 = vpack.c.bf16 %v6363_v15, %v6362_v3 }
 0x684   : > { %v3721_v1 = vpack.c.bf16 %v3111_v12, %v3108_v44 }
 0x686   : > { %6464 = vmatprep.subr.bf16.mxu1 %v3721_v1 }
 0x687   : > { %6465 = vmatpush3.bf16.msra.mxu1 %v3721_v1  ;;  %v5673_v1 = vld [vmem:[%s10029_s7 + $0x140] sm:$0xff] }
 0x688   : > { %v6366_v9 = vpop.f32.mrb[100].mxu0  ;;  %6466 = vmatprep.subr.bf16.mxu1 %v3722_v38 }
 0x689   : > { %v3124_v24 = vpop.f32.mrb[101].mxu0 }
 0x68a   : > { %v6367_v40 = vpop.f32.mrb[102].mxu0 }
 0x68b   : > { %v3127_v55 = vpop.f32.mrb[103].mxu0  ;;  %6467 = vmatpush3.bf16.msra.mxu1 %v3722_v38  ;;  %v3724_v4 = vpack.c.bf16 %v6367_v40, %v6366_v9  ;;  %v5675_v9 = vld [vmem:[%s10029_s7 + $0x150] sm:$0xff]  ;;  %v5674_v40 = vld [vmem:[%s10029_s7 + $0x148] sm:$0xff] }
 0x68c   : > { %v3723_v48 = vpack.c.bf16 %v3127_v55, %v3124_v24 }
 0x68e   : > { %6468 = vmatprep.subr.bf16.mxu1 %v3723_v48 }
 0x68f   : > { %6469 = vmatpush3.bf16.msra.mxu1 %v3723_v48 }
 0x690   : > { %6470 = vmatprep.subr.bf16.mxu1 %v3724_v4  ;;  %v6370_v32 = vpop.f32.mrb[104].mxu0 }
 0x691   : > { %v3140_v51 = vpop.f32.mrb[105].mxu0 }
 0x692   : > { %v6371_v26 = vpop.f32.mrb[106].mxu0 }
 0x693   : > { %6471 = vmatpush3.bf16.msra.mxu1 %v3724_v4  ;;  %v3143_v63 = vpop.f32.mrb[107].mxu0  ;;  %v9370_v35 = vpack.c.bf16 %v6371_v26, %v6370_v32  ;;  %v5676_v4 = vld [vmem:[%s10029_s7 + $0x158] sm:$0xff] }
 0x694   : > { %v9372_v47 = vpack.c.bf16 %v3143_v63, %v3140_v51 }
 0x696   : > { %6480 = vmatprep.subr.bf16.mxu0 %v9372_v47 }
 0x698   : > { %v6374_v58 = vpop.f32.mrb[108].mxu0 }
 0x699   : > { %v3156_v14 = vpop.f32.mrb[109].mxu0 }
 0x69a   : > { %v6375_v53 = vpop.f32.mrb[110].mxu0 }
 0x69b   : > { %v3159_v11 = vpop.f32.mrb[111].mxu0  ;;  %v9375_v52 = vpack.c.bf16 %v6375_v53, %v6374_v58  ;;  %v5677_v53 = vld [vmem:[%s10029_s7 + $0x160] sm:$0xff] }
 0x69c   : > { %v9377_v50 = vpack.c.bf16 %v3159_v11, %v3156_v14 }
 0x6a0   : > { %v6378_v8 = vpop.f32.mrb[112].mxu0 }
 0x6a1   : > { %v3172_v27 = vpop.f32.mrb[113].mxu0 }
 0x6a2   : > { %v6379_v17 = vpop.f32.mrb[114].mxu0 }
 0x6a3   : > { %v3175_v54 = vpop.f32.mrb[115].mxu0  ;;  %v9379_v37 = vpack.c.bf16 %v6379_v17, %v6378_v8 }
 0x6a4   : > { %v9381_v7 = vpack.c.bf16 %v3175_v54, %v3172_v27  ;;  %v5679_v27 = vld [vmem:[%s10029_s7 + $0x170] sm:$0xff]  ;;  %v5678_v54 = vld [vmem:[%s10029_s7 + $0x168] sm:$0xff] }
 0x6a6   : > { %6496 = vmatprep.subr.bf16.mxu1 %v9381_v7 }
 0x6a8   : > { %v6382_v5 = vpop.f32.mrb[116].mxu0 }
 0x6a9   : > { %v3188_v56 = vpop.f32.mrb[117].mxu0 }
 0x6aa   : > { %v6383_v13 = vpop.f32.mrb[118].mxu0 }
 0x6ab   : > { %v3191_v10 = vpop.f32.mrb[119].mxu0  ;;  %v9384_v21 = vpack.c.bf16 %v6383_v13, %v6382_v5 }
 0x6ac   : > { %v9386_v30 = vpack.c.bf16 %v3191_v10, %v3188_v56  ;;  %v5680_v10 = vld [vmem:[%s10029_s7 + $0x178] sm:$0xff] }
 0x70a   : > { %v6394_v43 = vpop.f32.mrb[136].mxu1 }
 0x70b   : > { %v3824_v36 = vpop.f32.mrb[137].mxu1  ;;  %v9402_v41 = vadd.f32 %v6394_v43, %v5667_v16 }
 0x70c   : > { %v9397_v23 = vadd.f32 %v5665_v46, %v3824_v36  ;;  %v6395_v20 = vpop.f32.mrb[138].mxu1 }
 0x70d   : > { %v3827_v2 = vpop.f32.mrb[139].mxu1  ;;  %v9408_v33 = vadd.f32 %v6395_v20, %v5668_v6  ;;  %v4128_v31 = vsel %vm1966_vm2, %v9402_v41, -inf  ;;  %v5681_v6 = vld [vmem:[%s10029_s7 + $0x180] sm:$0xff] }
 0x70e   : > { %v9404_v49 = vadd.f32 %v5666_v22, %v3827_v2  ;;  %v4122_v25 = vsel %vm1966_vm2, %v9397_v23, -inf }
 0x70f   : > { %4123 = vmax.xlane.f32.xlu0 %v4122_v25  ;;  %v4131_v60 = vsel %vm1966_vm2, %v9408_v33, -inf }
 0x710   : > { %v4125_v34 = vsel %vm1966_vm2, %v9404_v49, -inf }
 0x711   : > { %4126 = vmax.xlane.f32.xlu1 %v4125_v34  ;;  %v5683_v34 = vld [vmem:[%s10029_s7 + $0x190] sm:$0xff] }
 0x712   : > { %v6398_v29 = vpop.f32.mrb[140].mxu1 }
 0x713   : > { %v3840_v42 = vpop.f32.mrb[141].mxu1  ;;  %4129 = vmax.xlane.f32.xlu0 %v4128_v31  ;;  %v9430_v57 = vadd.f32 %v6398_v29, %v5671_v59  ;;  %v5682_v29 = vld [vmem:[%s10029_s7 + $0x188] sm:$0xff] }
 0x714   : > { %v9423_v0 = vadd.f32 %v5669_v19, %v3840_v42  ;;  %v6399_v18 = vpop.f32.mrb[142].mxu1 }
 0x715   : > { %v3843_v61 = vpop.f32.mrb[143].mxu1  ;;  %4132 = vmax.xlane.f32.xlu1 %v4131_v60  ;;  %v9436_v3 = vadd.f32 %v6399_v18, %v5672_v28  ;;  %v4140_v15 = vsel %vm1966_vm2, %v9430_v57, -inf }
 0x716   : > { %v9432_v39 = vadd.f32 %v5670_v45, %v3843_v61  ;;  %v4134_v62 = vsel %vm1966_vm2, %v9423_v0, -inf  ;;  %v5684_v45 = vld [vmem:[%s10029_s7 + $0x198] sm:$0xff] }
 0x717   : > { %4135 = vmax.xlane.f32.xlu0 %v4134_v62  ;;  %v4143_v12 = vsel %vm1966_vm2, %v9436_v3, -inf }
 0x718   : > { %v4137_v44 = vsel %vm1966_vm2, %v9432_v39, -inf }
 0x719   : > { %4138 = vmax.xlane.f32.xlu1 %v4137_v44 }
 0x71b   : > { %4141 = vmax.xlane.f32.xlu0 %v4140_v15  ;;  %v5685_v15 = vld [vmem:[%s10029_s7 + $0x1a0] sm:$0xff] }
 0x71d   : > { %4144 = vmax.xlane.f32.xlu1 %v4143_v12 }
 0x72a   : > { %v6410_v38 = vpop.f32.mrb[144].mxu1 }
 0x72b   : > { %v3913_v24 = vpop.f32.mrb[145].mxu1  ;;  %v9458_v51 = vadd.f32 %v6410_v38, %v5675_v9  ;;  %v5687_v38 = vld [vmem:[%s10029_s7 + $0x1b0] sm:$0xff] }
 0x72c   : > { %v9453_v55 = vadd.f32 %v5673_v1, %v3913_v24  ;;  %v6411_v48 = vpop.f32.mrb[146].mxu1  ;;  %v5686_v24 = vld [vmem:[%s10029_s7 + $0x1a8] sm:$0xff] }
 0x72d   : > { %v3916_v32 = vpop.f32.mrb[147].mxu1  ;;  %v9464_v58 = vadd.f32 %v6411_v48, %v5676_v4  ;;  %v4152_v8 = vsel %vm1966_vm2, %v9458_v51, -inf }
 0x72e   : > { %v9460_v26 = vadd.f32 %v5674_v40, %v3916_v32  ;;  %v4146_v63 = vsel %vm1966_vm2, %v9453_v55, -inf  ;;  %v5688_v32 = vld [vmem:[%s10029_s7 + $0x1b8] sm:$0xff] }
 0x72f   : > { %4147 = vmax.xlane.f32.xlu0 %v4146_v63  ;;  %v4155_v13 = vsel %vm1966_vm2, %v9464_v58, -inf }
 0x730   : > { %v4149_v14 = vsel %vm1966_vm2, %v9460_v26, -inf }
 0x731   : > { %4150 = vmax.xlane.f32.xlu1 %v4149_v14 }
 0x732   : > { %v6414_v11 = vpop.f32.mrb[148].mxu1 }
 0x733   : > { %v3929_v17 = vpop.f32.mrb[149].mxu1  ;;  %4153 = vmax.xlane.f32.xlu0 %v4152_v8  ;;  %v9486_v43 = vadd.f32 %v6414_v11, %v5679_v27 }
 0x734   : > { %v9479_v5 = vadd.f32 %v5677_v53, %v3929_v17  ;;  %v6415_v56 = vpop.f32.mrb[150].mxu1 }
 0x735   : > { %v3932_v46 = vpop.f32.mrb[151].mxu1  ;;  %4156 = vmax.xlane.f32.xlu1 %v4155_v13  ;;  %v9492_v22 = vadd.f32 %v6415_v56, %v5680_v10  ;;  %v4164_v25 = vsel %vm1966_vm2, %v9486_v43, -inf  ;;  %v5691_v10 = vld [vmem:[%s10029_s7 + $0x1d0] sm:$0xff] }
 0x736   : > { %v9488_v16 = vadd.f32 %v5678_v54, %v3932_v46  ;;  %v4158_v36 = vsel %vm1966_vm2, %v9479_v5, -inf  ;;  %v5689_v54 = vld [vmem:[%s10029_s7 + $0x1c0] sm:$0xff] }
 0x737   : > { %4159 = vmax.xlane.f32.xlu0 %v4158_v36  ;;  %v4167_v42 = vsel %vm1966_vm2, %v9492_v22, -inf  ;;  %v5690_v36 = vld [vmem:[%s10029_s7 + $0x1c8] sm:$0xff] }
 0x738   : > { %v4161_v20 = vsel %vm1966_vm2, %v9488_v16, -inf }
 0x739   : > { %4162 = vmax.xlane.f32.xlu1 %v4161_v20 }
 0x73a   : > { %v6426_v2 = vpop.f32.mrb[120].mxu0 }
 0x73b   : > { %4165 = vmax.xlane.f32.xlu0 %v4164_v25  ;;  %v4002_v19 = vpop.f32.mrb[121].mxu0  ;;  %v9514_v60 = vadd.f32 %v6426_v2, %v5683_v34  ;;  %v5692_v2 = vld [vmem:[%s10029_s7 + $0x1d8] sm:$0xff] }
 0x73c   : > { %v9507_v31 = vadd.f32 %v5681_v6, %v4002_v19  ;;  %v6427_v59 = vpop.f32.mrb[122].mxu0 }
 0x73d   : > { %4168 = vmax.xlane.f32.xlu1 %v4167_v42  ;;  %v4005_v18 = vpop.f32.mrb[123].mxu0  ;;  %v9520_v62 = vadd.f32 %v6427_v59, %v5684_v45  ;;  %v4176_v1 = vsel %vm1966_vm2, %v9514_v60, -inf  ;;  %v5693_v45 = vld [vmem:[%s10029_s7 + $0x1e0] sm:$0xff] }
 0x73e   : > { %v9516_v28 = vadd.f32 %v5682_v29, %v4005_v18  ;;  %v4170_v61 = vsel %vm1966_vm2, %v9507_v31, -inf }
 0x73f   : > { %4171 = vmax.xlane.f32.xlu0 %v4170_v61  ;;  %v4179_v4 = vsel %vm1966_vm2, %v9520_v62, -inf }
 0x740   : > { %v4173_v44 = vsel %vm1966_vm2, %v9516_v28, -inf }
 0x741   : > { %4174 = vmax.xlane.f32.xlu1 %v4173_v44  ;;  %v5695_v44 = vld [vmem:[%s10029_s7 + $0x1f0] sm:$0xff] }
 0x742   : > { %v6430_v12 = vpop.f32.mrb[124].mxu0 }
 0x743   : > { %4177 = vmax.xlane.f32.xlu0 %v4176_v1  ;;  %v4018_v9 = vpop.f32.mrb[125].mxu0  ;;  %v9542_v14 = vadd.f32 %v6430_v12, %v5687_v38  ;;  %v5694_v12 = vld [vmem:[%s10029_s7 + $0x1e8] sm:$0xff] }
 0x744   : > { %v9535_v40 = vadd.f32 %v5685_v15, %v4018_v9  ;;  %v6431_v48 = vpop.f32.mrb[126].mxu0 }
 0x745   : > { %4180 = vmax.xlane.f32.xlu1 %v4179_v4  ;;  %v4021_v63 = vpop.f32.mrb[127].mxu0  ;;  %v9548_v8 = vadd.f32 %v6431_v48, %v5688_v32  ;;  %v4188_v17 = vsel %vm1966_vm2, %v9542_v14, -inf }
 0x746   : > { %v9544_v53 = vadd.f32 %v5686_v24, %v4021_v63  ;;  %v4182_v11 = vsel %vm1966_vm2, %v9535_v40, -inf  ;;  %v5696_v24 = vld [vmem:[%s10029_s7 + $0x1f8] sm:$0xff] }
 0x747   : > { %4183 = vmax.xlane.f32.xlu0 %v4182_v11  ;;  %v4191_v13 = vsel %vm1966_vm2, %v9548_v8, -inf }
 0x748   : > { %v4185_v27 = vsel %vm1966_vm2, %v9544_v53, -inf }
 0x749   : > { %4186 = vmax.xlane.f32.xlu1 %v4185_v27 }
 0x74b   : > { %4189 = vmax.xlane.f32.xlu0 %v4188_v17 }
 0x74c   : > { %v6442_v56 = vpop.f32.mrb[152].mxu1 }
 0x74d   : > { %4192 = vmax.xlane.f32.xlu1 %v4191_v13  ;;  %v4091_v46 = vpop.f32.mrb[153].mxu1  ;;  %v9570_v34 = vadd.f32 %v6442_v56, %v5691_v10 }
 0x74e   : > { %v9565_v20 = vadd.f32 %v5689_v54, %v4091_v46  ;;  %v6443_v6 = vpop.f32.mrb[154].mxu1 }
 0x74f   : > { %v4094_v25 = vpop.f32.mrb[155].mxu1  ;;  %v9576_v59 = vadd.f32 %v6443_v6, %v5692_v2  ;;  %v4200_v61 = vsel %vm1966_vm2, %v9570_v34, -inf }
 0x750   : > { %v9572_v19 = vadd.f32 %v5690_v36, %v4094_v25  ;;  %v4194_v29 = vsel %vm1966_vm2, %v9565_v20, -inf }
 0x751   : > { %4195 = vmax.xlane.f32.xlu0 %v4194_v29  ;;  %v4203_v9 = vsel %vm1966_vm2, %v9576_v59, -inf }
 0x752   : > { %v4197_v42 = vsel %vm1966_vm2, %v9572_v19, -inf }
 0x753   : > { %4198 = vmax.xlane.f32.xlu1 %v4197_v42 }
 0x754   : > { %v6446_v18 = vpop.f32.mrb[156].mxu1 }
 0x755   : > { %4201 = vmax.xlane.f32.xlu0 %v4200_v61  ;;  %v4107_v15 = vpop.f32.mrb[157].mxu1  ;;  %v9598_v4 = vadd.f32 %v6446_v18, %v5695_v44 }
 0x756   : > { %v9591_v1 = vadd.f32 %v5693_v45, %v4107_v15  ;;  %v6447_v38 = vpop.f32.mrb[158].mxu1 }
 0x757   : > { %4204 = vmax.xlane.f32.xlu1 %v4203_v9  ;;  %v4110_v48 = vpop.f32.mrb[159].mxu1  ;;  %v9604_v11 = vadd.f32 %v6447_v38, %v5696_v24  ;;  %v4212_v17 = vsel %vm1966_vm2, %v9598_v4, -inf }
 0x758   : > { %v9600_v32 = vadd.f32 %v5694_v12, %v4110_v48  ;;  %v4206_v63 = vsel %vm1966_vm2, %v9591_v1, -inf }
 0x759   : > { %4207 = vmax.xlane.f32.xlu0 %v4206_v63  ;;  %v4215_v54 = vsel %vm1966_vm2, %v9604_v11, -inf }
 0x75a   : > { %v4209_v27 = vsel %vm1966_vm2, %v9600_v32, -inf }
 0x75b   : > { %4210 = vmax.xlane.f32.xlu1 %v4209_v27 }
 0x75d   : > { %4213 = vmax.xlane.f32.xlu0 %v4212_v17 }
 0x75f   : > { %4216 = vmax.xlane.f32.xlu1 %v4215_v54 }
 0x79c   : > { %v4124_v56 = vpop.xlane.xlu0 %4123 }
 0x79d   : > { %v4218_v13 = vsub.f32 %v9397_v23, %v4124_v56 }
 0x79e   : > { %v4127_v10 = vpop.xlane.xlu1 %4126 }
 0x79f   : > { %v4250_v46 = vmul.f32 1.442695, %v4218_v13  ;;  %v4219_v36 = vsub.f32 %v9404_v49, %v4127_v10 }
 0x7a0   : > { %v4130_v6 = vpop.xlane.xlu0 %4129 }
 0x7a1   : > { %7080 = vpow2.f32 %v4250_v46  ;;  %v4252_v2 = vmul.f32 1.442695, %v4219_v36  ;;  %v4220_v25 = vsub.f32 %v9402_v41, %v4130_v6 }
 0x7a2   : > { %v4133_v29 = vpop.xlane.xlu1 %4132 }
 0x7a3   : > { %7082 = vpow2.f32 %v4252_v2  ;;  %v4254_v42 = vmul.f32 1.442695, %v4220_v25  ;;  %v4221_v45 = vsub.f32 %v9408_v33, %v4133_v29 }
 0x7a4   : > { %v4136_v18 = vpop.xlane.xlu0 %4135 }
 0x7a5   : > { %7084 = vpow2.f32 %v4254_v42  ;;  %v4256_v61 = vmul.f32 1.442695, %v4221_v45  ;;  %v4222_v44 = vsub.f32 %v9423_v0, %v4136_v18 }
 0x7a6   : > { %v4139_v23 = vpop.xlane.xlu1 %4138 }
 0x7a7   : > { %7086 = vpow2.f32 %v4256_v61  ;;  %v4258_v15 = vmul.f32 1.442695, %v4222_v44  ;;  %v4223_v49 = vsub.f32 %v9432_v39, %v4139_v23 }
 0x7a8   : > { %v4142_v12 = vpop.xlane.xlu0 %4141 }
 0x7a9   : > { %7088 = vpow2.f32 %v4258_v15  ;;  %v4260_v38 = vmul.f32 1.442695, %v4223_v49  ;;  %v4224_v41 = vsub.f32 %v9430_v57, %v4142_v12 }
 0x7aa   : > { %v4145_v9 = vpop.xlane.xlu1 %4144 }
 0x7ab   : > { %v9619_v24 = vpop.eup %7080  ;;  %7090 = vpow2.f32 %v4260_v38  ;;  %v4262_v33 = vmul.f32 1.442695, %v4224_v41  ;;  %v4225_v48 = vsub.f32 %v9436_v3, %v4145_v9 }
 0x7ac   : > { %v4314_v0 = vsel %vm1966_vm2, %v9619_v24, 0.0 }
 0x7ad   : > { %v9624_v63 = vpop.eup %7082  ;;  %7092 = vpow2.f32 %v4262_v33  ;;  %v4264_v27 = vmul.f32 1.442695, %v4225_v48  ;;  %4315 = vadd.xlane.f32.xlu0 %v4314_v0 }
 0x7ae   : > { %v4317_v39 = vsel %vm1966_vm2, %v9624_v63, 0.0 }
 0x7af   : > { %v9628_v17 = vpop.eup %7084  ;;  %7094 = vpow2.f32 %v4264_v27  ;;  %4318 = vadd.xlane.f32.xlu1 %v4317_v39 }
 0x7b0   : > { %v4320_v57 = vsel %vm1966_vm2, %v9628_v17, 0.0 }
 0x7b1   : > { %v9632_v54 = vpop.eup %7086  ;;  %4321 = vadd.xlane.f32.xlu0 %v4320_v57 }
 0x7b2   : > { %v4323_v3 = vsel %vm1966_vm2, %v9632_v54, 0.0 }
 0x7b3   : > { %v9636_v56 = vpop.eup %7088  ;;  %4324 = vadd.xlane.f32.xlu1 %v4323_v3 }
 0x7b4   : > { %v4326_v13 = vsel %vm1966_vm2, %v9636_v56, 0.0 }
 0x7b5   : > { %v9640_v10 = vpop.eup %7090  ;;  %4327 = vadd.xlane.f32.xlu0 %v4326_v13 }
 0x7b6   : > { %v4329_v46 = vsel %vm1966_vm2, %v9640_v10, 0.0 }
 0x7b7   : > { %v9644_v36 = vpop.eup %7092  ;;  %4330 = vadd.xlane.f32.xlu1 %v4329_v46 }
 0x7b8   : > { %v4332_v6 = vsel %vm1966_vm2, %v9644_v36, 0.0 }
 0x7b9   : > { %v9648_v2 = vpop.eup %7094  ;;  %4333 = vadd.xlane.f32.xlu0 %v4332_v6 }
 0x7ba   : > { %v4335_v25 = vsel %vm1966_vm2, %v9648_v2, 0.0 }
 0x7bb   : > { %4336 = vadd.xlane.f32.xlu1 %v4335_v25 }
 0x7bc   : > { %v4148_v29 = vpop.xlane.xlu0 %4147 }
 0x7bd   : > { %v4226_v42 = vsub.f32 %v9453_v55, %v4148_v29 }
 0x7be   : > { %v4151_v45 = vpop.xlane.xlu1 %4150 }
 0x7bf   : > { %v4266_v18 = vmul.f32 1.442695, %v4226_v42  ;;  %v4227_v61 = vsub.f32 %v9460_v26, %v4151_v45 }
 0x7c0   : > { %v4154_v44 = vpop.xlane.xlu0 %4153 }
 0x7c1   : > { %7096 = vpow2.f32 %v4266_v18  ;;  %v4268_v23 = vmul.f32 1.442695, %v4227_v61  ;;  %v4228_v15 = vsub.f32 %v9458_v51, %v4154_v44 }
 0x7c2   : > { %v4157_v49 = vpop.xlane.xlu1 %4156 }
 0x7c3   : > { %7098 = vpow2.f32 %v4268_v23  ;;  %v4270_v12 = vmul.f32 1.442695, %v4228_v15  ;;  %v4229_v38 = vsub.f32 %v9464_v58, %v4157_v49 }
 0x7c4   : > { %v4160_v41 = vpop.xlane.xlu0 %4159 }
 0x7c5   : > { %7100 = vpow2.f32 %v4270_v12  ;;  %v4272_v9 = vmul.f32 1.442695, %v4229_v38  ;;  %v4230_v33 = vsub.f32 %v9479_v5, %v4160_v41 }
 0x7c6   : > { %v4163_v55 = vpop.xlane.xlu1 %4162 }
 0x7c7   : > { %7102 = vpow2.f32 %v4272_v9  ;;  %v4274_v48 = vmul.f32 1.442695, %v4230_v33  ;;  %v4231_v26 = vsub.f32 %v9488_v16, %v4163_v55 }
 0x7c8   : > { %v4166_v0 = vpop.xlane.xlu0 %4165 }
 0x7c9   : > { %7104 = vpow2.f32 %v4274_v48  ;;  %v4276_v27 = vmul.f32 1.442695, %v4231_v26  ;;  %v4232_v51 = vsub.f32 %v9486_v43, %v4166_v0 }
 0x7ca   : > { %v4169_v39 = vpop.xlane.xlu1 %4168 }
 0x7cb   : > { %v9659_v57 = vpop.eup %7096  ;;  %7106 = vpow2.f32 %v4276_v27  ;;  %v4278_v58 = vmul.f32 1.442695, %v4232_v51  ;;  %v4233_v3 = vsub.f32 %v9492_v22, %v4169_v39 }
 0x7cc   : > { %v4172_v13 = vpop.xlane.xlu0 %4171  ;;  %v4338_v5 = vsel %vm1966_vm2, %v9659_v57, 0.0 }
 0x7cd   : > { %v9664_v46 = vpop.eup %7098  ;;  %7108 = vpow2.f32 %v4278_v58  ;;  %v4280_v16 = vmul.f32 1.442695, %v4233_v3  ;;  %v4234_v6 = vsub.f32 %v9507_v31, %v4172_v13  ;;  %4339 = vadd.xlane.f32.xlu0 %v4338_v5 }
 0x7ce   : > { %v4175_v25 = vpop.xlane.xlu1 %4174  ;;  %v4341_v43 = vsel %vm1966_vm2, %v9664_v46, 0.0 }
 0x7cf   : > { %v9669_v29 = vpop.eup %7100  ;;  %7110 = vpow2.f32 %v4280_v16  ;;  %v4282_v42 = vmul.f32 1.442695, %v4234_v6  ;;  %v4235_v22 = vsub.f32 %v9516_v28, %v4175_v25  ;;  %4342 = vadd.xlane.f32.xlu1 %v4341_v43 }
 0x7d0   : > { %v4178_v45 = vpop.xlane.xlu0 %4177  ;;  %v4344_v18 = vsel %vm1966_vm2, %v9669_v29, 0.0 }
 0x7d1   : > { %v9674_v61 = vpop.eup %7102  ;;  %7112 = vpow2.f32 %v4282_v42  ;;  %v4284_v31 = vmul.f32 1.442695, %v4235_v22  ;;  %v4236_v44 = vsub.f32 %v9514_v60, %v4178_v45  ;;  %4345 = vadd.xlane.f32.xlu0 %v4344_v18 }
 0x7d2   : > { %v4181_v23 = vpop.xlane.xlu1 %4180  ;;  %v4347_v15 = vsel %vm1966_vm2, %v9674_v61, 0.0 }
 0x7d3   : > { %v9679_v49 = vpop.eup %7104  ;;  %7114 = vpow2.f32 %v4284_v31  ;;  %v4286_v28 = vmul.f32 1.442695, %v4236_v44  ;;  %v4237_v12 = vsub.f32 %v9520_v62, %v4181_v23  ;;  %4348 = vadd.xlane.f32.xlu1 %v4347_v15 }
 0x7d4   : > { %v4184_v38 = vpop.xlane.xlu0 %4183  ;;  %v4350_v41 = vsel %vm1966_vm2, %v9679_v49, 0.0 }
 0x7d5   : > { %v9684_v9 = vpop.eup %7106  ;;  %7116 = vpow2.f32 %v4286_v28  ;;  %v4288_v60 = vmul.f32 1.442695, %v4237_v12  ;;  %v4238_v33 = vsub.f32 %v9535_v40, %v4184_v38  ;;  %4351 = vadd.xlane.f32.xlu0 %v4350_v41 }
 0x7d6   : > { %v4187_v55 = vpop.xlane.xlu1 %4186  ;;  %v4353_v48 = vsel %vm1966_vm2, %v9684_v9, 0.0 }
 0x7d7   : > { %v9689_v26 = vpop.eup %7108  ;;  %7118 = vpow2.f32 %v4288_v60  ;;  %v4290_v62 = vmul.f32 1.442695, %v4238_v33  ;;  %v4239_v0 = vsub.f32 %v9544_v53, %v4187_v55  ;;  %4354 = vadd.xlane.f32.xlu1 %v4353_v48 }
 0x7d8   : > { %v4190_v27 = vpop.xlane.xlu0 %4189  ;;  %v4356_v51 = vsel %vm1966_vm2, %v9689_v26, 0.0 }
 0x7d9   : > { %v9694_v39 = vpop.eup %7110  ;;  %7120 = vpow2.f32 %v4290_v62  ;;  %v4292_v40 = vmul.f32 1.442695, %v4239_v0  ;;  %v4240_v58 = vsub.f32 %v9542_v14, %v4190_v27  ;;  %4357 = vadd.xlane.f32.xlu0 %v4356_v51 }
 0x7da   : > { %v4193_v3 = vpop.xlane.xlu1 %4192  ;;  %v4359_v13 = vsel %vm1966_vm2, %v9694_v39, 0.0 }
 0x7db   : > { %v9699_v5 = vpop.eup %7112  ;;  %7122 = vpow2.f32 %v4292_v40  ;;  %v4294_v53 = vmul.f32 1.442695, %v4240_v58  ;;  %v4241_v16 = vsub.f32 %v9548_v8, %v4193_v3  ;;  %4360 = vadd.xlane.f32.xlu1 %v4359_v13 }
 0x7dc   : > { %v4362_v6 = vsel %vm1966_vm2, %v9699_v5, 0.0 }
 0x7dd   : > { %v9704_v25 = vpop.eup %7114  ;;  %7124 = vpow2.f32 %v4294_v53  ;;  %v4296_v43 = vmul.f32 1.442695, %v4241_v16  ;;  %4363 = vadd.xlane.f32.xlu0 %v4362_v6 }
 0x7de   : > { %v4196_v14 = vpop.xlane.xlu0 %4195  ;;  %v4365_v42 = vsel %vm1966_vm2, %v9704_v25, 0.0 }
 0x7df   : > { %v9708_v22 = vpop.eup %7116  ;;  %7126 = vpow2.f32 %v4296_v43  ;;  %v4242_v45 = vsub.f32 %v9565_v20, %v4196_v14  ;;  %4366 = vadd.xlane.f32.xlu1 %v4365_v42 }
 0x7e0   : > { %v4199_v8 = vpop.xlane.xlu1 %4198  ;;  %v4368_v18 = vsel %vm1966_vm2, %v9708_v22, 0.0 }
 0x7e1   : > { %v9713_v31 = vpop.eup %7118  ;;  %v4298_v44 = vmul.f32 1.442695, %v4242_v45  ;;  %v4243_v23 = vsub.f32 %v9572_v19, %v4199_v8  ;;  %4369 = vadd.xlane.f32.xlu0 %v4368_v18 }
 0x7e2   : > { %v4202_v15 = vpop.xlane.xlu0 %4201  ;;  %v4371_v28 = vsel %vm1966_vm2, %v9713_v31, 0.0 }
 0x7e3   : > { %v9718_v12 = vpop.eup %7120  ;;  %7128 = vpow2.f32 %v4298_v44  ;;  %v4300_v38 = vmul.f32 1.442695, %v4243_v23  ;;  %v4244_v20 = vsub.f32 %v9570_v34, %v4202_v15  ;;  %4372 = vadd.xlane.f32.xlu1 %v4371_v28 }
 0x7e4   : > { %v4205_v41 = vpop.xlane.xlu1 %4204  ;;  %v4374_v60 = vsel %vm1966_vm2, %v9718_v12, 0.0 }
 0x7e5   : > { %v9723_v33 = vpop.eup %7122  ;;  %7130 = vpow2.f32 %v4300_v38  ;;  %v4302_v19 = vmul.f32 1.442695, %v4244_v20  ;;  %v4245_v55 = vsub.f32 %v9576_v59, %v4205_v41  ;;  %4375 = vadd.xlane.f32.xlu0 %v4374_v60 }
 0x7e6   : > { %v4208_v48 = vpop.xlane.xlu0 %4207  ;;  %v4377_v62 = vsel %vm1966_vm2, %v9723_v33, 0.0 }
 0x7e7   : > { %v9728_v0 = vpop.eup %7124  ;;  %7132 = vpow2.f32 %v4302_v19  ;;  %v4304_v34 = vmul.f32 1.442695, %v4245_v55  ;;  %v4246_v27 = vsub.f32 %v9591_v1, %v4208_v48  ;;  %4378 = vadd.xlane.f32.xlu1 %v4377_v62 }
 0x7e8   : > { %v4211_v51 = vpop.xlane.xlu1 %4210  ;;  %v4380_v40 = vsel %vm1966_vm2, %v9728_v0, 0.0 }
 0x7e9   : > { %v9733_v58 = vpop.eup %7126  ;;  %7134 = vpow2.f32 %v4304_v34  ;;  %v4306_v59 = vmul.f32 1.442695, %v4246_v27  ;;  %v4247_v3 = vsub.f32 %v9600_v32, %v4211_v51  ;;  %4381 = vadd.xlane.f32.xlu0 %v4380_v40 }
 0x7ea   : > { %v4214_v13 = vpop.xlane.xlu0 %4213  ;;  %v4383_v53 = vsel %vm1966_vm2, %v9733_v58, 0.0 }
 0x7eb   : > { %7136 = vpow2.f32 %v4306_v59  ;;  %v4308_v16 = vmul.f32 1.442695, %v4247_v3  ;;  %v4248_v1 = vsub.f32 %v9598_v4, %v4214_v13  ;;  %4384 = vadd.xlane.f32.xlu1 %v4383_v53 }
 0x7ec   : > { %v4217_v6 = vpop.xlane.xlu1 %4216 }
 0x7ed   : > { %v9739_v43 = vpop.eup %7128  ;;  %7138 = vpow2.f32 %v4308_v16  ;;  %v4310_v14 = vmul.f32 1.442695, %v4248_v1  ;;  %v4249_v42 = vsub.f32 %v9604_v11, %v4217_v6 }
 0x7ee   : > { %v4386_v32 = vsel %vm1966_vm2, %v9739_v43, 0.0 }
 0x7ef   : > { %v9744_v45 = vpop.eup %7130  ;;  %7140 = vpow2.f32 %v4310_v14  ;;  %v4312_v8 = vmul.f32 1.442695, %v4249_v42  ;;  %4387 = vadd.xlane.f32.xlu0 %v4386_v32 }
 0x7f0   : > { %v4389_v18 = vsel %vm1966_vm2, %v9744_v45, 0.0 }
 0x7f1   : > { %v9748_v4 = vpop.eup %7132  ;;  %7142 = vpow2.f32 %v4312_v8  ;;  %4390 = vadd.xlane.f32.xlu1 %v4389_v18 }
 0x7f2   : > { %v4392_v44 = vsel %vm1966_vm2, %v9748_v4, 0.0 }
 0x7f3   : > { %v9752_v23 = vpop.eup %7134  ;;  %4393 = vadd.xlane.f32.xlu0 %v4392_v44 }
 0x7f4   : > { %v4395_v11 = vsel %vm1966_vm2, %v9752_v23, 0.0 }
 0x7f5   : > { %v9756_v15 = vpop.eup %7136  ;;  %4396 = vadd.xlane.f32.xlu1 %v4395_v11 }
 0x7f6   : > { %v4398_v28 = vsel %vm1966_vm2, %v9756_v15, 0.0 }
 0x7f7   : > { %v9760_v38 = vpop.eup %7138  ;;  %4399 = vadd.xlane.f32.xlu0 %v4398_v28 }
 0x7f8   : > { %v4401_v20 = vsel %vm1966_vm2, %v9760_v38, 0.0 }
 0x7f9   : > { %v9764_v41 = vpop.eup %7140  ;;  %4402 = vadd.xlane.f32.xlu1 %v4401_v20 }
 0x7fa   : > { %v4404_v60 = vsel %vm1966_vm2, %v9764_v41, 0.0 }
 0x7fb   : > { %v9768_v19 = vpop.eup %7142  ;;  %4405 = vadd.xlane.f32.xlu0 %v4404_v60 }
 0x7fc   : > { %v4407_v55 = vsel %vm1966_vm2, %v9768_v19, 0.0 }
 0x7fd   : > { %4408 = vadd.xlane.f32.xlu1 %v4407_v55 }
 0x83a   : > { %v4316_v48 = vpop.xlane.xlu0 %4315 }
 0x83b   : > { %7144 = vrcp.f32 %v4316_v48 }
 0x83c   : > { %v4319_v62 = vpop.xlane.xlu1 %4318 }
 0x83d   : > { %7146 = vrcp.f32 %v4319_v62 }
 0x83e   : > { %v4322_v34 = vpop.xlane.xlu0 %4321 }
 0x83f   : > { %7148 = vrcp.f32 %v4322_v34 }
 0x840   : > { %v4325_v27 = vpop.xlane.xlu1 %4324 }
 0x841   : > { %7150 = vrcp.f32 %v4325_v27 }
 0x842   : > { %v4328_v51 = vpop.xlane.xlu0 %4327 }
 0x843   : > { %7152 = vrcp.f32 %v4328_v51 }
 0x844   : > { %v4331_v40 = vpop.xlane.xlu1 %4330 }
 0x845   : > { %v7145_v59 = vpop.eup %7144  ;;  %7154 = vrcp.f32 %v4331_v40 }
 0x846   : > { %v4334_v3 = vpop.xlane.xlu0 %4333  ;;  %v4442_v16 = vmul.f32 %v7145_v59, %v9619_v24 }
 0x847   : > { %v7147_v13 = vpop.eup %7146  ;;  %7156 = vrcp.f32 %v4334_v3 }
 0x848   : > { %v4337_v53 = vpop.xlane.xlu1 %4336  ;;  %v4443_v1 = vmul.f32 %v7147_v13, %v9624_v63 }
 0x849   : > { %v7149_v6 = vpop.eup %7148  ;;  %7158 = vrcp.f32 %v4337_v53 }
 0x84a   : > { %v4474_v14 = vpack.c.bf16 %v4443_v1, %v4442_v16  ;;  %v4444_v32 = vmul.f32 %v7149_v6, %v9628_v17 }
 0x84b   : > { %v7151_v42 = vpop.eup %7150 }
 0x84c   : > { %v4445_v8 = vmul.f32 %v7151_v42, %v9632_v54  ;;  %6456 = vmatprep.mubr.msk.bf16.mxu0 %vm1966_vm2, %v4474_v14 }
 0x84d   : > { %v7153_v18 = vpop.eup %7152 }
 0x84e   : > { %v4475_v44 = vpack.c.bf16 %v4445_v8, %v4444_v32  ;;  %v4446_v28 = vmul.f32 %v7153_v18, %v9636_v56 }
 0x84f   : > { %v7155_v11 = vpop.eup %7154 }
 0x850   : > { %6457 = vmatmul.mubr.msk.bf16.vlgmr.msra.gmra.mrb[128].mxu0 %vm1966_vm2, %v4475_v44  ;;  %v4447_v24 = vmul.f32 %v7155_v11, %v9640_v10 }
 0x851   : > { %v7157_v63 = vpop.eup %7156  ;;  %6481 = vmatpush3.bf16.msra.mxu0 %v9372_v47 }
 0x852   : > { %6482 = vmatprep.subr.bf16.mxu0 %v9370_v35  ;;  %v4476_v20 = vpack.c.bf16 %v4447_v24, %v4446_v28  ;;  %v4448_v54 = vmul.f32 %v7157_v63, %v9644_v36 }
 0x853   : > { %v7159_v17 = vpop.eup %7158 }
 0x854   : > { %6460 = vmatprep.mubr.msk.bf16.mxu0 %vm1966_vm2, %v4476_v20  ;;  %v4449_v60 = vmul.f32 %v7159_v17, %v9648_v2 }
 0x855   : > { %6483 = vmatpush3.bf16.msra.mxu0 %v9370_v35 }
 0x856   : > { %6484 = vmatprep.subr.bf16.mxu0 %v9377_v50  ;;  %v4477_v56 = vpack.c.bf16 %v4449_v60, %v4448_v54 }
 0x858   : > { %6461 = vmatmul.mubr.msk.bf16.gmra.mrb[132].mxu0 %vm1966_vm2, %v4477_v56 }
 0x859   : > { %6485 = vmatpush3.bf16.msra.mxu0 %v9377_v50 }
 0x85a   : > { %6486 = vmatprep.subr.bf16.mxu0 %v9375_v52  ;;  %v4340_v47 = vpop.xlane.xlu0 %4339 }
 0x85b   : > { %7160 = vrcp.f32 %v4340_v47 }
 0x85c   : > { %v4343_v10 = vpop.xlane.xlu1 %4342 }
 0x85d   : > { %7162 = vrcp.f32 %v4343_v10  ;;  %6487 = vmatpush3.bf16.msra.mxu0 %v9375_v52 }
 0x85e   : > { %v4346_v36 = vpop.xlane.xlu0 %4345 }
 0x85f   : > { %7164 = vrcp.f32 %v4346_v36 }
 0x860   : > { %v4349_v2 = vpop.xlane.xlu1 %4348 }
 0x861   : > { %7166 = vrcp.f32 %v4349_v2 }
 0x862   : > { %v4352_v35 = vpop.xlane.xlu0 %4351 }
 0x863   : > { %7168 = vrcp.f32 %v4352_v35 }
 0x864   : > { %v4355_v55 = vpop.xlane.xlu1 %4354 }
 0x865   : > { %v7161_v48 = vpop.eup %7160  ;;  %7170 = vrcp.f32 %v4355_v55 }
 0x866   : > { %v4358_v62 = vpop.xlane.xlu0 %4357  ;;  %v4450_v27 = vmul.f32 %v7161_v48, %v9659_v57 }
 0x867   : > { %v7163_v34 = vpop.eup %7162  ;;  %7172 = vrcp.f32 %v4358_v62 }
 0x868   : > { %v4361_v50 = vpop.xlane.xlu1 %4360  ;;  %v4451_v51 = vmul.f32 %v7163_v34, %v9664_v46 }
 0x869   : > { %v7165_v40 = vpop.eup %7164  ;;  %7174 = vrcp.f32 %v4361_v50 }
 0x86a   : > { %v4364_v52 = vpop.xlane.xlu0 %4363  ;;  %v4478_v59 = vpack.c.bf16 %v4451_v51, %v4450_v27  ;;  %v4452_v13 = vmul.f32 %v7165_v40, %v9669_v29 }
 0x86b   : > { %v7167_v3 = vpop.eup %7166  ;;  %7176 = vrcp.f32 %v4364_v52 }
 0x86c   : > { %v4453_v53 = vmul.f32 %v7167_v3, %v9674_v61  ;;  %v4367_v16 = vpop.xlane.xlu1 %4366  ;;  %6472 = vmatprep.mubr.msk.bf16.mxu1 %vm1966_vm2, %v4478_v59 }
 0x86d   : > { %v7169_v1 = vpop.eup %7168  ;;  %7178 = vrcp.f32 %v4367_v16 }
 0x86e   : > { %v4479_v6 = vpack.c.bf16 %v4453_v53, %v4452_v13  ;;  %v4370_v14 = vpop.xlane.xlu0 %4369  ;;  %v4454_v42 = vmul.f32 %v7169_v1, %v9679_v49 }
 0x86f   : > { %v7171_v57 = vpop.eup %7170  ;;  %7180 = vrcp.f32 %v4370_v14 }
 0x870   : > { %v4373_v46 = vpop.xlane.xlu1 %4372  ;;  %6473 = vmatmul.mubr.msk.bf16.vlgmr.msra.gmra.mrb[160].mxu1 %vm1966_vm2, %v4479_v6  ;;  %v4455_v32 = vmul.f32 %v7171_v57, %v9684_v9 }
 0x871   : > { %v7173_v8 = vpop.eup %7172  ;;  %7182 = vrcp.f32 %v4373_v46  ;;  %6497 = vmatpush3.bf16.msra.mxu1 %v9381_v7 }
 0x872   : > { %6498 = vmatprep.subr.bf16.mxu1 %v9379_v37  ;;  %v4376_v29 = vpop.xlane.xlu0 %4375  ;;  %v4480_v61 = vpack.c.bf16 %v4455_v32, %v4454_v42  ;;  %v4456_v11 = vmul.f32 %v7173_v8, %v9689_v26  ;;  %v6694_v42 = vld [vmem:[%s10027_s5 + $0x8] sm:$0xff]  }
 0x873   : > { %v7175_v18 = vpop.eup %7174  ;;  %7184 = vrcp.f32 %v4376_v29  ;;  %6512 = vmatprep.subr.bf16.mxu0 %v6694_v42 }
 0x874   : > { %v4379_v44 = vpop.xlane.xlu1 %4378  ;;  %6476 = vmatprep.mubr.msk.bf16.mxu1 %vm1966_vm2, %v4480_v61  ;;  %v4457_v28 = vmul.f32 %v7175_v18, %v9694_v39 }
 0x875   : > { %v7177_v49 = vpop.eup %7176  ;;  %7186 = vrcp.f32 %v4379_v44  ;;  %6499 = vmatpush3.bf16.msra.mxu1 %v9379_v37 }
 0x876   : > { %6500 = vmatprep.subr.bf16.mxu1 %v9386_v30  ;;  %v4382_v7 = vpop.xlane.xlu0 %4381  ;;  %v4481_v9 = vpack.c.bf16 %v4457_v28, %v4456_v11  ;;  %v4458_v20 = vmul.f32 %v7177_v49, %v9699_v5 }
 0x877   : > { %v7179_v24 = vpop.eup %7178  ;;  %7188 = vrcp.f32 %v4382_v7 }
 0x878   : > { %v4385_v63 = vpop.xlane.xlu1 %4384  ;;  %6477 = vmatmul.mubr.msk.bf16.gmra.mrb[164].mxu1 %vm1966_vm2, %v4481_v9  ;;  %v4459_v17 = vmul.f32 %v7179_v24, %v9704_v25 }
 0x879   : > { %v7181_v26 = vpop.eup %7180  ;;  %7190 = vrcp.f32 %v4385_v63  ;;  %6501 = vmatpush3.bf16.msra.mxu1 %v9386_v30 }
 0x87a   : > { %6502 = vmatprep.subr.bf16.mxu1 %v9384_v21  ;;  %v4482_v37 = vpack.c.bf16 %v4459_v17, %v4458_v20  ;;  %v4460_v54 = vmul.f32 %v7181_v26, %v9708_v22 }
 0x87b   : > { %v7183_v39 = vpop.eup %7182 }
 0x87c   : > { %v4461_v60 = vmul.f32 %v7183_v39, %v9713_v31  ;;  %6488 = vmatprep.mubr.msk.bf16.mxu0 %vm1966_vm2, %v4482_v37  ;;  %v4388_v56 = vpop.xlane.xlu0 %4387 }
 0x87d   : > { %v7185_v47 = vpop.eup %7184  ;;  %6503 = vmatpush3.bf16.msra.mxu1 %v9384_v21  ;;  %7192 = vrcp.f32 %v4388_v56 }
 0x87e   : > { %v4483_v5 = vpack.c.bf16 %v4461_v60, %v4460_v54  ;;  %v4391_v25 = vpop.xlane.xlu1 %4390  ;;  %v4462_v36 = vmul.f32 %v7185_v47, %v9718_v12 }
 0x87f   : > { %v7187_v10 = vpop.eup %7186  ;;  %7194 = vrcp.f32 %v4391_v25 }
 0x880   : > { %6489 = vmatmul.mubr.msk.bf16.vlgmr.msra.gmra.mrb[136].mxu0 %vm1966_vm2, %v4483_v5  ;;  %v4394_v30 = vpop.xlane.xlu0 %4393  ;;  %v4463_v22 = vmul.f32 %v7187_v10, %v9723_v33 }
 0x881   : > { %v7189_v2 = vpop.eup %7188  ;;  %7196 = vrcp.f32 %v4394_v30  ;;  %6513 = vmatpush3.bf16.msra.mxu0 %v6694_v42 }
 0x882   : > { %v4397_v31 = vpop.xlane.xlu1 %4396  ;;  %v4484_v35 = vpack.c.bf16 %v4463_v22, %v4462_v36  ;;  %v4464_v48 = vmul.f32 %v7189_v2, %v9728_v0 }
 0x883   : > { %v7191_v55 = vpop.eup %7190  ;;  %7198 = vrcp.f32 %v4397_v31 }
 0x884   : > { %6492 = vmatprep.mubr.msk.bf16.mxu0 %vm1966_vm2, %v4484_v35  ;;  %v4400_v21 = vpop.xlane.xlu0 %4399  ;;  %v4465_v62 = vmul.f32 %v7191_v55, %v9733_v58 }
 0x885   : > { %7200 = vrcp.f32 %v4400_v21 }
 0x886   : > { %v4403_v34 = vpop.xlane.xlu1 %4402  ;;  %v4485_v50 = vpack.c.bf16 %v4465_v62, %v4464_v48 }
 0x887   : > { %v7193_v27 = vpop.eup %7192  ;;  %7202 = vrcp.f32 %v4403_v34 }
 0x888   : > { %6493 = vmatmul.mubr.msk.bf16.gmra.mrb[140].mxu0 %vm1966_vm2, %v4485_v50  ;;  %v4406_v12 = vpop.xlane.xlu0 %4405  ;;  %v4466_v40 = vmul.f32 %v7193_v27, %v9739_v43 }
 0x889   : > { %v7195_v33 = vpop.eup %7194  ;;  %7204 = vrcp.f32 %v4406_v12 }
 0x88a   : > { %v4409_v51 = vpop.xlane.xlu1 %4408  ;;  %v4467_v52 = vmul.f32 %v7195_v33, %v9744_v45 }
 0x88b   : > { %v7197_v59 = vpop.eup %7196  ;;  %7206 = vrcp.f32 %v4409_v51 }
 0x88c   : > { %v4486_v0 = vpack.c.bf16 %v4467_v52, %v4466_v40  ;;  %v4468_v58 = vmul.f32 %v7197_v59, %v9748_v4 }
 0x88d   : > { %v7199_v3 = vpop.eup %7198 }
 0x88e   : > { %v4469_v13 = vmul.f32 %v7199_v3, %v9752_v23  ;;  %6504 = vmatprep.mubr.msk.bf16.mxu1 %vm1966_vm2, %v4486_v0  ;;  %v10271_v3 = vld [vmem:[#allocation25_spill] sm:$0xff] }
 0x88f   : > { %v7201_v53 = vpop.eup %7200 }
 0x890   : > { %v4487_v16 = vpack.c.bf16 %v4469_v13, %v4468_v58  ;;  %v4470_v6 = vmul.f32 %v7201_v53, %v9756_v15  ;;  %v6695_v15 = vld [vmem:[%s10027_s5] sm:$0xff]   ;;  %v10272_v58 = vld [vmem:[#allocation24_spill] sm:$0xff]  ;;  %v10274_v53 = vld [vmem:[#allocation18_spill] sm:$0xff] }
 0x891   : > { %v7203_v1 = vpop.eup %7202  ;;  %6546 = vmatprep.subr.bf16.mxu0 %v6695_v15  ;;  %v10273_v13 = vpack.c.bf16 %v10271_v3, %v10272_v58 }
 0x892   : > { %6505 = vmatmul.mubr.msk.bf16.vlgmr.msra.gmra.mrb[168].mxu1 %vm1966_vm2, %v4487_v16  ;;  %v4471_v43 = vmul.f32 %v7203_v1, %v9760_v38  ;;  %v10275_v16 = vld [vmem:[#allocation23_spill] sm:$0xff] }
 0x893   : > { %v7205_v45 = vpop.eup %7204  ;;  %v10276_v1 = vpack.c.bf16 %v10274_v53, %v10275_v16 }
 0x894   : > { %v4488_v14 = vpack.c.bf16 %v4471_v43, %v4470_v6  ;;  %v4472_v4 = vmul.f32 %v7205_v45, %v9764_v41  ;;  %v10277_v6 = vld [vmem:[#allocation33_spill] sm:$0xff]  ;;  %v10278_v43 = vld [vmem:[#allocation27_spill] sm:$0xff] }
 0x895   : > { %v7207_v57 = vpop.eup %7206  ;;  %v10279_v45 = vpack.c.bf16 %v10277_v6, %v10278_v43 }
 0x896   : > { %6508 = vmatprep.mubr.msk.bf16.mxu1 %vm1966_vm2, %v4488_v14  ;;  %v4473_v23 = vmul.f32 %v7207_v57, %v9768_v19  ;;  %v10280_v14 = vld [vmem:[#allocation31_spill] sm:$0xff]  ;;  %v10281_v57 = vld [vmem:[#allocation30_spill] sm:$0xff] }
 0x898   : > { %v4489_v46 = vpack.c.bf16 %v4473_v23, %v4472_v4  ;;  %v10282_v4 = vpack.c.bf16 %v10280_v14, %v10281_v57  ;;  %v10283_v23 = vld [vmem:[#allocation8_spill] sm:$0xff] }
 0x89a   : > { %6509 = vmatmul.mubr.msk.bf16.gmra.mrb[172].mxu1 %vm1966_vm2, %v4489_v46  ;;  %v10284_v46 = vld [vmem:[#allocation7_spill] sm:$0xff] }
 0x89b   : > { %v10285_v42 = vpack.c.bf16 %v10283_v23, %v10284_v46 }
 0x923   : > { %v6458_v38 = vpop.f32.mrb[128].mxu0 }
 0x924   : > { %v4536_v32 = vpop.f32.mrb[129].mxu0 }
 0x925   : > { %v6459_v8 = vpop.f32.mrb[130].mxu0 }
 0x926   : > { %v4799_v41 = vpack.c.bf16 %v6459_v8, %v6458_v38  ;;  %v4539_v29 = vpop.f32.mrb[131].mxu0  ;;  %v10287_v38 = vld [vmem:[#allocation5_spill] sm:$0xff]  ;;  %v10289_v8 = vld [vmem:[#allocation15_spill] sm:$0xff] }
 0x927   : > { %v4798_v19 = vpack.c.bf16 %v4539_v29, %v4536_v32 }
 0x929   : > { %6514 = vmatprep.mubr.msk.bf16.mxu0 %vm1079_vm1, %v4798_v19  ;;  %v10292_v19 = vld [vmem:[#allocation12_spill] sm:$0xff] }
 0x92a   : > { %6515 = vmatmul.mubr.msk.bf16.vlgmr.msra.gmra.mrb[144].mxu0 %vm1079_vm1, %v4799_v41  ;;  %v10290_v41 = vld [vmem:[#allocation10_spill] sm:$0xff] }
 0x92b   : > { %v6462_v61 = vpop.f32.mrb[132].mxu0  ;;  %6547 = vmatpush3.bf16.msra.mxu0 %v6695_v15  ;;  %v10286_v15 = vld [vmem:[#allocation6_spill] sm:$0xff]  ;;  %v10291_v29 = vpack.c.bf16 %v10289_v8, %v10290_v41 }
 0x92c   : > { %v4552_v18 = vpop.f32.mrb[133].mxu0  ;;  %v10288_v32 = vpack.c.bf16 %v10286_v15, %v10287_v38 }
 0x92d   : > { %v6463_v44 = vpop.f32.mrb[134].mxu0 }
 0x92e   : > { %v4801_v11 = vpack.c.bf16 %v6463_v44, %v6462_v61  ;;  %v4555_v28 = vpop.f32.mrb[135].mxu0  ;;  %v10293_v61 = vld [vmem:[#allocation9_spill] sm:$0xff] }
 0x92f   : > { %v4800_v49 = vpack.c.bf16 %v4555_v28, %v4552_v18  ;;  %v10294_v18 = vpack.c.bf16 %v10292_v19, %v10293_v61  ;;  %v10295_v44 = vld [vmem:[#allocation41_spill] sm:$0xff] }
 0x931   : > { %6518 = vmatprep.mubr.msk.bf16.mxu0 %vm1079_vm1, %v4800_v49  ;;  %v10298_v49 = vld [vmem:[#allocation39_spill] sm:$0xff] }
 0x932   : > { %6519 = vmatmul.mubr.msk.bf16.gmra.mrb[148].mxu0 %vm1079_vm1, %v4801_v11  ;;  %v10296_v11 = vld [vmem:[#allocation37_spill] sm:$0xff] }
 0x933   : > { %v10297_v28 = vpack.c.bf16 %v10295_v44, %v10296_v11 }
 0x943   : > { %v6474_v7 = vpop.f32.mrb[160].mxu1 }
 0x944   : > { %v4613_v9 = vpop.f32.mrb[161].mxu1 }
 0x945   : > { %v6475_v24 = vpop.f32.mrb[162].mxu1 }
 0x946   : > { %v4803_v63 = vpack.c.bf16 %v6475_v24, %v6474_v7  ;;  %v4616_v20 = vpop.f32.mrb[163].mxu1  ;;  %v10299_v7 = vld [vmem:[#allocation36_spill] sm:$0xff]  ;;  %v10301_v24 = vld [vmem:[#allocation47_spill] sm:$0xff] }
 0x947   : > { %v4802_v17 = vpack.c.bf16 %v4616_v20, %v4613_v9  ;;  %v10300_v9 = vpack.c.bf16 %v10298_v49, %v10299_v7 }
 0x949   : > { %6522 = vmatprep.mubr.msk.bf16.mxu0 %vm1079_vm1, %v4802_v17  ;;  %v10304_v17 = vld [vmem:[#allocation46_spill] sm:$0xff] }
 0x94a   : > { %6523 = vmatmul.mubr.msk.bf16.gmra.mrb[152].mxu0 %vm1079_vm1, %v4803_v63  ;;  %v10302_v63 = vld [vmem:[#allocation44_spill] sm:$0xff] }
 0x94b   : > { %v6478_v26 = vpop.f32.mrb[164].mxu1  ;;  %v10303_v20 = vpack.c.bf16 %v10301_v24, %v10302_v63 }
 0x94c   : > { %v4629_v37 = vpop.f32.mrb[165].mxu1 }
 0x94d   : > { %v6479_v39 = vpop.f32.mrb[166].mxu1 }
 0x94e   : > { %v4805_v54 = vpack.c.bf16 %v6479_v39, %v6478_v26  ;;  %v4632_v60 = vpop.f32.mrb[167].mxu1  ;;  %v10305_v26 = vld [vmem:[#allocation43_spill] sm:$0xff]  ;;  %v10307_v39 = vld [vmem:[#allocation13_spill] sm:$0xff] }
 0x94f   : > { %v4804_v56 = vpack.c.bf16 %v4632_v60, %v4629_v37  ;;  %v10306_v37 = vpack.c.bf16 %v10304_v17, %v10305_v26 }
 0x951   : > { %6526 = vmatprep.mubr.msk.bf16.mxu0 %vm1079_vm1, %v4804_v56  ;;  %v10310_v56 = vld [vmem:[#allocation11_spill] sm:$0xff] }
 0x952   : > { %6527 = vmatmul.mubr.msk.bf16.gmra.mrb[156].mxu0 %vm1079_vm1, %v4805_v54  ;;  %v10308_v54 = vld [vmem:[#allocation16_spill] sm:$0xff] }
 0x953   : > { %v6490_v47 = vpop.f32.mrb[136].mxu0  ;;  %v10309_v60 = vpack.c.bf16 %v10307_v39, %v10308_v54 }
 0x954   : > { %v4690_v5 = vpop.f32.mrb[137].mxu0 }
 0x955   : > { %v6491_v25 = vpop.f32.mrb[138].mxu0 }
 0x956   : > { %v4807_v10 = vpack.c.bf16 %v6491_v25, %v6490_v47  ;;  %v4693_v30 = vpop.f32.mrb[139].mxu0  ;;  %v10311_v47 = vld [vmem:[#allocation14_spill] sm:$0xff]  ;;  %v10313_v25 = vld [vmem:[#allocation19_spill] sm:$0xff] }
 0x957   : > { %v4806_v36 = vpack.c.bf16 %v4693_v30, %v4690_v5  ;;  %v10312_v5 = vpack.c.bf16 %v10310_v56, %v10311_v47 }
 0x959   : > { %6530 = vmatprep.mubr.msk.bf16.mxu0 %vm1079_vm1, %v4806_v36  ;;  %v10316_v36 = vld [vmem:[#allocation17_spill] sm:$0xff] }
 0x95a   : > { %6531 = vmatmul.mubr.msk.bf16.gmra.mrb[160].mxu0 %vm1079_vm1, %v4807_v10  ;;  %v10314_v10 = vld [vmem:[#allocation22_spill] sm:$0xff] }
 0x95b   : > { %v6494_v22 = vpop.f32.mrb[140].mxu0  ;;  %v10315_v30 = vpack.c.bf16 %v10313_v25, %v10314_v10 }
 0x95c   : > { %v4706_v2 = vpop.f32.mrb[141].mxu0 }
 0x95d   : > { %v6495_v31 = vpop.f32.mrb[142].mxu0 }
 0x95e   : > { %v4809_v35 = vpack.c.bf16 %v6495_v31, %v6494_v22  ;;  %v4709_v55 = vpop.f32.mrb[143].mxu0  ;;  %v10317_v22 = vld [vmem:[#allocation21_spill] sm:$0xff] }
 0x95f   : > { %v4808_v21 = vpack.c.bf16 %v4709_v55, %v4706_v2  ;;  %v10318_v2 = vpack.c.bf16 %v10316_v36, %v10317_v22  ;;  %v9923_v31 = vld [vmem:[%s10028_s6] ss:$0 sm:$0xff] }
 0x961   : > { %6534 = vmatprep.mubr.msk.bf16.mxu0 %vm1079_vm1, %v4808_v21 }
 0x962   : > { %6535 = vmatmul.mubr.msk.bf16.gmra.mrb[164].mxu0 %vm1079_vm1, %v4809_v35 }
 0x965   : > { %v6506_v48 = vpop.f32.mrb[168].mxu1 }
 0x966   : > { %v4767_v62 = vpop.f32.mrb[169].mxu1 }
 0x967   : > { %v6507_v34 = vpop.f32.mrb[170].mxu1 }
 0x968   : > { %v4811_v50 = vpack.c.bf16 %v6507_v34, %v6506_v48  ;;  %v4770_v27 = vpop.f32.mrb[171].mxu1 }
 0x969   : > { %v4810_v12 = vpack.c.bf16 %v4770_v27, %v4767_v62 }
 0x96b   : > { %6538 = vmatprep.mubr.msk.bf16.mxu0 %vm1079_vm1, %v4810_v12 }
 0x96c   : > { %6539 = vmatmul.mubr.msk.bf16.gmra.mrb[168].mxu0 %vm1079_vm1, %v4811_v50 }
 0x96d   : > { %v6510_v33 = vpop.f32.mrb[172].mxu1 }
 0x96e   : > { %v4783_v51 = vpop.f32.mrb[173].mxu1 }
 0x96f   : > { %v6511_v40 = vpop.f32.mrb[174].mxu1 }
 0x970   : > { %v4813_v52 = vpack.c.bf16 %v6511_v40, %v6510_v33  ;;  %v4786_v59 = vpop.f32.mrb[175].mxu1 }
 0x971   : > { %v4812_v0 = vpack.c.bf16 %v4786_v59, %v4783_v51 }
 0x973   : > { %6542 = vmatprep.mubr.msk.bf16.mxu0 %vm1079_vm1, %v4812_v0 }
 0x974   : > { %6543 = vmatmul.mubr.msk.bf16.gmra.mrb[172].mxu0 %vm1079_vm1, %v4813_v52 }
 0x975   : > { %6548 = vmatprep.mubr.msk.bf16.mxu0 %vm1079_vm1, %v10273_v13 }
 0x97c   : > { %6549 = vmatmul.mubr.msk.bf16.vlgmr.msra.gmra.mrb[144].mxu0 %vm1079_vm1, %v10276_v1 }
 0x97d   : > { %6552 = vmatprep.mubr.msk.bf16.mxu0 %vm1079_vm1, %v10279_v45 }
 0x984   : > { %6553 = vmatmul.mubr.msk.bf16.gmra.mrb[148].mxu0 %vm1079_vm1, %v10282_v4 }
 0x985   : > { %6556 = vmatprep.mubr.msk.bf16.mxu0 %vm1079_vm1, %v10285_v42 }
 0x98c   : > { %6557 = vmatmul.mubr.msk.bf16.gmra.mrb[152].mxu0 %vm1079_vm1, %v10288_v32 }
 0x98d   : > { %6560 = vmatprep.mubr.msk.bf16.mxu0 %vm1079_vm1, %v10291_v29 }
 0x994   : > { %6561 = vmatmul.mubr.msk.bf16.gmra.mrb[156].mxu0 %vm1079_vm1, %v10294_v18 }
 0x995   : > { %6564 = vmatprep.mubr.msk.bf16.mxu0 %vm1079_vm1, %v10297_v28 }
 0x99c   : > { %6565 = vmatmul.mubr.msk.bf16.gmra.mrb[160].mxu0 %vm1079_vm1, %v10300_v9 }
 0x99d   : > { %6568 = vmatprep.mubr.msk.bf16.mxu0 %vm1079_vm1, %v10303_v20 }
 0x9a4   : > { %6569 = vmatmul.mubr.msk.bf16.gmra.mrb[164].mxu0 %vm1079_vm1, %v10306_v37 }
 0x9a5   : > { %6572 = vmatprep.mubr.msk.bf16.mxu0 %vm1079_vm1, %v10309_v60 }
 0x9ac   : > { %6573 = vmatmul.mubr.msk.bf16.gmra.mrb[168].mxu0 %vm1079_vm1, %v10312_v5 }
 0x9ad   : > { %6576 = vmatprep.mubr.msk.bf16.mxu0 %vm1079_vm1, %v10315_v30 }
 0x9b4   : > { %6577 = vmatmul.mubr.msk.bf16.gmra.mrb[172].mxu0 %vm1079_vm1, %v10318_v2 }
 0xa4f   : > { %v6550_v35 = vpop.f32.mrb[144].mxu0 }
 0xa50   : > { %v9926_v55 = vadd.f32 %v6550_v35, %v9923_v31  ;;  %v5120_v21 = vpop.f32.mrb[145].mxu0 }
 0xa51   : > { %v9929_v48 = vadd.f32 %v9923_v31, %v5120_v21  ;;  %v6551_v62 = vpop.f32.mrb[146].mxu0 }
 0xa52   : > { %v9932_v34 = vadd.f32 %v6551_v62, %v9923_v31  ;;  %v5123_v50 = vpop.f32.mrb[147].mxu0 }
 0xa53   : > { %v9935_v27 = vadd.f32 %v9923_v31, %v5123_v50 }
 0xa57   : > { %v6554_v12 = vpop.f32.mrb[148].mxu0 }
 0xa58   : > { %v9938_v33 = vadd.f32 %v6554_v12, %v9923_v31  ;;  %v5136_v51 = vpop.f32.mrb[149].mxu0 }
 0xa59   : > { %v9941_v40 = vadd.f32 %v9923_v31, %v5136_v51  ;;  %v6555_v52 = vpop.f32.mrb[150].mxu0 }
 0xa5a   : > { %v9944_v59 = vadd.f32 %v6555_v52, %v9923_v31  ;;  %v5139_v0 = vpop.f32.mrb[151].mxu0 }
 0xa5b   : > { %v9947_v3 = vadd.f32 %v9923_v31, %v5139_v0 }
 0xa5f   : > { %v6558_v58 = vpop.f32.mrb[152].mxu0 }
 0xa60   : > { %v5264_v13 = vadd.f32 %v6558_v58, %v9923_v31  ;;  %v5152_v53 = vpop.f32.mrb[153].mxu0 }
 0xa61   : > { %v5262_v16 = vadd.f32 %v9923_v31, %v5152_v53  ;;  %v6559_v1 = vpop.f32.mrb[154].mxu0 }
 0xa62   : > { %5298 = vrot.lane.b32.xlu1 %v5264_v13, %s7252_s17  ;;  %v5155_v6 = vpop.f32.mrb[155].mxu0  ;;  %v5265_v43 = vadd.f32 %v6559_v1, %v9923_v31 }
 0xa63   : > { %5294 = vrot.lane.b32.xlu0 %v5262_v16, %s7252_s17  ;;  %v5263_v14 = vadd.f32 %v9923_v31, %v5155_v6 }
 0xa66   : > { %5300 = vrot.lane.b32.xlu1 %v5265_v43, %s7252_s17 }
 0xa67   : > { %v6562_v45 = vpop.f32.mrb[156].mxu0 }
 0xa68   : > { %v5268_v57 = vadd.f32 %v6562_v45, %v9923_v31  ;;  %v5168_v4 = vpop.f32.mrb[157].mxu0 }
 0xa69   : > { %v6563_v23 = vpop.f32.mrb[158].mxu0  ;;  %v5266_v42 = vadd.f32 %v9923_v31, %v5168_v4 }
 0xa6a   : > { %5296 = vrot.lane.b32.xlu1 %v5263_v14, %s7252_s17  ;;  %5306 = vrot.lane.b32.xlu0 %v5268_v57, %s7252_s17  ;;  %v5171_v46 = vpop.f32.mrb[159].mxu0  ;;  %v5269_v15 = vadd.f32 %v6563_v23, %v9923_v31 }
 0xa6b   : > { %v5267_v32 = vadd.f32 %v9923_v31, %v5171_v46 }
 0xa6e   : > { %5302 = vrot.lane.b32.xlu0 %v5266_v42, %s7252_s17  ;;  %5308 = vrot.lane.b32.xlu1 %v5269_v15, %s7252_s17 }
 0xa6f   : > { %v6566_v38 = vpop.f32.mrb[160].mxu0 }
 0xa70   : > { %v5272_v8 = vadd.f32 %v6566_v38, %v9923_v31  ;;  %v5184_v41 = vpop.f32.mrb[161].mxu0 }
 0xa71   : > { %v6567_v29 = vpop.f32.mrb[162].mxu0  ;;  %v5270_v61 = vadd.f32 %v9923_v31, %v5184_v41 }
 0xa72   : > { %5304 = vrot.lane.b32.xlu1 %v5267_v32, %s7252_s17  ;;  %5330 = vrot.lane.b32.xlu0 %v5272_v8, %s7253_s18  ;;  %v5187_v19 = vpop.f32.mrb[163].mxu0  ;;  %v5273_v18 = vadd.f32 %v6567_v29, %v9923_v31 }
 0xa73   : > { %v5271_v11 = vadd.f32 %v9923_v31, %v5187_v19 }
 0xa76   : > { %5326 = vrot.lane.b32.xlu0 %v5270_v61, %s7253_s18  ;;  %5332 = vrot.lane.b32.xlu1 %v5273_v18, %s7253_s18 }
 0xa77   : > { %v6570_v44 = vpop.f32.mrb[164].mxu0 }
 0xa78   : > { %v5276_v28 = vadd.f32 %v6570_v44, %v9923_v31  ;;  %v5200_v49 = vpop.f32.mrb[165].mxu0 }
 0xa79   : > { %v6571_v7 = vpop.f32.mrb[166].mxu0  ;;  %v5274_v24 = vadd.f32 %v9923_v31, %v5200_v49 }
 0xa7a   : > { %5328 = vrot.lane.b32.xlu1 %v5271_v11, %s7253_s18  ;;  %5338 = vrot.lane.b32.xlu0 %v5276_v28, %s7253_s18  ;;  %v5203_v9 = vpop.f32.mrb[167].mxu0  ;;  %v5277_v63 = vadd.f32 %v6571_v7, %v9923_v31 }
 0xa7b   : > { %v5275_v17 = vadd.f32 %v9923_v31, %v5203_v9 }
 0xa7e   : > { %5334 = vrot.lane.b32.xlu0 %v5274_v24, %s7253_s18  ;;  %5340 = vrot.lane.b32.xlu1 %v5277_v63, %s7253_s18 }
 0xa7f   : > { %v6574_v20 = vpop.f32.mrb[168].mxu0 }
 0xa80   : > { %v5280_v26 = vadd.f32 %v6574_v20, %v9923_v31  ;;  %v5216_v37 = vpop.f32.mrb[169].mxu0 }
 0xa81   : > { %v6575_v39 = vpop.f32.mrb[170].mxu0  ;;  %v5278_v60 = vadd.f32 %v9923_v31, %v5216_v37 }
 0xa82   : > { %5336 = vrot.lane.b32.xlu1 %v5275_v17, %s7253_s18  ;;  %5362 = vrot.lane.b32.xlu0 %v5280_v26, %s7254_s19  ;;  %v5219_v54 = vpop.f32.mrb[171].mxu0  ;;  %v5281_v56 = vadd.f32 %v6575_v39, %v9923_v31 }
 0xa83   : > { %v5279_v5 = vadd.f32 %v9923_v31, %v5219_v54 }
 0xa86   : > { %5358 = vrot.lane.b32.xlu0 %v5278_v60, %s7254_s19  ;;  %5364 = vrot.lane.b32.xlu1 %v5281_v56, %s7254_s19 }
 0xa87   : > { %v6578_v47 = vpop.f32.mrb[172].mxu0 }
 0xa88   : > { %v5232_v25 = vpop.f32.mrb[173].mxu0  ;;  %v5284_v2 = vadd.f32 %v6578_v47, %v9923_v31 }
 0xa89   : > { %v5282_v10 = vadd.f32 %v9923_v31, %v5232_v25  ;;  %v6579_v30 = vpop.f32.mrb[174].mxu0 }
 0xa8a   : > { %5360 = vrot.lane.b32.xlu1 %v5279_v5, %s7254_s19  ;;  %v5235_v36 = vpop.f32.mrb[175].mxu0  ;;  %v5285_v35 = vadd.f32 %v6579_v30, %v9923_v31 }
 0xa8b   : > { %v5283_v22 = vadd.f32 %v9923_v31, %v5235_v36  ;;  %5366 = vrot.lane.b32.xlu0 %v5282_v10, %s7254_s19 }
 0xa8e   : > { %5368 = vrot.lane.b32.xlu1 %v5283_v22, %s7254_s19 }
 0xa8f   : > { %5370 = vrot.lane.b32.xlu0 %v5284_v2, %s7254_s19 }
 0xa92   : > { %5372 = vrot.lane.b32.xlu1 %v5285_v35, %s7254_s19 }
 0xad4   : > { %v5299_v21 = vpop.permute.xlu1 %5298 }
 0xad5   : > { %v5295_v62 = vpop.permute.xlu0 %5294  ;;  %v5384_v31 = vsel %vm483_vm0, %v9926_v55, %v5299_v21 }
 0xad6   : > { %v5382_v46 = vsel %vm483_vm0, %v9929_v48, %v5295_v62 }
 0xad8   : > { %v5301_v50 = vpop.permute.xlu1 %5300 }
 0xad9   : > { %v5385_v55 = vsel %vm483_vm0, %v9932_v34, %v5301_v50 }
 0xadc   : > { %v5297_v12 = vpop.permute.xlu1 %5296  ;;  %v5307_v51 = vpop.permute.xlu0 %5306 }
 0xadd   : > { %v5383_v48 = vsel %vm483_vm0, %v9935_v27, %v5297_v12 }
 0xae0   : > { %v5303_v52 = vpop.permute.xlu0 %5302  ;;  %v5309_v0 = vpop.permute.xlu1 %5308 }
 0xae1   : > { %v5386_v34 = vsel %vm483_vm0, %v9941_v40, %v5303_v52  ;;  %v5388_v40 = vsel %vm483_vm0, %v9938_v33, %v5307_v51  ;;  %v5389_v20 = vsel %vm483_vm0, %v9944_v59, %v5309_v0 }
 0xae4   : > { %v5305_v58 = vpop.permute.xlu1 %5304  ;;  %v5331_v13 = vpop.permute.xlu0 %5330 }
 0xae5   : > { %v5392_v14 = vsel %vm1966_vm2, %v5384_v31, %v5331_v13  ;;  %v5387_v27 = vsel %vm483_vm0, %v9947_v3, %v5305_v58 }
 0xae8   : > { %v5327_v53 = vpop.permute.xlu0 %5326  ;;  %v5333_v16 = vpop.permute.xlu1 %5332 }
 0xae9   : > { %v5390_v42 = vsel %vm1966_vm2, %v5382_v46, %v5327_v53  ;;  %v5393_v15 = vsel %vm1966_vm2, %v5385_v55, %v5333_v16 }
 0xaec   : > { %v5329_v1 = vpop.permute.xlu1 %5328  ;;  %v5339_v6 = vpop.permute.xlu0 %5338 }
 0xaed   : > { %v5391_v29 = vsel %vm1966_vm2, %v5383_v48, %v5329_v1  ;;  %v5396_v7 = vsel %vm1966_vm2, %v5388_v40, %v5339_v6 }
 0xaf0   : > { %v5335_v43 = vpop.permute.xlu0 %5334  ;;  %v5341_v45 = vpop.permute.xlu1 %5340 }
 0xaf1   : > { %v5394_v61 = vsel %vm1966_vm2, %v5386_v34, %v5335_v43  ;;  %v5397_v3 = vsel %vm1966_vm2, %v5389_v20, %v5341_v45 }
 0xaf4   : > { %v5337_v57 = vpop.permute.xlu1 %5336  ;;  %v5363_v4 = vpop.permute.xlu0 %5362 }
 0xaf5   : > { %v5401_v23 = vsel %vm5398_vm3, %v5392_v14, %v5363_v4  ;;  %v5395_v28 = vsel %vm1966_vm2, %v5387_v27, %v5337_v57 }
 0xaf6   : > { %5409 = vst [vmem:[%s9979_s23 + $0x10] sm:$0xff] %v5401_v23 }
 0xaf8   : > { %v5359_v38 = vpop.permute.xlu0 %5358  ;;  %v5365_v32 = vpop.permute.xlu1 %5364 }
 0xaf9   : > { %v5399_v8 = vsel %vm5398_vm3, %v5390_v42, %v5359_v38  ;;  %v5402_v41 = vsel %vm5398_vm3, %v5393_v15, %v5365_v32 }
 0xafa   : > { %5407 = vst [vmem:[%s9979_s23] sm:$0xff] %v5399_v8  ;;  %5410 = vst [vmem:[%s9979_s23 + $0x18] sm:$0xff] %v5402_v41 }
 0xafc   : > { %v5361_v19 = vpop.permute.xlu1 %5360 }
 0xafd   : > { %v5400_v18 = vsel %vm5398_vm3, %v5391_v29, %v5361_v19  ;;  %v5367_v44 = vpop.permute.xlu0 %5366 }
 0xafe   : > { %5408 = vst [vmem:[%s9979_s23 + $0x8] sm:$0xff] %v5400_v18  ;;  %v5403_v11 = vsel %vm5398_vm3, %v5394_v61, %v5367_v44 }
 0xaff   : > { %5411 = vst [vmem:[%s9979_s23 + $0x20] sm:$0xff] %v5403_v11 }
 0xb00   : > { %v5369_v49 = vpop.permute.xlu1 %5368 }
 0xb01   : > { %v5404_v9 = vsel %vm5398_vm3, %v5395_v28, %v5369_v49  ;;  %v5371_v24 = vpop.permute.xlu0 %5370 }
 0xb02   : > { %5412 = vst [vmem:[%s9979_s23 + $0x28] sm:$0xff] %v5404_v9  ;;  %v5405_v63 = vsel %vm5398_vm3, %v5396_v7, %v5371_v24 }
 0xb03   : > { %5413 = vst [vmem:[%s9979_s23 + $0x30] sm:$0xff] %v5405_v63 }
 0xb04   : > { %v5373_v17 = vpop.permute.xlu1 %5372 }
 0xb05   : > { %v5406_v33 = vsel %vm5398_vm3, %v5397_v3, %v5373_v17 }
 0xb06   : > { %5414 = vst [vmem:[%s9979_s23 + $0x38] sm:$0xff] %v5406_v33 }
 0xb07 PF: > { %s20_s30 = sadd.s32 1, %s7249_s30  }
 0xb08   : > { %p17_p1 = scmp.ge.s32.totalorder %s20_s30, 4  }
 0xb0a   :  { %19 = sbr.rel (!%p17_p1) target bundleno = 1 (0x1), region = 97 }
 0xb11   :  { %5436 = vsyncpa [#allocation3], 1 }
 0xb12   :  { %5438 = vsyncpa [#allocation3 + $0x1], 1 }

</bundles_post_ra>
